<compile_context>
chip_gen: v6e
topology: v6e:2x2x1
jax: 0.10.0
libtpu: 0.0.40
codegen_flags: <defaults>
</compile_context>

<pallas_src>
import functools

import jax
import jax.numpy as jnp
from jax import lax
from jax.experimental import pallas as pl
from jax.experimental.pallas import tpu as pltpu

_LANE = 128   # TPU lane width
_SUB = 8      # TPU sublane width


def _round_up(x, m):
    return (x + m - 1) // m * m


def _pick_tile_h(h_img, w_out, batch, d):
    """Row-tile height (conv2 output rows per grid step).

    Targets (perf review): multiple of 4*d (halo block alignment), flattened
    matmul M = tile_h*w_out in ~[512, 2048], >= 4 total grid steps
    (>= 2 per v7x TensorCore), even step count, minimal padded-row waste.
    """
    unit = 4 * d
    h_cap = _round_up(max(h_img, 1), unit)
    best, best_key = unit, None
    t = unit
    while t <= h_cap:
        tiles = -(-h_img // t)
        steps = batch * tiles
        m_rows = t * w_out
        waste = tiles * t - h_img
        key = (steps >= 4,              # enough steps for pipelining / 2 TCs
               steps % 2 == 0,          # balanced across v7x cores
               512 <= m_rows <= 2048,   # big-but-bounded matmul / VMEM tile
               -waste,                  # avoid padded-row overhead
               t)                       # then prefer larger tiles
        if best_key is None or key > best_key:
            best, best_key = t, key
        t += unit
    return best


# ----------------------------------------------------------------------------
# Fused conv3x3+BN+ReLU -> conv3x3+BN+residual+ReLU kernel (one row tile).
# ----------------------------------------------------------------------------
def _fused_basic_block_kernel(xa_ref, xb_ref, w1_ref, s1_ref, b1_ref,
                              w2_ref, s2_ref, b2_ref, o_ref, *,
                              tile_h, w_out, w1c, d, h_img, w_img):
    cp = o_ref.shape[-1]
    t = pl.program_id(1)                       # row-tile index within the image

    # Halo region for this row tile: (tile_h + 4d, WP, cp) bf16; already
    # zero-padded spatially and channel-wise by the wrapper.
    region = jnp.concatenate([xa_ref[0], xb_ref[0]], axis=0)

    # ---- conv1 + BN1 + ReLU over the tile plus a d-row/col halo ------------
    h1r = tile_h + 2 * d
    m1 = h1r * w1c
    acc1 = jnp.zeros((m1, cp), jnp.float32)
    for kh in range(3):
        for kw in range(3):
            tap = region[kh * d:kh * d + h1r, kw * d:kw * d + w1c, :]
            acc1 = acc1 + jnp.dot(tap.reshape(m1, cp), w1_ref[kh * 3 + kw],
                                  preferred_element_type=jnp.float32)
    h1 = jnp.maximum(acc1 * s1_ref[...] + b1_ref[...], 0.0).reshape(h1r, w1c, cp)

    # conv2 zero-pads h1 at the image border: halo positions that fall outside
    # the real image must be exactly zero (BN bias would otherwise leak in).
    rr = t * tile_h - d + lax.broadcasted_iota(jnp.int32, (h1r, w1c, cp), 0)
    cc = lax.broadcasted_iota(jnp.int32, (h1r, w1c, cp), 1) - d
    valid = (rr >= 0) & (rr < h_img) & (cc >= 0) & (cc < w_img)
    h1 = jnp.where(valid, h1, 0.0).astype(jnp.bfloat16)

    # ---- conv2 + BN2 + residual + ReLU (h1 consumed straight from VMEM) ----
    m2 = tile_h * w_out
    acc2 = jnp.zeros((m2, cp), jnp.float32)
    for kh in range(3):
        for kw in range(3):
            tap = h1[kh * d:kh * d + tile_h, kw * d:kw * d + w_out, :]
            acc2 = acc2 + jnp.dot(tap.reshape(m2, cp), w2_ref[kh * 3 + kw],
                                  preferred_element_type=jnp.float32)

    # Residual comes from the already-resident x region (no extra HBM stream).
    res = region[2 * d:2 * d + tile_h, 2 * d:2 * d + w_out, :].reshape(m2, cp)
    out = acc2 * s2_ref[...] + b2_ref[...] + res.astype(jnp.float32)
    o_ref[...] = (jnp.maximum(out, 0.0)
                  .reshape(1, tile_h, w_out, cp).astype(o_ref.dtype))


# ----------------------------------------------------------------------------
# Wrapper.
# ----------------------------------------------------------------------------
@functools.partial(jax.jit, static_argnames=("dilation", "out_dtype"))
def basic_block_forward(x, params, dilation=1, out_dtype=None, eps=1e-5):
    """BasicBlock forward. x: (B,H,W,C) NHWC, inplanes == planes, stride=1."""
    B, H, W, cin = x.shape
    cout = params["w1"].shape[-1]
    assert params["w1"].shape[2] == cin and cin == cout, \
        "stride=1 / downsample=None path requires inplanes == planes"
    d = int(dilation)
    out_dtype = x.dtype if out_dtype is None else out_dtype

    cpad = _round_up(max(cin, cout), _LANE)
    w_out = _round_up(W, _SUB)               # output / residual tile width
    w1c = _round_up(w_out + 2 * d, _SUB)     # conv1/h1 computed width
    wp = _round_up(w1c + 2 * d, _SUB)        # padded-x width inside the kernel

    tile_h = _pick_tile_h(H, w_out, B, d)
    h_pad = _round_up(H, tile_h)
    n_tiles = h_pad // tile_h
    halo_blk = tile_h // (4 * d)             # block-index stride of halo spec

    # Single stage-boundary pad: bf16, 2d-row/col zero halo, lane-padded chans.
    xp = jnp.pad(x.astype(jnp.bfloat16),
                 ((0, 0), (2 * d, h_pad - H + 2 * d),
                  (2 * d, wp - W - 2 * d), (0, cpad - cin)))

    # Per-tap weights (9, Cpad, Cpad) bf16; padded channels are zero.
    def prep_w(w):
        wpd = jnp.pad(w, ((0, 0), (0, 0), (0, cpad - cin), (0, cpad - cout)))
        return wpd.reshape(9, cpad, cpad).astype(jnp.bfloat16)

    # Folded eval-mode BN; padded channels get scale=bias=0 so they stay zero.
    def prep_bn(g, b, m, v):
        inv = g / jnp.sqrt(v + eps)
        s = jnp.pad(inv, (0, cpad - cout)).reshape(1, cpad).astype(jnp.float32)
        bb = jnp.pad(b - m * inv, (0, cpad - cout)).reshape(1, cpad)
        return s, bb.astype(jnp.float32)

    w1q, w2q = prep_w(params["w1"]), prep_w(params["w2"])
    s1, b1 = prep_bn(params["g1"], params["b1"], params["m1"], params["v1"])
    s2, b2 = prep_bn(params["g2"], params["b2"], params["m2"], params["v2"])

    # --- VMEM budget / cost estimate (sized from the actual structure) ------
    h1r = tile_h + 2 * d
    m1 = h1r * w1c
    m2 = tile_h * w_out
    out_itm = jnp.dtype(out_dtype).itemsize
    body_b = tile_h * wp * cpad * 2
    halo_b = 4 * d * wp * cpad * 2
    wgt_b = 2 * 9 * cpad * cpad * 2 + 4 * cpad * 4
    out_b = tile_h * w_out * cpad * out_itm
    tmp_b = ((tile_h + 4 * d) * wp * cpad * 2      # region concat
             + m1 * cpad * (4 + 2 + 8)             # conv1 acc + h1 + mask temps
             + m2 * cpad * 4 * 2)                  # conv2 acc + epilogue
    est = 2 * (body_b + halo_b + out_b) + 2 * wgt_b + tmp_b
    vmem_limit = int(min(max(2 * est, 32 << 20), 64 << 20))

    tiles_total = B * n_tiles
    cost = pl.CostEstimate(
        flops=2 * 9 * cpad * cpad * tiles_total * (m1 + m2),
        transcendentals=0,
        bytes_accessed=(tiles_total * (tile_h + 4 * d) * wp * cpad * 2
                        + wgt_b + B * h_pad * w_out * cpad * out_itm),
    )

    kernel = functools.partial(
        _fused_basic_block_kernel, tile_h=tile_h, w_out=w_out, w1c=w1c,
        d=d, h_img=H, w_img=W)

    in_specs = [
        # body rows of padded x for this tile
        pl.BlockSpec((1, tile_h, wp, cpad), lambda b, t: (b, t, 0, 0)),
        # 4d-row bottom halo (starts exactly at row (t+1)*tile_h of padded x)
        pl.BlockSpec((1, 4 * d, wp, cpad),
                     lambda b, t: (b, (t + 1) * halo_blk, 0, 0)),
        # resident weights / folded BN (constant block index)
        pl.BlockSpec((9, cpad, cpad), lambda b, t: (0, 0, 0)),
        pl.BlockSpec((1, cpad), lambda b, t: (0, 0)),
        pl.BlockSpec((1, cpad), lambda b, t: (0, 0)),
        pl.BlockSpec((9, cpad, cpad), lambda b, t: (0, 0, 0)),
        pl.BlockSpec((1, cpad), lambda b, t: (0, 0)),
        pl.BlockSpec((1, cpad), lambda b, t: (0, 0)),
    ]

    out = pl.pallas_call(
        kernel,
        out_shape=jax.ShapeDtypeStruct((B, h_pad, w_out, cpad), out_dtype),
        grid=(B, n_tiles),
        in_specs=in_specs,
        out_specs=pl.BlockSpec((1, tile_h, w_out, cpad),
                               lambda b, t: (b, t, 0, 0)),
        compiler_params=pltpu.CompilerParams(
            dimension_semantics=("parallel", "parallel"),
            vmem_limit_bytes=vmem_limit),
        cost_estimate=cost,
    )(xp, xp, w1q, s1, b1, w2q, s2, b2)

    return out[:, :H, :W, :cout]


# ----------------------------------------------------------------------------
# Pure-JAX f32 reference (eval-mode BN).
# ----------------------------------------------------------------------------
def _reference_forward(x, params, dilation=1, eps=1e-5):
    d = dilation

    def conv_bn(x_, w, g, b, m, v):
        y = lax.conv_general_dilated(
            x_, w, window_strides=(1, 1), padding=((d, d), (d, d)),
            rhs_dilation=(d, d),
            dimension_numbers=("NHWC", "HWIO", "NHWC"))
        return (y - m) / jnp.sqrt(v + eps) * g + b

    o = jnp.maximum(conv_bn(x, params["w1"], params["g1"], params["b1"],
                            params["m1"], params["v1"]), 0.0)
    o = conv_bn(o, params["w2"], params["g2"], params["b2"],
                params["m2"], params["v2"])
    return jnp.maximum(o + x, 0.0)


if __name__ == "__main__":
    key = jax.random.PRNGKey(0)
    B, H, W = 2, 16, 16
    inplanes = planes = 64   # ResNet-style BasicBlock: inplanes == planes

    ks = jax.random.split(key, 11)
    params = dict(
        w1=0.1 * jax.random.normal(ks[0], (3, 3, inplanes, planes), jnp.float32),
        w2=0.1 * jax.random.normal(ks[1], (3, 3, planes, planes), jnp.float32),
        g1=1.0 + 0.1 * jax.random.normal(ks[2], (planes,), jnp.float32),
        b1=0.1 * jax.random.normal(ks[3], (planes,), jnp.float32),
        m1=0.05 * jax.random.normal(ks[4], (planes,), jnp.float32),
        v1=0.5 + jnp.abs(jax.random.normal(ks[5], (planes,), jnp.float32)),
        g2=1.0 + 0.1 * jax.random.normal(ks[6], (planes,), jnp.float32),
        b2=0.1 * jax.random.normal(ks[7], (planes,), jnp.float32),
        m2=0.05 * jax.random.normal(ks[8], (planes,), jnp.float32),
        v2=0.5 + jnp.abs(jax.random.normal(ks[9], (planes,), jnp.float32)),
    )
    x = jax.random.normal(ks[10], (B, H, W, inplanes), jnp.float32)

    # Check both the plain (d=1) and dilated (d=2) DeepLab configurations.
    for dilation in (1, 2):
        out = jax.block_until_ready(
            basic_block_forward(x, params, dilation=dilation))
        ref = jax.block_until_ready(
            _reference_forward(x, params, dilation=dilation))
        assert out.shape == (B, H, W, planes)
        # bf16 operands / f32 accumulation vs pure-f32 reference.
        err = float(jnp.max(jnp.abs(out.astype(jnp.float32) - ref)))
        ref_scale = float(jnp.max(jnp.abs(ref))) + 1e-6
        assert err / ref_scale < 2e-2, (
            f"dilation={dilation}: rel_err={err / ref_scale:.3e}")

    print("KERNEL_OK")
</pallas_src>

<mosaic_0001>
module attributes {stable_mosaic.version = 11 : i64} {
  func.func @_fused_basic_block_kernel(%arg0: i32, %arg1: i32, %arg2: memref<1x8x32x128xbf16, #tpu.memory_space<vmem>>, %arg3: memref<1x4x32x128xbf16, #tpu.memory_space<vmem>>, %arg4: memref<9x128x128xbf16, #tpu.memory_space<vmem>>, %arg5: memref<1x128xf32, #tpu.memory_space<vmem>>, %arg6: memref<1x128xf32, #tpu.memory_space<vmem>>, %arg7: memref<9x128x128xbf16, #tpu.memory_space<vmem>>, %arg8: memref<1x128xf32, #tpu.memory_space<vmem>>, %arg9: memref<1x128xf32, #tpu.memory_space<vmem>>, %arg10: memref<1x8x16x128xf32, #tpu.memory_space<vmem>>) attributes {dimension_semantics = [#tpu.dimension_semantics<parallel>, #tpu.dimension_semantics<parallel>], iteration_bounds = array<i64: 2, 2>, scalar_prefetch = 0 : i64, scratch_operands = 0 : i64, tpu.core_type = #tpu.core_type<tc>, window_params = [{transform_indices = @transform_0, window_bounds = array<i64: 1, 8, 32, 128>}, {transform_indices = @transform_1, window_bounds = array<i64: 1, 4, 32, 128>}, {pipeline_mode = #tpu.pipeline_mode<synchronous>, transform_indices = @transform_2, window_bounds = array<i64: 9, 128, 128>}, {pipeline_mode = #tpu.pipeline_mode<synchronous>, transform_indices = @transform_3, window_bounds = array<i64: 1, 128>}, {pipeline_mode = #tpu.pipeline_mode<synchronous>, transform_indices = @transform_4, window_bounds = array<i64: 1, 128>}, {pipeline_mode = #tpu.pipeline_mode<synchronous>, transform_indices = @transform_5, window_bounds = array<i64: 9, 128, 128>}, {pipeline_mode = #tpu.pipeline_mode<synchronous>, transform_indices = @transform_6, window_bounds = array<i64: 1, 128>}, {pipeline_mode = #tpu.pipeline_mode<synchronous>, transform_indices = @transform_7, window_bounds = array<i64: 1, 128>}, {transform_indices = @transform_8, window_bounds = array<i64: 1, 8, 16, 128>}]} {
    %c0 = arith.constant 0 : index
    %c0_0 = arith.constant 0 : index
    %c0_1 = arith.constant 0 : index
    %c0_2 = arith.constant 0 : index
    %0 = vector.load %arg2[%c0, %c0_0, %c0_1, %c0_2] : memref<1x8x32x128xbf16, #tpu.memory_space<vmem>>, vector<1x8x32x128xbf16>
    %1 = vector.shape_cast %0 : vector<1x8x32x128xbf16> to vector<8x32x128xbf16>
    %c0_3 = arith.constant 0 : index
    %c0_4 = arith.constant 0 : index
    %c0_5 = arith.constant 0 : index
    %c0_6 = arith.constant 0 : index
    %2 = vector.load %arg3[%c0_3, %c0_4, %c0_5, %c0_6] : memref<1x4x32x128xbf16, #tpu.memory_space<vmem>>, vector<1x4x32x128xbf16>
    %3 = vector.shape_cast %2 : vector<1x4x32x128xbf16> to vector<4x32x128xbf16>
    %4 = tpu.concatenate %1, %3 in 0 : vector<8x32x128xbf16>, vector<4x32x128xbf16> -> vector<12x32x128xbf16>
    %cst = arith.constant 0.000000e+00 : f32
    %5 = vector.broadcast %cst : f32 to vector<240x128xf32>
    %6 = vector.extract_strided_slice %4 {offsets = [0, 0, 0], sizes = [10, 24, 128], strides = [1, 1, 1]} : vector<12x32x128xbf16> to vector<10x24x128xbf16>
    %7 = vector.shape_cast %6 : vector<10x24x128xbf16> to vector<240x128xbf16>
    %c0_7 = arith.constant 0 : index
    %c0_8 = arith.constant 0 : index
    %c0_9 = arith.constant 0 : index
    %8 = vector.load %arg4[%c0_7, %c0_8, %c0_9] : memref<9x128x128xbf16, #tpu.memory_space<vmem>>, vector<1x128x128xbf16>
    %9 = vector.shape_cast %8 : vector<1x128x128xbf16> to vector<128x128xbf16>
    %cst_10 = arith.constant dense<0.000000e+00> : vector<240x128xf32>
    %10 = tpu.matmul %7, %9, %cst_10 {dimension_numbers = #tpu.dot_dimension_numbers<[1], [0], [0], [1], [0, 0, 1, 1], [], []>} : vector<240x128xbf16>, vector<128x128xbf16>, vector<240x128xf32> -> vector<240x128xf32>
    %11 = arith.addf %5, %10 : vector<240x128xf32>
    %12 = vector.extract_strided_slice %4 {offsets = [0, 1, 0], sizes = [10, 24, 128], strides = [1, 1, 1]} : vector<12x32x128xbf16> to vector<10x24x128xbf16>
    %13 = vector.shape_cast %12 : vector<10x24x128xbf16> to vector<240x128xbf16>
    %c1 = arith.constant 1 : index
    %c0_11 = arith.constant 0 : index
    %c0_12 = arith.constant 0 : index
    %14 = vector.load %arg4[%c1, %c0_11, %c0_12] : memref<9x128x128xbf16, #tpu.memory_space<vmem>>, vector<1x128x128xbf16>
    %15 = vector.shape_cast %14 : vector<1x128x128xbf16> to vector<128x128xbf16>
    %cst_13 = arith.constant dense<0.000000e+00> : vector<240x128xf32>
    %16 = tpu.matmul %13, %15, %cst_13 {dimension_numbers = #tpu.dot_dimension_numbers<[1], [0], [0], [1], [0, 0, 1, 1], [], []>} : vector<240x128xbf16>, vector<128x128xbf16>, vector<240x128xf32> -> vector<240x128xf32>
    %17 = arith.addf %11, %16 : vector<240x128xf32>
    %18 = vector.extract_strided_slice %4 {offsets = [0, 2, 0], sizes = [10, 24, 128], strides = [1, 1, 1]} : vector<12x32x128xbf16> to vector<10x24x128xbf16>
    %19 = vector.shape_cast %18 : vector<10x24x128xbf16> to vector<240x128xbf16>
    %c2 = arith.constant 2 : index
    %c0_14 = arith.constant 0 : index
    %c0_15 = arith.constant 0 : index
    %20 = vector.load %arg4[%c2, %c0_14, %c0_15] : memref<9x128x128xbf16, #tpu.memory_space<vmem>>, vector<1x128x128xbf16>
    %21 = vector.shape_cast %20 : vector<1x128x128xbf16> to vector<128x128xbf16>
    %cst_16 = arith.constant dense<0.000000e+00> : vector<240x128xf32>
    %22 = tpu.matmul %19, %21, %cst_16 {dimension_numbers = #tpu.dot_dimension_numbers<[1], [0], [0], [1], [0, 0, 1, 1], [], []>} : vector<240x128xbf16>, vector<128x128xbf16>, vector<240x128xf32> -> vector<240x128xf32>
    %23 = arith.addf %17, %22 : vector<240x128xf32>
    %24 = vector.extract_strided_slice %4 {offsets = [1, 0, 0], sizes = [10, 24, 128], strides = [1, 1, 1]} : vector<12x32x128xbf16> to vector<10x24x128xbf16>
    %25 = vector.shape_cast %24 : vector<10x24x128xbf16> to vector<240x128xbf16>
    %c3 = arith.constant 3 : index
    %c0_17 = arith.constant 0 : index
    %c0_18 = arith.constant 0 : index
    %26 = vector.load %arg4[%c3, %c0_17, %c0_18] : memref<9x128x128xbf16, #tpu.memory_space<vmem>>, vector<1x128x128xbf16>
    %27 = vector.shape_cast %26 : vector<1x128x128xbf16> to vector<128x128xbf16>
    %cst_19 = arith.constant dense<0.000000e+00> : vector<240x128xf32>
    %28 = tpu.matmul %25, %27, %cst_19 {dimension_numbers = #tpu.dot_dimension_numbers<[1], [0], [0], [1], [0, 0, 1, 1], [], []>} : vector<240x128xbf16>, vector<128x128xbf16>, vector<240x128xf32> -> vector<240x128xf32>
    %29 = arith.addf %23, %28 : vector<240x128xf32>
    %30 = vector.extract_strided_slice %4 {offsets = [1, 1, 0], sizes = [10, 24, 128], strides = [1, 1, 1]} : vector<12x32x128xbf16> to vector<10x24x128xbf16>
    %31 = vector.shape_cast %30 : vector<10x24x128xbf16> to vector<240x128xbf16>
    %c4 = arith.constant 4 : index
    %c0_20 = arith.constant 0 : index
    %c0_21 = arith.constant 0 : index
    %32 = vector.load %arg4[%c4, %c0_20, %c0_21] : memref<9x128x128xbf16, #tpu.memory_space<vmem>>, vector<1x128x128xbf16>
    %33 = vector.shape_cast %32 : vector<1x128x128xbf16> to vector<128x128xbf16>
    %cst_22 = arith.constant dense<0.000000e+00> : vector<240x128xf32>
    %34 = tpu.matmul %31, %33, %cst_22 {dimension_numbers = #tpu.dot_dimension_numbers<[1], [0], [0], [1], [0, 0, 1, 1], [], []>} : vector<240x128xbf16>, vector<128x128xbf16>, vector<240x128xf32> -> vector<240x128xf32>
    %35 = arith.addf %29, %34 : vector<240x128xf32>
    %36 = vector.extract_strided_slice %4 {offsets = [1, 2, 0], sizes = [10, 24, 128], strides = [1, 1, 1]} : vector<12x32x128xbf16> to vector<10x24x128xbf16>
    %37 = vector.shape_cast %36 : vector<10x24x128xbf16> to vector<240x128xbf16>
    %c5 = arith.constant 5 : index
    %c0_23 = arith.constant 0 : index
    %c0_24 = arith.constant 0 : index
    %38 = vector.load %arg4[%c5, %c0_23, %c0_24] : memref<9x128x128xbf16, #tpu.memory_space<vmem>>, vector<1x128x128xbf16>
    %39 = vector.shape_cast %38 : vector<1x128x128xbf16> to vector<128x128xbf16>
    %cst_25 = arith.constant dense<0.000000e+00> : vector<240x128xf32>
    %40 = tpu.matmul %37, %39, %cst_25 {dimension_numbers = #tpu.dot_dimension_numbers<[1], [0], [0], [1], [0, 0, 1, 1], [], []>} : vector<240x128xbf16>, vector<128x128xbf16>, vector<240x128xf32> -> vector<240x128xf32>
    %41 = arith.addf %35, %40 : vector<240x128xf32>
    %42 = vector.extract_strided_slice %4 {offsets = [2, 0, 0], sizes = [10, 24, 128], strides = [1, 1, 1]} : vector<12x32x128xbf16> to vector<10x24x128xbf16>
    %43 = vector.shape_cast %42 : vector<10x24x128xbf16> to vector<240x128xbf16>
    %c6 = arith.constant 6 : index
    %c0_26 = arith.constant 0 : index
    %c0_27 = arith.constant 0 : index
    %44 = vector.load %arg4[%c6, %c0_26, %c0_27] : memref<9x128x128xbf16, #tpu.memory_space<vmem>>, vector<1x128x128xbf16>
    %45 = vector.shape_cast %44 : vector<1x128x128xbf16> to vector<128x128xbf16>
    %cst_28 = arith.constant dense<0.000000e+00> : vector<240x128xf32>
    %46 = tpu.matmul %43, %45, %cst_28 {dimension_numbers = #tpu.dot_dimension_numbers<[1], [0], [0], [1], [0, 0, 1, 1], [], []>} : vector<240x128xbf16>, vector<128x128xbf16>, vector<240x128xf32> -> vector<240x128xf32>
    %47 = arith.addf %41, %46 : vector<240x128xf32>
    %48 = vector.extract_strided_slice %4 {offsets = [2, 1, 0], sizes = [10, 24, 128], strides = [1, 1, 1]} : vector<12x32x128xbf16> to vector<10x24x128xbf16>
    %49 = vector.shape_cast %48 : vector<10x24x128xbf16> to vector<240x128xbf16>
    %c7 = arith.constant 7 : index
    %c0_29 = arith.constant 0 : index
    %c0_30 = arith.constant 0 : index
    %50 = vector.load %arg4[%c7, %c0_29, %c0_30] : memref<9x128x128xbf16, #tpu.memory_space<vmem>>, vector<1x128x128xbf16>
    %51 = vector.shape_cast %50 : vector<1x128x128xbf16> to vector<128x128xbf16>
    %cst_31 = arith.constant dense<0.000000e+00> : vector<240x128xf32>
    %52 = tpu.matmul %49, %51, %cst_31 {dimension_numbers = #tpu.dot_dimension_numbers<[1], [0], [0], [1], [0, 0, 1, 1], [], []>} : vector<240x128xbf16>, vector<128x128xbf16>, vector<240x128xf32> -> vector<240x128xf32>
    %53 = arith.addf %47, %52 : vector<240x128xf32>
    %54 = vector.extract_strided_slice %4 {offsets = [2, 2, 0], sizes = [10, 24, 128], strides = [1, 1, 1]} : vector<12x32x128xbf16> to vector<10x24x128xbf16>
    %55 = vector.shape_cast %54 : vector<10x24x128xbf16> to vector<240x128xbf16>
    %c8 = arith.constant 8 : index
    %c0_32 = arith.constant 0 : index
    %c0_33 = arith.constant 0 : index
    %56 = vector.load %arg4[%c8, %c0_32, %c0_33] : memref<9x128x128xbf16, #tpu.memory_space<vmem>>, vector<1x128x128xbf16>
    %57 = vector.shape_cast %56 : vector<1x128x128xbf16> to vector<128x128xbf16>
    %cst_34 = arith.constant dense<0.000000e+00> : vector<240x128xf32>
    %58 = tpu.matmul %55, %57, %cst_34 {dimension_numbers = #tpu.dot_dimension_numbers<[1], [0], [0], [1], [0, 0, 1, 1], [], []>} : vector<240x128xbf16>, vector<128x128xbf16>, vector<240x128xf32> -> vector<240x128xf32>
    %59 = arith.addf %53, %58 : vector<240x128xf32>
    %c0_35 = arith.constant 0 : index
    %c0_36 = arith.constant 0 : index
    %60 = vector.load %arg5[%c0_35, %c0_36] : memref<1x128xf32, #tpu.memory_space<vmem>>, vector<1x128xf32>
    %61 = vector.broadcast %60 : vector<1x128xf32> to vector<240x128xf32>
    %62 = arith.mulf %59, %61 : vector<240x128xf32>
    %c0_37 = arith.constant 0 : index
    %c0_38 = arith.constant 0 : index
    %63 = vector.load %arg6[%c0_37, %c0_38] : memref<1x128xf32, #tpu.memory_space<vmem>>, vector<1x128xf32>
    %64 = vector.broadcast %63 : vector<1x128xf32> to vector<240x128xf32>
    %65 = arith.addf %62, %64 : vector<240x128xf32>
    %cst_39 = arith.constant 0.000000e+00 : f32
    %66 = vector.broadcast %cst_39 : f32 to vector<240x128xf32>
    %67 = arith.maximumf %65, %66 : vector<240x128xf32>
    %68 = vector.shape_cast %67 : vector<240x128xf32> to vector<10x24x128xf32>
    %c8_i32 = arith.constant 8 : i32
    %69 = arith.muli %arg1, %c8_i32 : i32
    %c1_i32 = arith.constant 1 : i32
    %70 = arith.subi %69, %c1_i32 : i32
    %71 = tpu.iota {dimensions = array<i32: 0>} : vector<10x24x128xi32>
    %72 = vector.broadcast %70 : i32 to vector<10x24x128xi32>
    %73 = arith.addi %72, %71 : vector<10x24x128xi32>
    %74 = tpu.iota {dimensions = array<i32: 1>} : vector<10x24x128xi32>
    %c1_i32_40 = arith.constant 1 : i32
    %75 = vector.broadcast %c1_i32_40 : i32 to vector<10x24x128xi32>
    %76 = arith.subi %74, %75 : vector<10x24x128xi32>
    %c0_i32 = arith.constant 0 : i32
    %77 = vector.broadcast %c0_i32 : i32 to vector<10x24x128xi32>
    %78 = arith.cmpi sge, %73, %77 : vector<10x24x128xi32>
    %c16_i32 = arith.constant 16 : i32
    %79 = vector.broadcast %c16_i32 : i32 to vector<10x24x128xi32>
    %80 = arith.cmpi slt, %73, %79 : vector<10x24x128xi32>
    %81 = arith.andi %78, %80 : vector<10x24x128xi1>
    %c0_i32_41 = arith.constant 0 : i32
    %82 = vector.broadcast %c0_i32_41 : i32 to vector<10x24x128xi32>
    %83 = arith.cmpi sge, %76, %82 : vector<10x24x128xi32>
    %84 = arith.andi %81, %83 : vector<10x24x128xi1>
    %c16_i32_42 = arith.constant 16 : i32
    %85 = vector.broadcast %c16_i32_42 : i32 to vector<10x24x128xi32>
    %86 = arith.cmpi slt, %76, %85 : vector<10x24x128xi32>
    %87 = arith.andi %84, %86 : vector<10x24x128xi1>
    %cst_43 = arith.constant 0.000000e+00 : f32
    %88 = vector.broadcast %cst_43 : f32 to vector<10x24x128xf32>
    %89 = arith.select %87, %68, %88 : vector<10x24x128xi1>, vector<10x24x128xf32>
    %90 = arith.truncf %89 : vector<10x24x128xf32> to vector<10x24x128xbf16>
    %cst_44 = arith.constant 0.000000e+00 : f32
    %91 = vector.broadcast %cst_44 : f32 to vector<128x128xf32>
    %92 = vector.extract_strided_slice %90 {offsets = [0, 0, 0], sizes = [8, 16, 128], strides = [1, 1, 1]} : vector<10x24x128xbf16> to vector<8x16x128xbf16>
    %93 = vector.shape_cast %92 : vector<8x16x128xbf16> to vector<128x128xbf16>
    %c0_45 = arith.constant 0 : index
    %c0_46 = arith.constant 0 : index
    %c0_47 = arith.constant 0 : index
    %94 = vector.load %arg7[%c0_45, %c0_46, %c0_47] : memref<9x128x128xbf16, #tpu.memory_space<vmem>>, vector<1x128x128xbf16>
    %95 = vector.shape_cast %94 : vector<1x128x128xbf16> to vector<128x128xbf16>
    %cst_48 = arith.constant dense<0.000000e+00> : vector<128x128xf32>
    %96 = tpu.matmul %93, %95, %cst_48 {dimension_numbers = #tpu.dot_dimension_numbers<[1], [0], [0], [1], [0, 0, 1, 1], [], []>} : vector<128x128xbf16>, vector<128x128xbf16>, vector<128x128xf32> -> vector<128x128xf32>
    %97 = arith.addf %91, %96 : vector<128x128xf32>
    %98 = vector.extract_strided_slice %90 {offsets = [0, 1, 0], sizes = [8, 16, 128], strides = [1, 1, 1]} : vector<10x24x128xbf16> to vector<8x16x128xbf16>
    %99 = vector.shape_cast %98 : vector<8x16x128xbf16> to vector<128x128xbf16>
    %c1_49 = arith.constant 1 : index
    %c0_50 = arith.constant 0 : index
    %c0_51 = arith.constant 0 : index
    %100 = vector.load %arg7[%c1_49, %c0_50, %c0_51] : memref<9x128x128xbf16, #tpu.memory_space<vmem>>, vector<1x128x128xbf16>
    %101 = vector.shape_cast %100 : vector<1x128x128xbf16> to vector<128x128xbf16>
    %cst_52 = arith.constant dense<0.000000e+00> : vector<128x128xf32>
    %102 = tpu.matmul %99, %101, %cst_52 {dimension_numbers = #tpu.dot_dimension_numbers<[1], [0], [0], [1], [0, 0, 1, 1], [], []>} : vector<128x128xbf16>, vector<128x128xbf16>, vector<128x128xf32> -> vector<128x128xf32>
    %103 = arith.addf %97, %102 : vector<128x128xf32>
    %104 = vector.extract_strided_slice %90 {offsets = [0, 2, 0], sizes = [8, 16, 128], strides = [1, 1, 1]} : vector<10x24x128xbf16> to vector<8x16x128xbf16>
    %105 = vector.shape_cast %104 : vector<8x16x128xbf16> to vector<128x128xbf16>
    %c2_53 = arith.constant 2 : index
    %c0_54 = arith.constant 0 : index
    %c0_55 = arith.constant 0 : index
    %106 = vector.load %arg7[%c2_53, %c0_54, %c0_55] : memref<9x128x128xbf16, #tpu.memory_space<vmem>>, vector<1x128x128xbf16>
    %107 = vector.shape_cast %106 : vector<1x128x128xbf16> to vector<128x128xbf16>
    %cst_56 = arith.constant dense<0.000000e+00> : vector<128x128xf32>
    %108 = tpu.matmul %105, %107, %cst_56 {dimension_numbers = #tpu.dot_dimension_numbers<[1], [0], [0], [1], [0, 0, 1, 1], [], []>} : vector<128x128xbf16>, vector<128x128xbf16>, vector<128x128xf32> -> vector<128x128xf32>
    %109 = arith.addf %103, %108 : vector<128x128xf32>
    %110 = vector.extract_strided_slice %90 {offsets = [1, 0, 0], sizes = [8, 16, 128], strides = [1, 1, 1]} : vector<10x24x128xbf16> to vector<8x16x128xbf16>
    %111 = vector.shape_cast %110 : vector<8x16x128xbf16> to vector<128x128xbf16>
    %c3_57 = arith.constant 3 : index
    %c0_58 = arith.constant 0 : index
    %c0_59 = arith.constant 0 : index
    %112 = vector.load %arg7[%c3_57, %c0_58, %c0_59] : memref<9x128x128xbf16, #tpu.memory_space<vmem>>, vector<1x128x128xbf16>
    %113 = vector.shape_cast %112 : vector<1x128x128xbf16> to vector<128x128xbf16>
    %cst_60 = arith.constant dense<0.000000e+00> : vector<128x128xf32>
    %114 = tpu.matmul %111, %113, %cst_60 {dimension_numbers = #tpu.dot_dimension_numbers<[1], [0], [0], [1], [0, 0, 1, 1], [], []>} : vector<128x128xbf16>, vector<128x128xbf16>, vector<128x128xf32> -> vector<128x128xf32>
    %115 = arith.addf %109, %114 : vector<128x128xf32>
    %116 = vector.extract_strided_slice %90 {offsets = [1, 1, 0], sizes = [8, 16, 128], strides = [1, 1, 1]} : vector<10x24x128xbf16> to vector<8x16x128xbf16>
    %117 = vector.shape_cast %116 : vector<8x16x128xbf16> to vector<128x128xbf16>
    %c4_61 = arith.constant 4 : index
    %c0_62 = arith.constant 0 : index
    %c0_63 = arith.constant 0 : index
    %118 = vector.load %arg7[%c4_61, %c0_62, %c0_63] : memref<9x128x128xbf16, #tpu.memory_space<vmem>>, vector<1x128x128xbf16>
    %119 = vector.shape_cast %118 : vector<1x128x128xbf16> to vector<128x128xbf16>
    %cst_64 = arith.constant dense<0.000000e+00> : vector<128x128xf32>
    %120 = tpu.matmul %117, %119, %cst_64 {dimension_numbers = #tpu.dot_dimension_numbers<[1], [0], [0], [1], [0, 0, 1, 1], [], []>} : vector<128x128xbf16>, vector<128x128xbf16>, vector<128x128xf32> -> vector<128x128xf32>
    %121 = arith.addf %115, %120 : vector<128x128xf32>
    %122 = vector.extract_strided_slice %90 {offsets = [1, 2, 0], sizes = [8, 16, 128], strides = [1, 1, 1]} : vector<10x24x128xbf16> to vector<8x16x128xbf16>
    %123 = vector.shape_cast %122 : vector<8x16x128xbf16> to vector<128x128xbf16>
    %c5_65 = arith.constant 5 : index
    %c0_66 = arith.constant 0 : index
    %c0_67 = arith.constant 0 : index
    %124 = vector.load %arg7[%c5_65, %c0_66, %c0_67] : memref<9x128x128xbf16, #tpu.memory_space<vmem>>, vector<1x128x128xbf16>
    %125 = vector.shape_cast %124 : vector<1x128x128xbf16> to vector<128x128xbf16>
    %cst_68 = arith.constant dense<0.000000e+00> : vector<128x128xf32>
    %126 = tpu.matmul %123, %125, %cst_68 {dimension_numbers = #tpu.dot_dimension_numbers<[1], [0], [0], [1], [0, 0, 1, 1], [], []>} : vector<128x128xbf16>, vector<128x128xbf16>, vector<128x128xf32> -> vector<128x128xf32>
    %127 = arith.addf %121, %126 : vector<128x128xf32>
    %128 = vector.extract_strided_slice %90 {offsets = [2, 0, 0], sizes = [8, 16, 128], strides = [1, 1, 1]} : vector<10x24x128xbf16> to vector<8x16x128xbf16>
    %129 = vector.shape_cast %128 : vector<8x16x128xbf16> to vector<128x128xbf16>
    %c6_69 = arith.constant 6 : index
    %c0_70 = arith.constant 0 : index
    %c0_71 = arith.constant 0 : index
    %130 = vector.load %arg7[%c6_69, %c0_70, %c0_71] : memref<9x128x128xbf16, #tpu.memory_space<vmem>>, vector<1x128x128xbf16>
    %131 = vector.shape_cast %130 : vector<1x128x128xbf16> to vector<128x128xbf16>
    %cst_72 = arith.constant dense<0.000000e+00> : vector<128x128xf32>
    %132 = tpu.matmul %129, %131, %cst_72 {dimension_numbers = #tpu.dot_dimension_numbers<[1], [0], [0], [1], [0, 0, 1, 1], [], []>} : vector<128x128xbf16>, vector<128x128xbf16>, vector<128x128xf32> -> vector<128x128xf32>
    %133 = arith.addf %127, %132 : vector<128x128xf32>
    %134 = vector.extract_strided_slice %90 {offsets = [2, 1, 0], sizes = [8, 16, 128], strides = [1, 1, 1]} : vector<10x24x128xbf16> to vector<8x16x128xbf16>
    %135 = vector.shape_cast %134 : vector<8x16x128xbf16> to vector<128x128xbf16>
    %c7_73 = arith.constant 7 : index
    %c0_74 = arith.constant 0 : index
    %c0_75 = arith.constant 0 : index
    %136 = vector.load %arg7[%c7_73, %c0_74, %c0_75] : memref<9x128x128xbf16, #tpu.memory_space<vmem>>, vector<1x128x128xbf16>
    %137 = vector.shape_cast %136 : vector<1x128x128xbf16> to vector<128x128xbf16>
    %cst_76 = arith.constant dense<0.000000e+00> : vector<128x128xf32>
    %138 = tpu.matmul %135, %137, %cst_76 {dimension_numbers = #tpu.dot_dimension_numbers<[1], [0], [0], [1], [0, 0, 1, 1], [], []>} : vector<128x128xbf16>, vector<128x128xbf16>, vector<128x128xf32> -> vector<128x128xf32>
    %139 = arith.addf %133, %138 : vector<128x128xf32>
    %140 = vector.extract_strided_slice %90 {offsets = [2, 2, 0], sizes = [8, 16, 128], strides = [1, 1, 1]} : vector<10x24x128xbf16> to vector<8x16x128xbf16>
    %141 = vector.shape_cast %140 : vector<8x16x128xbf16> to vector<128x128xbf16>
    %c8_77 = arith.constant 8 : index
    %c0_78 = arith.constant 0 : index
    %c0_79 = arith.constant 0 : index
    %142 = vector.load %arg7[%c8_77, %c0_78, %c0_79] : memref<9x128x128xbf16, #tpu.memory_space<vmem>>, vector<1x128x128xbf16>
    %143 = vector.shape_cast %142 : vector<1x128x128xbf16> to vector<128x128xbf16>
    %cst_80 = arith.constant dense<0.000000e+00> : vector<128x128xf32>
    %144 = tpu.matmul %141, %143, %cst_80 {dimension_numbers = #tpu.dot_dimension_numbers<[1], [0], [0], [1], [0, 0, 1, 1], [], []>} : vector<128x128xbf16>, vector<128x128xbf16>, vector<128x128xf32> -> vector<128x128xf32>
    %145 = arith.addf %139, %144 : vector<128x128xf32>
    %146 = vector.extract_strided_slice %4 {offsets = [2, 2, 0], sizes = [8, 16, 128], strides = [1, 1, 1]} : vector<12x32x128xbf16> to vector<8x16x128xbf16>
    %147 = vector.shape_cast %146 : vector<8x16x128xbf16> to vector<128x128xbf16>
    %c0_81 = arith.constant 0 : index
    %c0_82 = arith.constant 0 : index
    %148 = vector.load %arg8[%c0_81, %c0_82] : memref<1x128xf32, #tpu.memory_space<vmem>>, vector<1x128xf32>
    %149 = vector.broadcast %148 : vector<1x128xf32> to vector<128x128xf32>
    %150 = arith.mulf %145, %149 : vector<128x128xf32>
    %c0_83 = arith.constant 0 : index
    %c0_84 = arith.constant 0 : index
    %151 = vector.load %arg9[%c0_83, %c0_84] : memref<1x128xf32, #tpu.memory_space<vmem>>, vector<1x128xf32>
    %152 = vector.broadcast %151 : vector<1x128xf32> to vector<128x128xf32>
    %153 = arith.addf %150, %152 : vector<128x128xf32>
    %154 = arith.extf %147 : vector<128x128xbf16> to vector<128x128xf32>
    %155 = arith.addf %153, %154 : vector<128x128xf32>
    %cst_85 = arith.constant 0.000000e+00 : f32
    %156 = vector.broadcast %cst_85 : f32 to vector<128x128xf32>
    %157 = arith.maximumf %155, %156 : vector<128x128xf32>
    %158 = vector.shape_cast %157 : vector<128x128xf32> to vector<1x8x16x128xf32>
    %c0_86 = arith.constant 0 : index
    %c0_87 = arith.constant 0 : index
    %c0_88 = arith.constant 0 : index
    %c0_89 = arith.constant 0 : index
    %159 = vector.load %arg10[%c0_86, %c0_87, %c0_88, %c0_89] : memref<1x8x16x128xf32, #tpu.memory_space<vmem>>, vector<1x8x16x128xf32>
    tpu.vector_store %arg10[%c0_86, %c0_87, %c0_88, %c0_89], %158 {strides = array<i32>} : memref<1x8x16x128xf32, #tpu.memory_space<vmem>>, vector<1x8x16x128xf32>,
    return
  }
  func.func @transform_0(%arg0: i32, %arg1: i32) -> (i32, i32, i32, i32) {
    %c0_i32 = arith.constant 0 : i32
    %c0_i32_0 = arith.constant 0 : i32
    %c0_i32_1 = arith.constant 0 : i32
    return %arg0, %arg1, %c0_i32, %c0_i32_0 : i32, i32, i32, i32
  }
  func.func @transform_1(%arg0: i32, %arg1: i32) -> (i32, i32, i32, i32) {
    %c1_i32 = arith.constant 1 : i32
    %0 = arith.addi %arg1, %c1_i32 : i32
    %c2_i32 = arith.constant 2 : i32
    %1 = arith.muli %0, %c2_i32 : i32
    %c0_i32 = arith.constant 0 : i32
    %c0_i32_0 = arith.constant 0 : i32
    %c0_i32_1 = arith.constant 0 : i32
    return %arg0, %1, %c0_i32, %c0_i32_0 : i32, i32, i32, i32
  }
  func.func @transform_2(%arg0: i32, %arg1: i32) -> (i32, i32, i32) {
    %c0_i32 = arith.constant 0 : i32
    %c0_i32_0 = arith.constant 0 : i32
    %c0_i32_1 = arith.constant 0 : i32
    %c0_i32_2 = arith.constant 0 : i32
    return %c0_i32, %c0_i32_0, %c0_i32_1 : i32, i32, i32
  }
  func.func @transform_3(%arg0: i32, %arg1: i32) -> (i32, i32) {
    %c0_i32 = arith.constant 0 : i32
    %c0_i32_0 = arith.constant 0 : i32
    %c0_i32_1 = arith.constant 0 : i32
    return %c0_i32, %c0_i32_0 : i32, i32
  }
  func.func @transform_4(%arg0: i32, %arg1: i32) -> (i32, i32) {
    %c0_i32 = arith.constant 0 : i32
    %c0_i32_0 = arith.constant 0 : i32
    %c0_i32_1 = arith.constant 0 : i32
    return %c0_i32, %c0_i32_0 : i32, i32
  }
  func.func @transform_5(%arg0: i32, %arg1: i32) -> (i32, i32, i32) {
    %c0_i32 = arith.constant 0 : i32
    %c0_i32_0 = arith.constant 0 : i32
    %c0_i32_1 = arith.constant 0 : i32
    %c0_i32_2 = arith.constant 0 : i32
    return %c0_i32, %c0_i32_0, %c0_i32_1 : i32, i32, i32
  }
  func.func @transform_6(%arg0: i32, %arg1: i32) -> (i32, i32) {
    %c0_i32 = arith.constant 0 : i32
    %c0_i32_0 = arith.constant 0 : i32
    %c0_i32_1 = arith.constant 0 : i32
    return %c0_i32, %c0_i32_0 : i32, i32
  }
  func.func @transform_7(%arg0: i32, %arg1: i32) -> (i32, i32) {
    %c0_i32 = arith.constant 0 : i32
    %c0_i32_0 = arith.constant 0 : i32
    %c0_i32_1 = arith.constant 0 : i32
    return %c0_i32, %c0_i32_0 : i32, i32
  }
  func.func @transform_8(%arg0: i32, %arg1: i32) -> (i32, i32, i32, i32) {
    %c0_i32 = arith.constant 0 : i32
    %c0_i32_0 = arith.constant 0 : i32
    %c0_i32_1 = arith.constant 0 : i32
    return %arg0, %arg1, %c0_i32, %c0_i32_0 : i32, i32, i32, i32
  }
}

</mosaic_0001>

<bundles_post_ra>
// kernel: basic_block_forward.1
= control target key start
LH: loop header
LB: loop body
LE: loop exit
PB: predicated region body
PF: predicated region fallthrough
CT: control target
= control target key end

     0   :  { %13 = vsyncpa [#allocation3], 0  ;;  %s11383_s0 = inlined_call_operand.vmem [shape: bf16[2,20,32,128], index: 0, kind: input, shape index: {}, may-alias: {0,1}]   ;;  %s11384_s1 = inlined_call_operand.vmem [shape: bf16[2,20,32,128], index: 1, kind: input, shape index: {}, may-alias: {0,1}]   ;;  %s11385_s2 = inlined_call_operand.vmem [shape: bf16[9,128,128], index: 2, kind: input, shape index: {}]   ;;  %s11386_s3 = inlined_call_operand.vmem [shape: f32[1,128], index: 3, kind: input, shape index: {}]   ;;  %s11387_s4 = inlined_call_operand.vmem [shape: f32[1,128], index: 4, kind: input, shape index: {}]   ;;  %s11388_s5 = inlined_call_operand.vmem [shape: bf16[9,128,128], index: 5, kind: input, shape index: {}]   ;;  %s11389_s6 = inlined_call_operand.vmem [shape: f32[1,128], index: 6, kind: input, shape index: {}]   ;;  %s11390_s7 = inlined_call_operand.vmem [shape: f32[1,128], index: 7, kind: input, shape index: {}]   ;;  %s11391_s8 = inlined_call_operand.hbm [shape: f32[2,16,16,128], index: 8, kind: output, shape index: {}]  }
   0x1   :  { %15 = vsyncpa [#allocation3 + $0x1], 0  ;;  %s8177_s27 = smov 0   ;;  %s8179_s28 = smov 0  }
   0x2   :  { %s8181_s29 = smov 0   ;;  %s8183_s30 = smov 0  }
   0x3   :  { %s8185_s9 = smov 0   ;;  %s8187_s10 = smov 0  }
   0x4   :  { %s8189_s11 = smov 0   ;;  %s8191_s12 = smov 0  }
   0x5 LB: > { %11508 = sst [smem:[#allocation5_spill]] %s8117_s10  ;;  %s5803_s13 = sadd.s32 4294967295, %s8125_s12   ;;  %s8125_s12 = sphi %s8191_s12, %s21_s12   ;;  %s8121_s11 = sphi %s8189_s11, %s11866_s11   ;;  %s8117_s10 = sphi %s8187_s10, %s11865_s10   ;;  %s8113_s9 = sphi %s8185_s9, %s11864_s9   ;;  %s8109_s30 = sphi %s8183_s30, %s11863_s30   ;;  %s8105_s29 = sphi %s8181_s29, %s11869_s29   ;;  %s8101_s28 = sphi %s8179_s28, %s11868_s28   ;;  %s8097_s27 = sphi %s8177_s27, %s11867_s27  }
   0x6   : > { %11509 = sst [smem:[#allocation6_spill]] %s8121_s11  ;;  %s5804_s14 = sadd.s32 4294967294, %s8125_s12  }
   0x7   : > { %s30_s15 = sadd.s32 1, %s8117_s10  ;;  %s33_s16 = sadd.s32 1, %s8121_s11 }
   0x8   : > { %p31_p0 = scmp.ge.s32.totalorder %s30_s15, 2  ;;  %p238_p1 = scmp.ne.s32.totalorder %s8105_s29, %s8101_s28 }
   0x9   : > { %p239_p2 = scmp.eq.s32.totalorder %s5803_s13, 3  ;;  %p244_p5 = scmp.ne.s32.totalorder %s8101_s28, %s8097_s27 }
   0xa   : > { %s11871_s15 = smov (%p31_p0, %s30_s15), 0  ;;  %s11873_s16 = smov (!%p31_p0, %s33_s16), %s8121_s11 }
   0xb   : > { %11510 = sst [smem:[#allocation7_spill]] %s11871_s15  ;;  %s224_s17 = ssub.s32 %s8117_s10, %s11871_s15 }
   0xc   : > { %p8228_p3 = por %p239_p2, %p238_p1  ;;  %p35_p4 = scmp.ge.s32.totalorder %s11873_s16, 2 }
   0xd   : > { %p245_p6 = scmp.eq.s32.totalorder %s5804_s14, 3  ;;  %p5809_p7 = scmp.ge.s32.totalorder %s8125_s12, 1 }
   0xe   : > { %s11875_s16 = smov (%p35_p4, %s11873_s16), 0  ;;  %p323_p9 = scmp.lt.s32.totalorder %s8125_s12, 5 }
   0xf   : > { %11512 = sst [smem:[#allocation8_spill]] %s11875_s16  ;;  %p8237_p8 = por %p245_p6, %p244_p5 }
  0x10   : > { %s223_s20 = ssub.s32 %s8121_s11, %s11875_s16  ;;  %s228_s21 = sadd.s32 1, %s8105_s29 }
  0x11   : > { %s225_s22 = sor.u32 %s224_s17, %s223_s20  ;;  %p324_p10 = pnand %p5809_p7, %p323_p9 }
  0x12   : > { %p226_p11 = scmp.eq.s32.totalorder %s225_s22, 0 }
  0x13   : > { %327 = sbr.rel (%p324_p10) target bundleno = 1229 (0x4cd), region = 52 }
  0x14   : > { %s8246_s23 = scalar_select %p226_p11, %s8105_s29, %s228_s21  }
  0x18   : > { %v7842_v0 = vld [vmem:[%s11385_s2 + $0x78] sm:$0xff]   ;;  %v11396_v1 = vmov 0.0   ;;  %v7844_v3 = vld [vmem:[%s11385_s2 + $0x70] sm:$0xff]   ;;  %vm8128_vm0 = vmmov 0   ;;  %s8262_s20 = sshll.u32 %s8109_s30, 3  ;;  %p385_p12 = scmp.lt.s32.totalorder %s8113_s9, 1 }
  0x19   : > { %6778 = vmatprep.subr.bf16.mxu0 %v11396_v1  ;;  %6854 = vmatprep.subr.bf16.mxu1 %v11396_v1  ;;  %v7843_v2 = vld [vmem:[%s11385_s2 + $0x38] sm:$0xff]   ;;  %v7845_v4 = vld [vmem:[%s11385_s2 + $0x30] sm:$0xff]   ;;  %p387_p13 = scmp.lt.s32.totalorder %s8262_s20, 19  ;;  %v7846_v5 = vld [vmem:[%s11385_s2 + $0x68] sm:$0xff]   ;;  %vm481_vm1 = vsmask.f32 3328 }
  0x1a   : > { %6779 = vmatpush3.bf16.msra.mxu0 %v7842_v0  ;;  %6794 = vmatprep.mubr.msk.bf16.mxu0 %vm8128_vm0, %v11396_v1  ;;  %s8274_s24 = scalar_select %p385_p12, %s8113_s9, 1  ;;  %v7847_v6 = vld [vmem:[%s11385_s2 + $0x28] sm:$0xff]   ;;  %v7848_v7 = vld [vmem:[%s11385_s2 + $0x60] sm:$0xff]   ;;  %v7850_v9 = vld [vmem:[%s11385_s2 + $0x58] sm:$0xff]   ;;  %vm482_vm2 = vsmask.f32 7440 }
  0x1b   : > { %6855 = vmatpush3.bf16.msra.mxu1 %v7843_v2  ;;  %6780 = vmatprep.subr.bf16.mxu0 %v11396_v1  ;;  %s388_s13 = scalar_select %p387_p13, %s8262_s20, 19  ;;  %v7849_v8 = vld [vmem:[%s11385_s2 + $0x20] sm:$0xff]   ;;  %v7851_v10 = vld [vmem:[%s11385_s2 + $0x18] sm:$0xff]   ;;  %v7852_v11 = vld [vmem:[%s11385_s2 + $0x50] sm:$0xff]   ;;  %v11514_v36 = vmov 0  ;;  %vm1403_vm4 = vcmask 1042432  }
  0x1c   : > { %6856 = vmatprep.subr.bf16.mxu1 %v11396_v1  ;;  %6870 = vmatprep.mubr.msk.bf16.mxu1 %vm8128_vm0, %v11396_v1  ;;  %s7766_s21 = smul.u32 80, %s8274_s24  ;;  %v7853_v17 = vld [vmem:[%s11385_s2 + $0x10] sm:$0xff]   ;;  %v7854_v24 = vld [vmem:[%s11385_s2 + $0x48] sm:$0xff]   ;;  %vm8349_vm3 = vmor %vm481_vm1, %vm482_vm2  ;;  %s6426_s26 = sadd.s32 8, %s8262_s20  ;;  %vm1404_vm5 = vcmask 1046532   ;;  %vm11495_vm1 = vcmask 1046528  }
  0x1d   : > { %s5812_s22 = sshll.u32 %s388_s13, 2  ;;  %v7855_v30 = vld [vmem:[%s11385_s2 + $0x8] sm:$0xff]   ;;  %v11515_v36 = vsel %vm8349_vm3, 4294967295, %v11514_v36  ;;  %v7856_v50 = vld [vmem:[%s11385_s2 + $0x40] sm:$0xff]   ;;  %p8478_p0 = scmp.lt.s32.totalorder %s6426_s26, 19  ;;  %vm8857_vm6 = vmor %vm1403_vm4, %vm1404_vm5 }
  0x1e   : > { %6781 = vmatpush3.bf16.msra.mxu0 %v7844_v3  ;;  %s391_s16 = sadd.s32 %s7766_s21, %s5812_s22  ;;  %11516 = vst [vmem:[#allocation9_spill] sm:$0xff] %v11515_v36  ;;  %v7857_v55 = vld [vmem:[%s11385_s2] sm:$0xff]   ;;  %s376_s15 = sand.u32 1, %s8101_s28  }
  0x1f   : > { %6857 = vmatpush3.bf16.msra.mxu1 %v7845_v4  ;;  %6782 = vmatprep.subr.bf16.mxu0 %v11396_v1  ;;  %s5813_s25 = sshll.u32 %s391_s16, 2  ;;  %s11877_s26 = smov (!%p8478_p0, %s6426_s26), 19 }
  0x20   : > { %6858 = vmatprep.subr.bf16.mxu1 %v11396_v1  ;;  %s8299_s13 = scalar_lea.vmem %s11383_s0, %s5813_s25  ;;  %s5816_s16 = sshll.u32 %s11877_s26, 2 }
  0x21   : > { %v8313_v12 = vld [vmem:[%s8299_s13] sm:$0xf]  ;;  %v8316_v13 = vld [vmem:[%s8299_s13 + $0x4] sm:$0xf]  ;;  %v8319_v14 = vld [vmem:[%s8299_s13 + $0x8] sm:$0xf]  ;;  %s8598_s25 = sadd.s32 %s7766_s21, %s5816_s16 }
  0x22   : > { %6783 = vmatpush3.bf16.msra.mxu0 %v7846_v5  ;;  %v485_v15 = vshrl.u32 %v8313_v12, 16  ;;  %v488_v16 = vshll.u32 %v8313_v12, 16  ;;  %v494_v18 = vshll.u32 %v8316_v13, 16  ;;  %v498_v19 = vshrl.u32 %v8316_v13, 16  ;;  %v420_v23 = vld [vmem:[%s8299_s13 + $0xc] sm:$0xf] }
  0x23   : > { %6859 = vmatpush3.bf16.msra.mxu1 %v7847_v6  ;;  %6784 = vmatprep.subr.bf16.mxu0 %v11396_v1  ;;  %v504_v20 = vshll.u32 %v8319_v14, 16  ;;  %v8336_v28 = vld [vmem:[%s8299_s13 + $0x10] sm:$0xf]  ;;  %v508_v29 = vshrl.u32 %v8319_v14, 16  ;;  %v8343_v32 = vld [vmem:[%s8299_s13 + $0x14] sm:$0xf]  ;;  %v5857_v2 = vcombine.low %v8313_v12, %v8316_v13 }
  0x24   : > { %6860 = vmatprep.subr.bf16.mxu1 %v11396_v1  ;;  %v487_v21 = vrot.slane %v485_v15, 4  ;;  %v490_v22 = vrot.slane %v488_v16, 5  ;;  %v496_v25 = vrot.slane %v494_v18, 5  ;;  %v500_v26 = vrot.slane %v498_v19, 4  ;;  %v8355_v40 = vld [vmem:[%s8299_s13 + $0x18] sm:$0xf] }
  0x25   : > { %v506_v27 = vrot.slane %v504_v20, 5  ;;  %v514_v33 = vshll.u32 %v420_v23, 16  ;;  %v519_v34 = vshrl.u32 %v8336_v28, 16  ;;  %v522_v35 = vshll.u32 %v8336_v28, 16  ;;  %v424_v41 = vld [vmem:[%s8299_s13 + $0x1c] sm:$0xf] }
  0x26   : > { %6785 = vmatpush3.bf16.msra.mxu0 %v7848_v7  ;;  %v491_v31 = vor.u32 %v490_v22, %v487_v21  ;;  %v501_v37 = vor.u32 %v500_v26, %v496_v25  ;;  %v510_v38 = vrot.slane %v508_v29, 4  ;;  %v528_v39 = vshll.u32 %v8343_v32, 16  ;;  %v8376_v60 = vld [vmem:[%s8299_s13 + $0x20] sm:$0xf]  ;;  %v8380_v63 = vld [vmem:[%s8299_s13 + $0x24] sm:$0xf] }
  0x27   : > { %6861 = vmatpush3.bf16.msra.mxu1 %v7849_v8  ;;  %6786 = vmatprep.subr.bf16.mxu0 %v11396_v1  ;;  %v8359_v43 = vrot.slane %v514_v33, 5  ;;  %v521_v44 = vrot.slane %v519_v34, 4  ;;  %v524_v45 = vrot.slane %v522_v35, 5  ;;  %v532_v49 = vshrl.u32 %v8343_v32, 16  ;;  %v8386_v5 = vld [vmem:[%s8299_s13 + $0x28] sm:$0xf] }
  0x28   : > { %6862 = vmatprep.subr.bf16.mxu1 %v11396_v1  ;;  %v492_v42 = vrot.slane %v491_v31, 4  ;;  %v502_v46 = vrot.slane %v501_v37, 4  ;;  %v511_v47 = vor.u32 %v510_v38, %v506_v27  ;;  %v530_v48 = vrot.slane %v528_v39, 5  ;;  %v7859_v6 = vld [vmem:[%s11385_s2 + $0xb8] sm:$0xff]   ;;  %v8399_v16 = vld [vmem:[%s8299_s13 + $0x2c] sm:$0xf] }
  0x29   : > { %v525_v52 = vor.u32 %v524_v45, %v521_v44  ;;  %v538_v53 = vshll.u32 %v8355_v40, 16  ;;  %v542_v54 = vshrl.u32 %v8355_v40, 16  ;;  %v534_v58 = vrot.slane %v532_v49, 4  ;;  %v8404_v21 = vld [vmem:[%s8299_s13 + $0x30] sm:$0xf]  ;;  %s5817_s11 = sshll.u32 %s8598_s25, 2 }
  0x2a   : > { %6787 = vmatpush3.bf16.msra.mxu0 %v7850_v9  ;;  %v497_v51 = vsel %vm8349_vm3, %v492_v42, %v496_v25  ;;  %v507_v56 = vsel %vm8349_vm3, %v502_v46, %v506_v27  ;;  %v512_v57 = vrot.slane %v511_v47, 4  ;;  %v548_v59 = vshll.u32 %v424_v41, 16  ;;  %v8418_v29 = vld [vmem:[%s8299_s13 + $0x34] sm:$0xf]  ;;  %v8438_v42 = vld [vmem:[%s8299_s13 + $0x38] sm:$0xf]  ;;  %s8669_s17 = scalar_lea.vmem %s11384_s1, %s5817_s11 }
  0x2b   : > { %6863 = vmatpush3.bf16.msra.mxu1 %v7851_v10  ;;  %6788 = vmatprep.subr.bf16.mxu0 %v11396_v1  ;;  %v540_v61 = vrot.slane %v538_v53, 5  ;;  %v544_v62 = vrot.slane %v542_v54, 4  ;;  %v5834_v0 = vcombine.low %v497_v51, %v507_v56  ;;  %v526_v3 = vrot.slane %v525_v52, 4  ;;  %v7862_v33 = vld [vmem:[%s11385_s2 + $0xb0] sm:$0xff]   ;;  %v8447_v47 = vld [vmem:[%s8299_s13 + $0x3c] sm:$0xf] }
  0x2c   : > { %6864 = vmatprep.subr.bf16.mxu1 %v11396_v1  ;;  %v535_v4 = vor.u32 %v534_v58, %v530_v48  ;;  %v517_v7 = vsel %vm8349_vm3, %v512_v57, %v8359_v43  ;;  %v553_v9 = vshrl.u32 %v8376_v60, 16  ;;  %v556_v10 = vshll.u32 %v8376_v60, 16  ;;  %v8462_v57 = vld [vmem:[%s8299_s13 + $0x40] sm:$0xf]  ;;  %v8024_v36 = vld [vmem:[%s8299_s13 + $0x14] sm:$0xf] }
  0x2d   : > { %v545_v8 = vor.u32 %v544_v62, %v540_v61  ;;  %v550_v12 = vrot.slane %v548_v59, 5  ;;  %v562_v13 = vshll.u32 %v8380_v63, 16  ;;  %v566_v15 = vshrl.u32 %v8380_v63, 16  ;;  %v7864_v59 = vld [vmem:[%s11385_s2 + $0xa8] sm:$0xff]   ;;  %s5810_s16 = sshll.u32 %s376_s15, 7  ;;  %s6424_s22 = sshll.u32 %s8109_s30, 4 }
  0x2e   : > { %6789 = vmatpush3.bf16.msra.mxu0 %v7852_v11  ;;  %v536_v11 = vrot.slane %v535_v4, 4  ;;  %v555_v18 = vrot.slane %v553_v9, 4  ;;  %v558_v19 = vrot.slane %v556_v10, 5  ;;  %v572_v20 = vshll.u32 %v8386_v5, 16  ;;  %s11229_s26 = scalar_lea.vmem [#allocation2], %s5810_s16  ;;  %s6413_s14 = sshll.u32 %s8113_s9, 5 }
  0x2f   : > { %6865 = vmatpush3.bf16.msra.mxu1 %v7853_v17  ;;  %6790 = vmatprep.subr.bf16.mxu0 %v11396_v1  ;;  %v546_v17 = vrot.slane %v545_v8, 4  ;;  %v8408_v22 = vsel %vm8349_vm3, %v526_v3, %v530_v48  ;;  %v568_v25 = vrot.slane %v566_v15, 4  ;;  %v5858_v31 = vcombine.low %v8319_v14, %v8336_v28  ;;  %v7878_v48 = vld [vmem:[%s11385_s2 + $0xf0] sm:$0xff]   ;;  %v7880_v8 = vld [vmem:[%s11385_s2 + $0xe8] sm:$0xff]   ;;  %s5697_s9 = sshll.u32 %s11229_s26, 4  ;;  %s11332_s25 = scalar_lea.sflag [#allocation3], %s376_s15  ;;  %s11326_s9 = int_to_ptr.vmem [resolvable:$true] %s5697_s9 }
  0x30   : > { %6866 = vmatprep.subr.bf16.mxu1 %v11396_v1  ;;  %11517 = vst [vmem:[#allocation10_spill] sm:$0xff] %v8408_v22  ;;  %v8412_v23 = vsel %vm8349_vm3, %v536_v11, %v540_v61  ;;  %v559_v27 = vor.u32 %v558_v19, %v555_v18  ;;  %v576_v35 = vshrl.u32 %v8386_v5, 16  ;;  %v582_v37 = vshll.u32 %v8399_v16, 16  ;;  %s8033_s11 = scalar_lea.vmem %s11326_s9, 2048  ;;  %s8129_s10 = smov [#allocation2]  }
  0x31   : > { %11518 = vst [vmem:[#allocation11_spill] sm:$0xff] %v8412_v23  ;;  %v5835_v38 = vcombine.low %v517_v7, %v8408_v22  ;;  %v587_v14 = vshrl.u32 %v8404_v21, 16  ;;  %v590_v41 = vshll.u32 %v8404_v21, 16  ;;  %v8443_v43 = vsel %vm8349_vm3, %v546_v17, %v550_v12  ;;  %v8486_v12 = vld [vmem:[%s8299_s13 + $0x48] sm:$0xf]  ;;  %p8034_p1 = scmp.ne.s32.totalorder %s11326_s9, %s8033_s11 }
  0x32   : > { %6791 = vmatpush3.bf16.msra.mxu0 %v7854_v24  ;;  %v564_v24 = vrot.slane %v562_v13, 5  ;;  %v560_v39 = vrot.slane %v559_v27, 4  ;;  %11519 = vst [vmem:[#allocation12_spill] sm:$0xff] %v8443_v43  ;;  %v574_v44 = vrot.slane %v572_v20, 5  ;;  %v578_v45 = vrot.slane %v576_v35, 4  ;;  %v7867_v27 = vld [vmem:[%s11385_s2 + $0xa0] sm:$0xff]  }
  0x33   : > { %6867 = vmatpush3.bf16.msra.mxu1 %v7855_v30  ;;  %6792 = vmatprep.subr.bf16.mxu0 %v11396_v1  ;;  %v7877_v30 = vld [vmem:[%s11385_s2 + $0xf8] sm:$0xff]   ;;  %v596_v46 = vshll.u32 %v8418_v29, 16  ;;  %v589_v51 = vrot.slane %v587_v14, 4  ;;  %v592_v52 = vrot.slane %v590_v41, 5  ;;  %v600_v56 = vshrl.u32 %v8418_v29, 16  ;;  %p8035_p2 = pnand %p8034_p1, %p8228_p3 }
  0x34   : > { %6868 = vmatprep.subr.bf16.mxu1 %v11396_v1  ;;  %v569_v34 = vor.u32 %v568_v25, %v564_v24  ;;  %v8454_v49 = vsel %vm8349_vm3, %v560_v39, %v564_v24  ;;  %v579_v54 = vor.u32 %v578_v45, %v574_v44  ;;  %v5859_v58 = vcombine.low %v8343_v32, %v8355_v40  ;;  %v8531_v45 = vld [vmem:[%s8299_s13 + $0x50] sm:$0xf] }
  0x35   : > { %11520 = vst [vmem:[#allocation13_spill] sm:$0xff] %v8454_v49  ;;  %v593_v61 = vor.u32 %v592_v52, %v589_v51  ;;  %v606_v62 = vshll.u32 %v8438_v42, 16  ;;  %v598_v4 = vrot.slane %v596_v46, 5  ;;  %v616_v7 = vshll.u32 %v8447_v47, 16  ;;  %v7870_v46 = vld [vmem:[%s11385_s2 + $0x98] sm:$0xff]   ;;  %p8036_p4 = pneg %p8035_p2 }
  0x36   : > { %6793 = vmatpush3.bf16.msra.mxu0 %v7856_v50  ;;  %v570_v50 = vrot.slane %v569_v34, 4  ;;  %v580_v3 = vrot.slane %v579_v54, 4  ;;  %v621_v13 = vshrl.u32 %v8462_v57, 16  ;;  %v624_v19 = vshll.u32 %v8462_v57, 16  ;;  %v8542_v52 = vld [vmem:[%s8299_s13 + $0x54] sm:$0xf] }
  0x37   : > { %6869 = vmatpush3.bf16.msra.mxu1 %v7857_v55  ;;  %6930 = vmatprep.subr.bf16.mxu0 %v11396_v1  ;;  %v584_v55 = vrot.slane %v582_v37, 5  ;;  %v594_v9 = vrot.slane %v593_v61, 4  ;;  %v608_v10 = vrot.slane %v606_v62, 5  ;;  %v5836_v20 = vcombine.low %v8412_v23, %v8443_v43  ;;  %v8552_v61 = vld [vmem:[%s8299_s13 + $0x58] sm:$0xf] }
  0x38   : > { %7006 = vmatprep.subr.bf16.mxu1 %v11396_v1  ;;  %v8494_v15 = vsel %vm8349_vm3, %v570_v50, %v574_v44  ;;  %v618_v34 = vrot.slane %v616_v7, 5  ;;  %v626_v35 = vrot.slane %v624_v19, 5  ;;  %v640_v44 = vshll.u32 %v8486_v12, 16  ;;  %v7884_v62 = vld [vmem:[%s11385_s2 + $0xd8] sm:$0xff]   ;;  %v8762_v23 = vld [vmem:[%s8669_s17 + $0x14] sm:$0xf] }
  0x39   : > { %6795 = vmatmul.mubr.bf16.vlgmr.msra.gmra.mxu0 %v5834_v0  ;;  %v610_v0 = vshrl.u32 %v8438_v42, 16  ;;  %11522 = vst [vmem:[#allocation14_spill] sm:$0xff] %v8494_v15  ;;  %v8498_v17 = vsel %vm8349_vm3, %v580_v3, %v584_v55  ;;  %v8526_v39 = vsel %vm8349_vm3, %v594_v9, %v598_v4  ;;  %v644_v54 = vshrl.u32 %v8486_v12, 16  ;;  %v8578_v19 = vld [vmem:[%s8299_s13 + $0x5c] sm:$0xf] }
  0x3a   : > { %6871 = vmatmul.mubr.bf16.vlgmr.msra.gmra.mxu1 %v5857_v2  ;;  %6931 = vmatpush3.bf16.msra.mxu0 %v7859_v6  ;;  %v8473_v2 = vld [vmem:[%s8299_s13 + $0x44] sm:$0xf]  ;;  %v602_v6 = vrot.slane %v600_v56, 4  ;;  %11523 = vst [vmem:[#allocation15_spill] sm:$0xff] %v8498_v17  ;;  %11524 = vst [vmem:[#allocation16_spill] sm:$0xff] %v8526_v39  ;;  %v8547_v55 = vcombine.low %v8376_v60, %v8380_v63  ;;  %v642_v3 = vrot.slane %v640_v44, 5 }
  0x3b   : > { %6798 = vmatprep.mubr.msk.bf16.mxu0 %vm8128_vm0, %v11396_v1  ;;  %6874 = vmatprep.mubr.msk.bf16.mxu1 %vm8128_vm0, %v11396_v1  ;;  %v612_v11 = vrot.slane %v610_v0, 4  ;;  %v630_v37 = vshll.u32 %v8473_v2, 16  ;;  %v634_v41 = vshrl.u32 %v8473_v2, 16  ;;  %v655_v7 = vshrl.u32 %v8531_v45, 16 }
  0x3c   : > { %6932 = vmatprep.subr.bf16.mxu0 %v11396_v1  ;;  %7007 = vmatpush3.bf16.msra.mxu1 %v7877_v30  ;;  %v603_v18 = vor.u32 %v602_v6, %v598_v4  ;;  %v623_v30 = vrot.slane %v621_v13, 4  ;;  %11526 = vst [vmem:[#allocation18_spill] sm:$0xff] %v8547_v55  ;;  %v646_v4 = vrot.slane %v644_v54, 4  ;;  %v664_v9 = vshll.u32 %v8542_v52, 16 }
  0x3d   : > { %7008 = vmatprep.subr.bf16.mxu1 %v11396_v1  ;;  %v613_v25 = vor.u32 %v612_v11, %v608_v10  ;;  %v632_v51 = vrot.slane %v630_v37, 5  ;;  %v668_v37 = vshrl.u32 %v8542_v52, 16  ;;  %v8605_v44 = vcombine.low %v8454_v49, %v8494_v15  ;;  %v8753_v49 = vld [vmem:[%s8669_s17 + $0x10] sm:$0xf] }
  0x3e   : > { %6933 = vmatpush3.bf16.msra.mxu0 %v7862_v33  ;;  %v604_v33 = vrot.slane %v603_v18, 4  ;;  %v627_v50 = vor.u32 %v626_v35, %v623_v30  ;;  %v647_v13 = vor.u32 %v646_v4, %v642_v3  ;;  %v8585_v30 = vld [vmem:[%s8299_s13 + $0x60] sm:$0xf]  ;;  %v666_v35 = vrot.slane %v664_v9, 5 }
  0x3f   : > { %6934 = vmatprep.subr.bf16.mxu0 %v11396_v1  ;;  %v614_v14 = vrot.slane %v613_v25, 4  ;;  %v657_v25 = vrot.slane %v655_v7, 4  ;;  %11529 = vst [vmem:[#allocation21_spill] sm:$0xff] %v8605_v44  ;;  %v689_v9 = vshrl.u32 %v8585_v30, 16 }
  0x40   : > { %7009 = vmatpush3.bf16.msra.mxu1 %v7878_v48  ;;  %v8539_v48 = vsel %vm8349_vm3, %v604_v33, %v608_v10  ;;  %v628_v0 = vrot.slane %v627_v50, 4  ;;  %v7873_v33 = vld [vmem:[%s11385_s2 + $0x90] sm:$0xff]   ;;  %v678_v50 = vshrl.u32 %v8552_v61, 16 }
  0x41   : > { %6799 = vmatmul.mubr.bf16.gmra.mxu0 %v5835_v38  ;;  %7010 = vmatprep.subr.bf16.mxu1 %v11396_v1  ;;  %v7881_v38 = vld [vmem:[%s11385_s2 + $0xe0] sm:$0xff]   ;;  %11525 = vst [vmem:[#allocation17_spill] sm:$0xff] %v8539_v48  ;;  %v8571_v10 = vsel %vm8349_vm3, %v614_v14, %v618_v34  ;;  %v648_v34 = vrot.slane %v647_v13, 4  ;;  %v692_v13 = vshll.u32 %v8585_v30, 16 }
  0x42   : > { %6875 = vmatmul.mubr.bf16.gmra.mxu1 %v5858_v31  ;;  %6802 = vmatprep.mubr.msk.bf16.mxu0 %vm8128_vm0, %v11396_v1  ;;  %v8511_v31 = vld [vmem:[%s8299_s13 + $0x4c] sm:$0xf]  ;;  %11527 = vst [vmem:[#allocation19_spill] sm:$0xff] %v8571_v10  ;;  %v8575_v11 = vsel %vm8349_vm3, %v628_v0, %v632_v51  ;;  %v8593_v14 = vld [vmem:[%s8299_s13 + $0x64] sm:$0xf] }
  0x43   : > { %6878 = vmatprep.mubr.msk.bf16.mxu1 %vm8128_vm0, %v11396_v1  ;;  %6935 = vmatpush3.bf16.msra.mxu0 %v7864_v59  ;;  %v636_v59 = vrot.slane %v634_v41, 4  ;;  %v650_v6 = vshll.u32 %v8511_v31, 16  ;;  %11528 = vst [vmem:[#allocation20_spill] sm:$0xff] %v8575_v11  ;;  %v7885_v41 = vld [vmem:[%s11385_s2 + $0xd0] sm:$0xff]  }
  0x44   : > { %6936 = vmatprep.subr.bf16.mxu0 %v11396_v1  ;;  %7011 = vmatpush3.bf16.msra.mxu1 %v7880_v8  ;;  %v658_v8 = vshll.u32 %v8531_v45, 16 }
  0x45   : > { %7012 = vmatprep.subr.bf16.mxu1 %v11396_v1  ;;  %v637_v60 = vor.u32 %v636_v59, %v632_v51  ;;  %v652_v18 = vrot.slane %v650_v6, 5  ;;  %v684_v51 = vshll.u32 %v8578_v19, 16  ;;  %v680_v6 = vrot.slane %v678_v50, 4  ;;  %v8647_v50 = vld [vmem:[%s8299_s13 + $0x70] sm:$0xf] }
  0x46   : > { %v723_v24 = vshrl.u32 %v8647_v50, 16  ;;  %v726_v53 = vshll.u32 %v8647_v50, 16 }
  0x47   : > { %6937 = vmatpush3.bf16.msra.mxu0 %v7867_v27  ;;  %v660_v27 = vrot.slane %v658_v8, 5  ;;  %v8616_v59 = vsel %vm8349_vm3, %v648_v34, %v652_v18  ;;  %v8625_v8 = vld [vmem:[%s8299_s13 + $0x68] sm:$0xf]  ;;  %v7883_v34 = vld [vmem:[%s11385_s2 + $0x80] sm:$0xff]  }
  0x48   : > { %6938 = vmatprep.subr.bf16.mxu0 %v11396_v1  ;;  %7013 = vmatpush3.bf16.msra.mxu1 %v7881_v38  ;;  %v674_v38 = vshll.u32 %v8552_v61, 16  ;;  %11531 = vst [vmem:[#allocation23_spill] sm:$0xff] %v8616_v59  ;;  %v7887_v18 = vld [vmem:[%s11385_s2 + $0xc8] sm:$0xff]   ;;  %v708_v56 = vshll.u32 %v8625_v8, 16 }
  0x49   : > { %6803 = vmatmul.mubr.bf16.gmra.mxu0 %v5836_v20  ;;  %7014 = vmatprep.subr.bf16.mxu1 %v11396_v1 }
  0x4a   : > { %6879 = vmatmul.mubr.bf16.gmra.mxu1 %v5859_v58  ;;  %6806 = vmatprep.mubr.msk.bf16.mxu0 %vm8128_vm0, %v11396_v1  ;;  %v638_v58 = vrot.slane %v637_v60, 4  ;;  %v676_v0 = vrot.slane %v674_v38, 5  ;;  %v7876_v60 = vld [vmem:[%s11385_s2 + $0x88] sm:$0xff]   ;;  %v686_v38 = vrot.slane %v684_v51, 5 }
  0x4b   : > { %6882 = vmatprep.mubr.msk.bf16.mxu1 %vm8128_vm0, %v11396_v1  ;;  %6939 = vmatpush3.bf16.msra.mxu0 %v7870_v46  ;;  %v661_v46 = vor.u32 %v660_v27, %v657_v25  ;;  %v698_v25 = vshll.u32 %v8593_v14, 16  ;;  %v702_v27 = vshrl.u32 %v8593_v14, 16 }
  0x4c   : > { %6940 = vmatprep.subr.bf16.mxu0 %v11396_v1  ;;  %7015 = vmatpush3.bf16.msra.mxu1 %v7884_v62  ;;  %v8612_v54 = vsel %vm8349_vm3, %v638_v58, %v642_v3  ;;  %v670_v62 = vrot.slane %v668_v37, 4  ;;  %v681_v58 = vor.u32 %v680_v6, %v676_v0 }
  0x4d   : > { %7016 = vmatprep.subr.bf16.mxu1 %v11396_v1  ;;  %11530 = vst [vmem:[#allocation22_spill] sm:$0xff] %v8612_v54  ;;  %v662_v7 = vrot.slane %v661_v46, 4  ;;  %v694_v46 = vrot.slane %v692_v13, 5  ;;  %v700_v4 = vrot.slane %v698_v25, 5  ;;  %v704_v20 = vrot.slane %v702_v27, 4 }
  0x4e   : > { %v671_v3 = vor.u32 %v670_v62, %v666_v35  ;;  %v8650_v62 = vld [vmem:[%s8299_s13 + $0x74] sm:$0xf]  ;;  %v682_v6 = vrot.slane %v681_v58, 4  ;;  %v712_v13 = vshrl.u32 %v8625_v8, 16  ;;  %v710_v25 = vrot.slane %v708_v56, 5 }
  0x4f   : > { %6941 = vmatpush3.bf16.msra.mxu0 %v7873_v33  ;;  %v8637_v33 = vld [vmem:[%s8299_s13 + $0x6c] sm:$0xf]  ;;  %v705_v58 = vor.u32 %v704_v20, %v700_v4  ;;  %v732_v20 = vshll.u32 %v8650_v62, 16 }
  0x50   : > { %6942 = vmatprep.subr.bf16.mxu0 %v11396_v1  ;;  %7017 = vmatpush3.bf16.msra.mxu1 %v7885_v41  ;;  %v672_v37 = vrot.slane %v671_v3, 4  ;;  %v691_v41 = vrot.slane %v689_v9, 4  ;;  %v8657_v3 = vsel %vm8349_vm3, %v662_v7, %v666_v35  ;;  %v7888_v35 = vld [vmem:[%s11385_s2 + $0xc0] sm:$0xff]   ;;  %v714_v27 = vrot.slane %v712_v13, 4 }
  0x51   : > { %6807 = vmatmul.mubr.bf16.gmra.mxu0 %v8605_v44  ;;  %7018 = vmatprep.subr.bf16.mxu1 %v11396_v1  ;;  %11532 = vst [vmem:[#allocation24_spill] sm:$0xff] %v8657_v3  ;;  %v8698_v7 = vld [vmem:[%s8669_s17] sm:$0xf]  ;;  %v728_v44 = vrot.slane %v726_v53, 5 }
  0x52   : > { %6883 = vmatmul.mubr.bf16.gmra.mxu1 %v8547_v55  ;;  %6810 = vmatprep.mubr.msk.bf16.mxu0 %vm8128_vm0, %v11396_v1  ;;  %v8661_v51 = vsel %vm8349_vm3, %v672_v37, %v676_v0  ;;  %v695_v9 = vor.u32 %v694_v46, %v691_v41  ;;  %v8677_v0 = vcombine.low %v8498_v17, %v8526_v39  ;;  %v718_v37 = vshll.u32 %v8637_v33, 16  ;;  %v8688_v41 = vld [vmem:[%s8299_s13 + $0x78] sm:$0xf] }
  0x53   : > { %6886 = vmatprep.mubr.msk.bf16.mxu1 %vm8128_vm0, %v11396_v1  ;;  %6943 = vmatpush3.bf16.msra.mxu0 %v7876_v60  ;;  %11533 = vst [vmem:[#allocation25_spill] sm:$0xff] %v8661_v51  ;;  %v8681_v60 = vcombine.low %v8386_v5, %v8404_v21  ;;  %v8692_v46 = vsel %vm8349_vm3, %v682_v6, %v686_v38  ;;  %v11538_v38 = vmov 0.0   ;;  %v746_v6 = vshrl.u32 %v8688_v41, 16 }
  0x54   : > { %6944 = vmatprep.subr.bf16.mxu0 %v11396_v1  ;;  %7019 = vmatpush3.bf16.msra.mxu1 %v7887_v18  ;;  %11534 = vst [vmem:[#allocation26_spill] sm:$0xff] %v8677_v0  ;;  %v696_v18 = vrot.slane %v695_v9, 4  ;;  %11536 = vst [vmem:[#allocation28_spill] sm:$0xff] %v8692_v46  ;;  %v706_v9 = vrot.slane %v705_v58, 4  ;;  %v715_v13 = vor.u32 %v714_v27, %v710_v25  ;;  %v720_v26 = vrot.slane %v718_v37, 5 }
  0x55   : > { %11535 = vst [vmem:[#allocation27_spill] sm:$0xff] %v8681_v60  ;;  %7020 = vmatprep.subr.bf16.mxu1 %v11396_v1  ;;  %v8705_v1 = vld [vmem:[%s8299_s13 + $0x7c] sm:$0xf]  ;;  %v734_v27 = vrot.slane %v732_v20, 5  ;;  %v742_v37 = vshll.u32 %v8688_v41, 16 }
  0x56   : > { %v8702_v56 = vsel %vm8349_vm3, %v696_v18, %v700_v4  ;;  %v8717_v4 = vcombine.low %v8539_v48, %v8571_v10  ;;  %v716_v58 = vrot.slane %v715_v13, 4  ;;  %v736_v18 = vshrl.u32 %v8650_v62, 16 }
  0x57   : > { %6945 = vmatpush3.bf16.msra.mxu0 %v7883_v34  ;;  %11537 = vst [vmem:[#allocation29_spill] sm:$0xff] %v8702_v56  ;;  %v725_v34 = vrot.slane %v723_v24, 4  ;;  %v8725_v24 = vld [vmem:[%s8669_s17 + $0x4] sm:$0xf]  ;;  %v748_v10 = vrot.slane %v746_v6, 4  ;;  %v752_v48 = vshll.u32 %v8705_v1, 16  ;;  %v8757_v6 = vcombine.low %v8462_v57, %v8473_v2 }
  0x58   : > { %7021 = vmatpush3.bf16.msra.mxu1 %v7888_v35  ;;  %7082 = vmatprep.subr.bf16.mxu0 %v11538_v38  ;;  %11539 = vst [vmem:[#allocation30_spill] sm:$0xff] %v8717_v4  ;;  %v8721_v35 = vcombine.low %v8418_v29, %v8438_v42  ;;  %v8740_v13 = vsel %vm8349_vm3, %v716_v58, %v720_v26  ;;  %v738_v55 = vrot.slane %v736_v18, 4  ;;  %v766_v58 = vshll.u32 %v8725_v24, 16 }
  0x59   : > { %6811 = vmatmul.mubr.bf16.gmra.mxu0 %v8677_v0  ;;  %7158 = vmatprep.subr.bf16.mxu1 %v11538_v38  ;;  %v729_v53 = vor.u32 %v728_v44, %v725_v34  ;;  %v8732_v0 = vld [vmem:[%s8669_s17 + $0x8] sm:$0xf]  ;;  %11542 = vst [vmem:[#allocation33_spill] sm:$0xff] %v8740_v13  ;;  %v757_v44 = vshrl.u32 %v8698_v7, 16  ;;  %v744_v34 = vrot.slane %v742_v37, 5  ;;  %v770_v18 = vshrl.u32 %v8725_v24, 16 }
  0x5a   : > { %6887 = vmatmul.mubr.bf16.gmra.mxu1 %v8681_v60  ;;  %6814 = vmatprep.mubr.msk.bf16.mxu0 %vm8128_vm0, %v11538_v38  ;;  %11540 = vst [vmem:[#allocation31_spill] sm:$0xff] %v8721_v35  ;;  %v8736_v60 = vsel %vm8349_vm3, %v706_v9, %v710_v25  ;;  %v739_v17 = vor.u32 %v738_v55, %v734_v27  ;;  %v760_v25 = vshll.u32 %v8698_v7, 16  ;;  %v8748_v9 = vld [vmem:[%s8669_s17 + $0xc] sm:$0xf]  ;;  %11544 = vst [vmem:[#allocation35_spill] sm:$0xff] %v8757_v6 }
  0x5b   : > { %6890 = vmatprep.mubr.msk.bf16.mxu1 %vm8128_vm0, %v11538_v38  ;;  %11541 = vst [vmem:[#allocation32_spill] sm:$0xff] %v8736_v60  ;;  %v730_v39 = vrot.slane %v729_v53, 4  ;;  %v759_v15 = vrot.slane %v757_v44, 4  ;;  %11543 = vst [vmem:[#allocation34_spill] sm:$0xff] %v8748_v9  ;;  %v749_v26 = vor.u32 %v748_v10, %v744_v34  ;;  %v776_v55 = vshll.u32 %v8732_v0, 16 }
  0x5c   : > { %v740_v37 = vrot.slane %v739_v17, 4  ;;  %v762_v53 = vrot.slane %v760_v25, 5  ;;  %v754_v20 = vrot.slane %v752_v48, 5  ;;  %v768_v43 = vrot.slane %v766_v58, 5 }
  0x5d   : > { %v750_v44 = vrot.slane %v749_v26, 4  ;;  %v772_v10 = vrot.slane %v770_v18, 4  ;;  %v8769_v22 = vsel %vm8349_vm3, %v730_v39, %v734_v27  ;;  %v780_v48 = vshrl.u32 %v8732_v0, 16 }
  0x5e   : > { %11545 = vst [vmem:[#allocation36_spill] sm:$0xff] %v8769_v22  ;;  %v8773_v17 = vsel %vm8349_vm3, %v740_v37, %v744_v34  ;;  %v763_v25 = vor.u32 %v762_v53, %v759_v15  ;;  %v8780_v26 = vcombine.low %v8575_v11, %v8612_v54  ;;  %v786_v27 = vshll.u32 %v8748_v9, 16  ;;  %v8792_v11 = vld [vmem:[%s8669_s17 + $0x18] sm:$0xf] }
  0x5f   : > { %11546 = vst [vmem:[#allocation37_spill] sm:$0xff] %v8773_v17  ;;  %v773_v39 = vor.u32 %v772_v10, %v768_v43  ;;  %v778_v34 = vrot.slane %v776_v55, 5  ;;  %v782_v37 = vrot.slane %v780_v48, 4  ;;  %v791_v15 = vshrl.u32 %v8753_v49, 16 }
  0x60   : > { %11547 = vst [vmem:[#allocation38_spill] sm:$0xff] %v8780_v26  ;;  %v764_v18 = vrot.slane %v763_v25, 4  ;;  %v8788_v53 = vsel %vm8349_vm3, %v750_v44, %v754_v20  ;;  %v794_v54 = vshll.u32 %v8753_v49, 16  ;;  %v800_v55 = vshll.u32 %v8762_v23, 16 }
  0x61   : > { %6815 = vmatmul.mubr.bf16.gmra.mxu0 %v8717_v4  ;;  %11548 = vst [vmem:[#allocation39_spill] sm:$0xff] %v8788_v53  ;;  %v774_v4 = vrot.slane %v773_v39, 4  ;;  %v783_v58 = vor.u32 %v782_v37, %v778_v34  ;;  %v793_v25 = vrot.slane %v791_v15, 4  ;;  %v804_v44 = vshrl.u32 %v8762_v23, 16 }
  0x62   : > { %6891 = vmatmul.mubr.bf16.gmra.mxu1 %v8721_v35  ;;  %6818 = vmatprep.mubr.msk.bf16.mxu0 %vm8128_vm0, %v11538_v38  ;;  %v788_v35 = vrot.slane %v786_v27, 5  ;;  %v8796_v10 = vsel %vm8349_vm3, %v764_v18, %v768_v43  ;;  %v796_v9 = vrot.slane %v794_v54, 5  ;;  %v802_v54 = vrot.slane %v800_v55, 5 }
  0x63   : > { %6894 = vmatprep.mubr.msk.bf16.mxu1 %vm8128_vm0, %v11538_v38  ;;  %11549 = vst [vmem:[#allocation40_spill] sm:$0xff] %v8796_v10  ;;  %v784_v20 = vrot.slane %v783_v58, 4  ;;  %v8805_v39 = vsel %vm8349_vm3, %v774_v4, %v778_v34  ;;  %v806_v58 = vrot.slane %v804_v44, 4  ;;  %v810_v18 = vshll.u32 %v8792_v11, 16 }
  0x64   : > { %11550 = vst [vmem:[#allocation41_spill] sm:$0xff] %v8805_v39  ;;  %v797_v27 = vor.u32 %v796_v9, %v793_v25  ;;  %v8821_v37 = vcombine.low %v8616_v59, %v8657_v3  ;;  %v11418_v44 = vrot.slane %v8380_v63, 5  ;;  %v814_v59 = vshrl.u32 %v8792_v11, 16 }
  0x65   : > { %v8812_v43 = vsel %vm8349_vm3, %v784_v20, %v788_v35  ;;  %v807_v34 = vor.u32 %v806_v58, %v802_v54  ;;  %v8825_v35 = vcombine.low %v8486_v12, %v8531_v45  ;;  %v8827_v25 = vrot.slane %v810_v18, 5 }
  0x66   : > { %v798_v9 = vrot.slane %v797_v27, 4  ;;  %11551 = vst [vmem:[#allocation42_spill] sm:$0xff] %v8821_v37  ;;  %v5881_v27 = vrot.slane %v8336_v28, 9  ;;  %v8850_v58 = vcombine.low %v8661_v51, %v8692_v46  ;;  %v8854_v18 = vcombine.low %v8542_v52, %v8552_v61 }
  0x67   : > { %11552 = vst [vmem:[#allocation43_spill] sm:$0xff] %v8825_v35  ;;  %v808_v15 = vrot.slane %v807_v34, 4  ;;  %v11419_v34 = vrot.slane %v8355_v40, 5  ;;  %v1431_v28 = vrot.slane %v8386_v5, 5  ;;  %v1444_v5 = vrot.slane %v8447_v47, 5 }
  0x68   : > { %v8831_v55 = vsel %vm8349_vm3, %v798_v9, %v802_v54  ;;  %v1418_v54 = vrot.slane %v8343_v32, 5  ;;  %11555 = vst [vmem:[#allocation46_spill] sm:$0xff] %v8850_v58  ;;  %11556 = vst [vmem:[#allocation47_spill] sm:$0xff] %v8854_v18  ;;  %v1430_v32 = vrot.slane %v11418_v44, 4  ;;  %v5884_v44 = vrot.slane %v8462_v57, 9 }
  0x69   : > { %6819 = vmatmul.mubr.bf16.gmra.mxu0 %v8780_v26  ;;  %11553 = vst [vmem:[#allocation44_spill] sm:$0xff] %v8831_v55  ;;  %v8836_v20 = vsel %vm8349_vm3, %v808_v15, %v8827_v25  ;;  %v11557_v15 = vmov 0  ;;  %v8911_v47 = vcombine.low %v8585_v30, %v8593_v14 }
  0x6a   : > { %6895 = vmatmul.mubr.bf16.gmra.mxu1 %v8757_v6  ;;  %6822 = vmatprep.mubr.msk.bf16.mxu0 %vm8128_vm0, %v11538_v38  ;;  %11554 = vst [vmem:[#allocation45_spill] sm:$0xff] %v8836_v20  ;;  %v1420_v9 = vrot.slane %v1418_v54, 4  ;;  %v11558_v15 = vsel %vm8857_vm6, 4294967295, %v11557_v15  ;;  %v8867_v4 = vsel %vm8857_vm6, %v5881_v27, %v1418_v54  ;;  %v1433_v27 = vrot.slane %v1431_v28, 4 }
  0x6b   : > { %6898 = vmatprep.mubr.msk.bf16.mxu1 %vm8128_vm0, %v11538_v38  ;;  %11559 = vst [vmem:[#allocation48_spill] sm:$0xff] %v11558_v15  ;;  %v1438_v54 = vrot.slane %v8418_v29, 5  ;;  %11563 = vst [vmem:[#allocation52_spill] sm:$0xff] %v8911_v47 }
  0x6c   : > { %v8873_v48 = vsel %vm8857_vm6, %v1420_v9, %v11419_v34  ;;  %v1441_v9 = vrot.slane %v8438_v42, 5  ;;  %v8895_v34 = vsel %vm8857_vm6, %v1430_v32, %v1431_v28  ;;  %v5885_v28 = vrot.slane %v8531_v45, 9 }
  0x6d   : > { %11560 = vst [vmem:[#allocation49_spill] sm:$0xff] %v8895_v34  ;;  %v1440_v32 = vrot.slane %v1438_v54, 4 }
  0x6e   : > { %v1443_v26 = vrot.slane %v1441_v9, 4 }
  0x6f   : > { %v8921_v6 = vsel %vm8857_vm6, %v1440_v32, %v1441_v9  ;;  %v1458_v32 = vrot.slane %v8542_v52, 5 }
  0x70   : > { %11564 = vst [vmem:[#allocation53_spill] sm:$0xff] %v8921_v6 }
  0x71   : > { %6823 = vmatmul.mubr.bf16.gmra.mxu0 %v8821_v37  ;;  %v1434_v37 = vrot.slane %v8399_v16, 5 }
  0x72   : > { %6899 = vmatmul.mubr.bf16.gmra.mxu1 %v8825_v35  ;;  %6826 = vmatprep.mubr.msk.bf16.mxu0 %vm8128_vm0, %v11538_v38  ;;  %v5883_v35 = vrot.slane %v8404_v21, 9 }
  0x73   : > { %6902 = vmatprep.mubr.msk.bf16.mxu1 %vm8128_vm0, %v11538_v38 }
  0x74   : > { %v8903_v16 = vsel %vm8857_vm6, %v5883_v35, %v1438_v54  ;;  %v1451_v35 = vrot.slane %v8486_v12, 5  ;;  %v8929_v54 = vsel %vm8857_vm6, %v1443_v26, %v1444_v5  ;;  %v1464_v5 = vrot.slane %v8578_v19, 5 }
  0x75   : > { %11561 = vst [vmem:[#allocation50_spill] sm:$0xff] %v8903_v16  ;;  %v1460_v26 = vrot.slane %v1458_v32, 4  ;;  %v1474_v19 = vrot.slane %v8637_v33, 5  ;;  %v1478_v33 = vrot.slane %v8650_v62, 5 }
  0x76   : > { %v1453_v9 = vrot.slane %v1451_v35, 4 }
  0x79   : > { %6827 = vmatmul.mubr.bf16.gmra.mxu0 %v8850_v58  ;;  %v8899_v58 = vsel %vm8857_vm6, %v1433_v27, %v1434_v37  ;;  %v1448_v37 = vrot.slane %v8473_v2, 5 }
  0x7a   : > { %6903 = vmatmul.mubr.bf16.gmra.mxu1 %v8854_v18  ;;  %6830 = vmatprep.mubr.msk.bf16.mxu0 %vm8128_vm0, %v11538_v38  ;;  %v8907_v18 = vcombine.low %v8702_v56, %v8736_v60  ;;  %v1454_v56 = vrot.slane %v8511_v31, 5  ;;  %v8956_v60 = vsel %vm8857_vm6, %v5885_v28, %v1458_v32 }
  0x7b   : > { %6906 = vmatprep.mubr.msk.bf16.mxu1 %vm8128_vm0, %v11538_v38  ;;  %v8933_v27 = vsel %vm8857_vm6, %v5884_v44, %v1448_v37  ;;  %v1450_v46 = vrot.slane %v1448_v37, 4  ;;  %v1461_v44 = vrot.slane %v8552_v61, 5  ;;  %11567 = vst [vmem:[#allocation56_spill] sm:$0xff] %v8956_v60 }
  0x7c   : > { %11562 = vst [vmem:[#allocation51_spill] sm:$0xff] %v8907_v18  ;;  %11565 = vst [vmem:[#allocation54_spill] sm:$0xff] %v8933_v27  ;;  %v8952_v37 = vsel %vm8857_vm6, %v1453_v9, %v1454_v56  ;;  %v5886_v56 = vrot.slane %v8585_v30, 9  ;;  %v1468_v9 = vrot.slane %v8593_v14, 5 }
  0x7d   : > { %v8942_v31 = vsel %vm8857_vm6, %v1450_v46, %v1451_v35  ;;  %v8960_v46 = vcombine.low %v8740_v13, %v8769_v22  ;;  %v8964_v35 = vcombine.low %v8625_v8, %v8647_v50  ;;  %v1471_v22 = vrot.slane %v8625_v8, 5 }
  0x7e   : > { %11566 = vst [vmem:[#allocation55_spill] sm:$0xff] %v8942_v31  ;;  %v8986_v51 = vsel %vm8857_vm6, %v5886_v56, %v1468_v9  ;;  %v1470_v28 = vrot.slane %v1468_v9, 4  ;;  %v1484_v9 = vrot.slane %v8705_v1, 5  ;;  %v1488_v1 = vrot.slane %v8725_v24, 5 }
  0x7f   : > { %11568 = vst [vmem:[#allocation57_spill] sm:$0xff] %v8960_v46  ;;  %11569 = vst [vmem:[#allocation58_spill] sm:$0xff] %v8964_v35  ;;  %v1473_v3 = vrot.slane %v1471_v22, 4 }
  0x80   : > { %11571 = vst [vmem:[#allocation60_spill] sm:$0xff] %v8986_v51 }
  0x81   : > { %6831 = vmatmul.mubr.bf16.gmra.mxu0 %v8907_v18  ;;  %v1463_v18 = vrot.slane %v1461_v44, 4  ;;  %v9003_v56 = vsel %vm8857_vm6, %v1473_v3, %v1474_v19  ;;  %v5888_v3 = vrot.slane %v8698_v7, 9 }
  0x82   : > { %6907 = vmatmul.mubr.bf16.gmra.mxu1 %v8911_v47  ;;  %6834 = vmatprep.mubr.msk.bf16.mxu0 %vm8128_vm0, %v11538_v38  ;;  %v8974_v47 = vsel %vm8857_vm6, %v1460_v26, %v1461_v44  ;;  %v5887_v26 = vrot.slane %v8647_v50, 9  ;;  %v8992_v44 = vsel %vm8857_vm6, %v1470_v28, %v1471_v22  ;;  %v1491_v28 = vrot.slane %v8732_v0, 5 }
  0x83   : > { %6910 = vmatprep.mubr.msk.bf16.mxu1 %vm8128_vm0, %v11538_v38  ;;  %11570 = vst [vmem:[#allocation59_spill] sm:$0xff] %v8974_v47  ;;  %v8982_v32 = vsel %vm8857_vm6, %v1463_v18, %v1464_v5  ;;  %11572 = vst [vmem:[#allocation61_spill] sm:$0xff] %v8992_v44  ;;  %v1481_v5 = vrot.slane %v8688_v41, 5  ;;  %v1480_v18 = vrot.slane %v1478_v33, 4 }
  0x84   : > { %v9010_v22 = vsel %vm8857_vm6, %v5887_v26, %v1478_v33  ;;  %v5889_v33 = vrot.slane %v8753_v49, 9 }
  0x85   : > { %11573 = vst [vmem:[#allocation62_spill] sm:$0xff] %v9010_v22  ;;  %v1483_v13 = vrot.slane %v1481_v5, 4  ;;  %v9022_v19 = vsel %vm8857_vm6, %v1480_v18, %v1481_v5  ;;  %v11578_v18 = vld [vmem:[#allocation34_spill] sm:$0xff] }
  0x86   : > { %11575 = vst [vmem:[#allocation64_spill] sm:$0xff] %v9022_v19  ;;  %v1494_v5 = vrot.slane %v11578_v18, 5  ;;  %v1493_v18 = vrot.slane %v1491_v28, 4 }
  0x87   : > { %v9026_v26 = vsel %vm8857_vm6, %v1483_v13, %v1484_v9  ;;  %v456_v9 = vld [vmem:[%s8669_s17 + $0x1c] sm:$0xf] }
  0x89   : > { %6835 = vmatmul.mubr.bf16.gmra.mxu0 %v8960_v46  ;;  %v9016_v46 = vcombine.low %v8773_v17, %v8788_v53  ;;  %v9037_v53 = vsel %vm8857_vm6, %v5888_v3, %v1488_v1  ;;  %v1490_v17 = vrot.slane %v1488_v1, 4  ;;  %v816_v1 = vrot.slane %v814_v59, 4 }
  0x8a   : > { %6911 = vmatmul.mubr.bf16.gmra.mxu1 %v8964_v35  ;;  %6838 = vmatprep.mubr.msk.bf16.mxu0 %vm8128_vm0, %v11538_v38  ;;  %v9033_v35 = vcombine.low %v8650_v62, %v8688_v41  ;;  %11577 = vst [vmem:[#allocation66_spill] sm:$0xff] %v9037_v53  ;;  %v820_v53 = vshll.u32 %v456_v9, 16  ;;  %v9066_v3 = vsel %vm8857_vm6, %v1493_v18, %v1494_v5  ;;  %v1501_v5 = vrot.slane %v8792_v11, 5 }
  0x8b   : > { %6914 = vmatprep.mubr.msk.bf16.mxu1 %vm8128_vm0, %v11538_v38  ;;  %11574 = vst [vmem:[#allocation63_spill] sm:$0xff] %v9016_v46  ;;  %v9043_v13 = vsel %vm8857_vm6, %v1490_v17, %v1491_v28  ;;  %v9056_v17 = vcombine.low %v8796_v10, %v8805_v39  ;;  %11582 = vst [vmem:[#allocation69_spill] sm:$0xff] %v9066_v3  ;;  %v817_v28 = vor.u32 %v816_v1, %v8827_v25 }
  0x8c   : > { %11576 = vst [vmem:[#allocation65_spill] sm:$0xff] %v9033_v35  ;;  %11579 = vst [vmem:[#allocation34_spill] sm:$0xff] %v9043_v13  ;;  %v1504_v39 = vrot.slane %v456_v9, 5  ;;  %v822_v10 = vrot.slane %v820_v53, 5  ;;  %v1503_v1 = vrot.slane %v1501_v5, 4 }
  0x8d   : > { %11580 = vst [vmem:[#allocation67_spill] sm:$0xff] %v9056_v17  ;;  %v818_v18 = vrot.slane %v817_v28, 4  ;;  %v8019_v28 = vld [vmem:[%s8299_s13] sm:$0xf] }
  0x8e   : > { %v9095_v53 = vsel %vm8857_vm6, %v1503_v1, %v1504_v39  ;;  %v8020_v39 = vld [vmem:[%s8299_s13 + $0x8] sm:$0xf] }
  0x91   : > { %6839 = vmatmul.mubr.bf16.gmra.mxu0 %v9016_v46  ;;  %v1498_v46 = vrot.slane %v8762_v23, 5 }
  0x92   : > { %6915 = vmatmul.mubr.bf16.gmra.mxu1 %v9033_v35  ;;  %6842 = vmatprep.mubr.msk.bf16.mxu0 %vm8128_vm0, %v11538_v38  ;;  %v9062_v35 = vcombine.low %v8698_v7, %v8725_v24 }
  0x93   : > { %6918 = vmatprep.mubr.msk.bf16.mxu1 %vm8128_vm0, %v11538_v38  ;;  %v9070_v59 = vsel %vm8857_vm6, %v5889_v33, %v1498_v46  ;;  %v9082_v33 = vcombine.low %v8812_v43, %v8831_v55  ;;  %v1500_v25 = vrot.slane %v1498_v46, 4  ;;  %v5880_v46 = vrot.slane %v8019_v28, 9  ;;  %v8023_v55 = vld [vmem:[%s8299_s13 + $0x10] sm:$0xf] }
  0x94   : > { %11581 = vst [vmem:[#allocation68_spill] sm:$0xff] %v9062_v35  ;;  %11583 = vst [vmem:[#allocation70_spill] sm:$0xff] %v9070_v59  ;;  %v9115_v28 = vcombine.low %v8762_v23, %v8792_v11  ;;  %v11590_v11 = vrot.slane %v8355_v40, 5  ;;  %v7892_v40 = vld [vmem:[%s11385_s2 + $0x130] sm:$0xff]  }
  0x95   : > { %11584 = vst [vmem:[#allocation71_spill] sm:$0xff] %v9082_v33  ;;  %v9091_v9 = vsel %vm8857_vm6, %v1500_v25, %v1501_v5  ;;  %v1411_v25 = vrot.slane %v8020_v39, 5 }
  0x96   : > { %11586 = vst [vmem:[#allocation73_spill] sm:$0xff] %v9091_v9  ;;  %11589 = vst [vmem:[#allocation76_spill] sm:$0xff] %v9115_v28 }
  0x99   : > { %6843 = vmatmul.mubr.bf16.gmra.mxu0 %v9056_v17  ;;  %v9086_v17 = vcombine.low %v8732_v0, %v8753_v49 }
  0x9a   : > { %6919 = vmatmul.mubr.bf16.gmra.mxu1 %v9062_v35  ;;  %6846 = vmatprep.mubr.msk.bf16.mxu0 %vm8128_vm0, %v11538_v38  ;;  %v8018_v35 = vld [vmem:[%s8299_s13 + $0x4] sm:$0xf] }
  0x9b   : > { %6922 = vmatprep.mubr.msk.bf16.mxu1 %vm8128_vm0, %v11538_v38  ;;  %11585 = vst [vmem:[#allocation72_spill] sm:$0xff] %v9086_v17  ;;  %v1408_v3 = vrot.slane %v8018_v35, 5  ;;  %v9104_v35 = vsel %vm8349_vm3, %v818_v18, %v822_v10  ;;  %v8021_v10 = vld [vmem:[%s8299_s13 + $0xc] sm:$0xf] }
  0x9c   : > { %11587 = vst [vmem:[#allocation74_spill] sm:$0xff] %v9104_v35  ;;  %v9111_v1 = vcombine.low %v8836_v20, %v9104_v35  ;;  %v1414_v18 = vrot.slane %v8021_v10, 5  ;;  %v1423_v35 = vrot.slane %v11590_v11, 4  ;;  %v8022_v10 = vld [vmem:[%s8299_s13 + $0x1c] sm:$0xf] }
  0x9d   : > { %v1410_v5 = vrot.slane %v1408_v3, 4  ;;  %v1409_v39 = vsel %vm8857_vm6, %v5880_v46, %v1408_v3  ;;  %v1424_v20 = vrot.slane %v8022_v10, 5  ;;  %v5945_v3 = vcombine.low %v8023_v55, %v8024_v36  ;;  %v7907_v46 = vld [vmem:[%s11385_s2 + $0x178] sm:$0xff]   ;;  %v7895_v55 = vld [vmem:[%s11385_s2 + $0x128] sm:$0xff]   ;;  %v7911_v10 = vld [vmem:[%s11385_s2 + $0x160] sm:$0xff]  }
  0x9e   : > { %11588 = vst [vmem:[#allocation75_spill] sm:$0xff] %v9111_v1 }
  0xa1   : > { %6847 = vmatmul.mubr.bf16.gmra.mxu0 %v9082_v33  ;;  %v1413_v33 = vrot.slane %v1411_v25, 4 }
  0xa2   : > { %6923 = vmatmul.mubr.bf16.gmra.mxu1 %v9086_v17  ;;  %6850 = vmatprep.mubr.msk.bf16.mxu0 %vm8128_vm0, %v11538_v38  ;;  %v1412_v17 = vsel %vm8857_vm6, %v1410_v5, %v1411_v25  ;;  %v8026_v25 = vld [vmem:[%s8299_s13 + $0x20] sm:$0xf] }
  0xa3   : > { %6926 = vmatprep.mubr.msk.bf16.mxu1 %vm8128_vm0, %v11538_v38  ;;  %v1415_v5 = vsel %vm8857_vm6, %v1413_v33, %v1414_v18  ;;  %v8025_v33 = vld [vmem:[%s8299_s13 + $0x18] sm:$0xf]  ;;  %v7898_v18 = vld [vmem:[%s11385_s2 + $0x120] sm:$0xff]   ;;  %v5882_v11 = vrot.slane %v8026_v25, 9 }
  0xa4   : > { %v5907_v36 = vcombine.low %v1415_v5, %v8867_v4  ;;  %v7914_v5 = vld [vmem:[%s11385_s2 + $0x158] sm:$0xff]  }
  0xa9   : > { %6851 = vmatmul.mubr.bf16.gmra.mxu0 %v9111_v1  ;;  %v7889_v1 = vld [vmem:[%s11385_s2 + $0x138] sm:$0xff]  }
  0xaa   : > { %6927 = vmatmul.mubr.bf16.gmra.mxu1 %v9115_v28  ;;  %6946 = vmatprep.mubr.msk.bf16.mxu0 %vm8128_vm0, %v11538_v38  ;;  %v5906_v28 = vcombine.low %v1409_v39, %v1412_v17  ;;  %v7908_v17 = vld [vmem:[%s11385_s2 + $0x170] sm:$0xff]   ;;  %v9171_v39 = vsel %vm8857_vm6, %v1423_v35, %v1424_v20  ;;  %v7901_v20 = vld [vmem:[%s11385_s2 + $0x118] sm:$0xff]   ;;  %v8027_v35 = vld [vmem:[%s8299_s13 + $0x24] sm:$0xf] }
  0xab   : > { %7022 = vmatprep.mubr.msk.bf16.mxu1 %vm8128_vm0, %v11538_v38 }
  0xb1   : > { %6947 = vmatmul.mubr.bf16.vlgmr.msra.gmra.mxu0 %v5906_v28  ;;  %v7910_v28 = vld [vmem:[%s11385_s2 + $0x168] sm:$0xff]  }
  0xb2   : > { %7083 = vmatpush3.bf16.msra.mxu0 %v7889_v1  ;;  %7023 = vmatmul.mubr.bf16.vlgmr.msra.gmra.mxu1 %v5945_v3  ;;  %v5946_v1 = vcombine.low %v8025_v33, %v8026_v25  ;;  %v5908_v3 = vcombine.low %v8873_v48, %v9171_v39  ;;  %v7906_v25 = vld [vmem:[%s11385_s2 + $0x108] sm:$0xff]  }
  0xb3   : > { %6950 = vmatprep.mubr.msk.bf16.mxu0 %vm8128_vm0, %v11538_v38  ;;  %7026 = vmatprep.mubr.msk.bf16.mxu1 %vm8128_vm0, %v11538_v38 }
  0xb4   : > { %7084 = vmatprep.subr.bf16.mxu0 %v11538_v38  ;;  %7159 = vmatpush3.bf16.msra.mxu1 %v7907_v46  ;;  %v8028_v46 = vld [vmem:[%s8299_s13 + $0x28] sm:$0xf] }
  0xb5   : > { %7160 = vmatprep.subr.bf16.mxu1 %v11538_v38 }
  0xb6   : > { %7085 = vmatpush3.bf16.msra.mxu0 %v7892_v40  ;;  %v5947_v40 = vcombine.low %v8027_v35, %v8028_v46  ;;  %v11602_v35 = vcombine.low %v8647_v50, %v8650_v62 }
  0xb7   : > { %7086 = vmatprep.subr.bf16.mxu0 %v11538_v38 }
  0xb8   : > { %7161 = vmatpush3.bf16.msra.mxu1 %v7908_v17  ;;  %v11591_v17 = vrot.slane %v8380_v63, 5  ;;  %v7915_v63 = vld [vmem:[%s11385_s2 + $0x150] sm:$0xff]  }
  0xb9   : > { %6951 = vmatmul.mubr.bf16.gmra.mxu0 %v5907_v36  ;;  %7162 = vmatprep.subr.bf16.mxu1 %v11538_v38 }
  0xba   : > { %7027 = vmatmul.mubr.bf16.gmra.mxu1 %v5946_v1  ;;  %6954 = vmatprep.mubr.msk.bf16.mxu0 %vm8128_vm0, %v11538_v38  ;;  %v9196_v36 = vsel %vm8857_vm6, %v5882_v11, %v11591_v17  ;;  %v7917_v1 = vld [vmem:[%s11385_s2 + $0x148] sm:$0xff]   ;;  %v7918_v11 = vld [vmem:[%s11385_s2 + $0x140] sm:$0xff]  }
  0xbb   : > { %7030 = vmatprep.mubr.msk.bf16.mxu1 %vm8128_vm0, %v11538_v38  ;;  %7087 = vmatpush3.bf16.msra.mxu0 %v7895_v55  ;;  %11592 = vst [vmem:[#allocation77_spill] sm:$0xff] %v9196_v36  ;;  %v7904_v55 = vld [vmem:[%s11385_s2 + $0x110] sm:$0xff]   ;;  %v9211_v33 = vcombine.low %v9196_v36, %v8895_v34 }
  0xbc   : > { %7088 = vmatprep.subr.bf16.mxu0 %v11538_v38  ;;  %7163 = vmatpush3.bf16.msra.mxu1 %v7910_v28  ;;  %v11593_v28 = vcombine.low %v8404_v21, %v8418_v29  ;;  %v9239_v21 = vcombine.low %v8899_v58, %v8903_v16  ;;  %v11594_v29 = vcombine.low %v8438_v42, %v8462_v57 }
  0xbd   : > { %7164 = vmatprep.subr.bf16.mxu1 %v11538_v38  ;;  %v9266_v42 = vcombine.low %v8933_v27, %v8942_v31  ;;  %v11596_v57 = vcombine.low %v8531_v45, %v8542_v52  ;;  %v9290_v45 = vcombine.low %v8974_v47, %v8982_v32  ;;  %v11600_v52 = vcombine.low %v8593_v14, %v8625_v8 }
  0xbf   : > { %7089 = vmatpush3.bf16.msra.mxu0 %v7898_v18  ;;  %v7913_v18 = vld [vmem:[%s11385_s2 + $0x100] sm:$0xff]   ;;  %11599 = vst [vmem:[#allocation79_spill] sm:$0xff] %v9290_v45 }
  0xc0   : > { %7090 = vmatprep.subr.bf16.mxu0 %v11538_v38  ;;  %7165 = vmatpush3.bf16.msra.mxu1 %v7911_v10  ;;  %v9254_v10 = vcombine.low %v8921_v6, %v8929_v54 }
  0xc1   : > { %6955 = vmatmul.mubr.bf16.gmra.mxu0 %v5908_v3  ;;  %7166 = vmatprep.subr.bf16.mxu1 %v11538_v38  ;;  %v11595_v3 = vcombine.low %v8473_v2, %v8486_v12  ;;  %v9278_v2 = vcombine.low %v8952_v37, %v8956_v60  ;;  %v11598_v12 = vcombine.low %v8552_v61, %v8585_v30 }
  0xc2   : > { %7031 = vmatmul.mubr.bf16.gmra.mxu1 %v5947_v40  ;;  %6958 = vmatprep.mubr.msk.bf16.mxu0 %vm8128_vm0, %v11538_v38  ;;  %v9302_v61 = vcombine.low %v8986_v51, %v8992_v44 }
  0xc3   : > { %7034 = vmatprep.mubr.msk.bf16.mxu1 %vm8128_vm0, %v11538_v38  ;;  %7091 = vmatpush3.bf16.msra.mxu0 %v7901_v20  ;;  %11597 = vst [vmem:[#allocation78_spill] sm:$0xff] %v9278_v2 }
  0xc4   : > { %7092 = vmatprep.subr.bf16.mxu0 %v11538_v38  ;;  %7167 = vmatpush3.bf16.msra.mxu1 %v7914_v5  ;;  %11601 = vst [vmem:[#allocation80_spill] sm:$0xff] %v9302_v61  ;;  %v9316_v5 = vcombine.low %v9003_v56, %v9010_v22 }
  0xc5   : > { %7168 = vmatprep.subr.bf16.mxu1 %v11538_v38 }
  0xc6   : > { %11603 = vst [vmem:[#allocation81_spill] sm:$0xff] %v9316_v5 }
  0xc7   : > { %7093 = vmatpush3.bf16.msra.mxu0 %v7904_v55 }
  0xc8   : > { %7094 = vmatprep.subr.bf16.mxu0 %v11538_v38  ;;  %7169 = vmatpush3.bf16.msra.mxu1 %v7915_v63 }
  0xc9   : > { %6959 = vmatmul.mubr.bf16.gmra.mxu0 %v9211_v33  ;;  %7170 = vmatprep.subr.bf16.mxu1 %v11538_v38 }
  0xca   : > { %7035 = vmatmul.mubr.bf16.gmra.mxu1 %v11593_v28  ;;  %6962 = vmatprep.mubr.msk.bf16.mxu0 %vm8128_vm0, %v11538_v38 }
  0xcb   : > { %7038 = vmatprep.mubr.msk.bf16.mxu1 %vm8128_vm0, %v11538_v38  ;;  %7095 = vmatpush3.bf16.msra.mxu0 %v7906_v25 }
  0xcc   : > { %7096 = vmatprep.subr.bf16.mxu0 %v11538_v38  ;;  %7171 = vmatpush3.bf16.msra.mxu1 %v7917_v1  ;;  %v11604_v1 = vcombine.low %v8688_v41, %v8698_v7 }
  0xcd   : > { %7172 = vmatprep.subr.bf16.mxu1 %v11538_v38 }
  0xcf   : > { %7097 = vmatpush3.bf16.msra.mxu0 %v7913_v18 }
  0xd0   : > { %7173 = vmatpush3.bf16.msra.mxu1 %v7918_v11  ;;  %7234 = vmatprep.subr.bf16.mxu0 %v11538_v38 }
  0xd1   : > { %6963 = vmatmul.mubr.bf16.gmra.mxu0 %v9239_v21  ;;  %7310 = vmatprep.subr.bf16.mxu1 %v11538_v38 }
  0xd2   : > { %7039 = vmatmul.mubr.bf16.gmra.mxu1 %v11594_v29  ;;  %6966 = vmatprep.mubr.msk.bf16.mxu0 %vm8128_vm0, %v11538_v38 }
  0xd3   : > { %7042 = vmatprep.mubr.msk.bf16.mxu1 %vm8128_vm0, %v11538_v38 }
  0xd9   : > { %6967 = vmatmul.mubr.bf16.gmra.mxu0 %v9254_v10 }
  0xda   : > { %7043 = vmatmul.mubr.bf16.gmra.mxu1 %v11595_v3  ;;  %6970 = vmatprep.mubr.msk.bf16.mxu0 %vm8128_vm0, %v11538_v38  ;;  %v9332_v3 = vcombine.low %v9022_v19, %v9026_v26 }
  0xdb   : > { %7046 = vmatprep.mubr.msk.bf16.mxu1 %vm8128_vm0, %v11538_v38 }
  0xdc   : > { %11605 = vst [vmem:[#allocation82_spill] sm:$0xff] %v9332_v3 }
  0xe1   : > { %6971 = vmatmul.mubr.bf16.gmra.mxu0 %v9266_v42 }
  0xe2   : > { %7047 = vmatmul.mubr.bf16.gmra.mxu1 %v11596_v57  ;;  %6974 = vmatprep.mubr.msk.bf16.mxu0 %vm8128_vm0, %v11538_v38 }
  0xe3   : > { %7050 = vmatprep.mubr.msk.bf16.mxu1 %vm8128_vm0, %v11538_v38 }
  0xe9   : > { %6975 = vmatmul.mubr.bf16.gmra.mxu0 %v9278_v2 }
  0xea   : > { %7051 = vmatmul.mubr.bf16.gmra.mxu1 %v11598_v12  ;;  %6978 = vmatprep.mubr.msk.bf16.mxu0 %vm8128_vm0, %v11538_v38 }
  0xeb   : > { %7054 = vmatprep.mubr.msk.bf16.mxu1 %vm8128_vm0, %v11538_v38 }
  0xf1   : > { %6979 = vmatmul.mubr.bf16.gmra.mxu0 %v9290_v45 }
  0xf2   : > { %7055 = vmatmul.mubr.bf16.gmra.mxu1 %v11600_v52  ;;  %6982 = vmatprep.mubr.msk.bf16.mxu0 %vm8128_vm0, %v11538_v38 }
  0xf3   : > { %7058 = vmatprep.mubr.msk.bf16.mxu1 %vm8128_vm0, %v11538_v38 }
  0xf9   : > { %v983_v30 = vpop.f32.mrf.mxu0  ;;  %6983 = vmatmul.mubr.bf16.gmra.mxu0 %v9302_v61 }
  0xfa   : > { %v1274_v20 = vpop.f32.mrf.mxu1  ;;  %7059 = vmatmul.mubr.bf16.gmra.mxu1 %v11602_v35  ;;  %6986 = vmatprep.mubr.msk.bf16.mxu0 %vm8128_vm0, %v11538_v38 }
  0xfb   : > { %v9310_v14 = vadd.f32 %v1274_v20, %v983_v30  ;;  %v6796_v8 = vpop.f32.mrf.mxu0  ;;  %7062 = vmatprep.mubr.msk.bf16.mxu1 %vm8128_vm0, %v11538_v38  ;;  %v11606_v20 = vcombine.low %v8725_v24, %v8732_v0 }
  0xfc   : > { %v6872_v46 = vpop.f32.mrf.mxu1 }
  0xfd   : > { %v986_v40 = vpop.f32.mrf.mxu0 }
  0xfe   : > { %v1277_v17 = vpop.f32.mrf.mxu1 }
  0xff   : > { %v9318_v55 = vadd.f32 %v1277_v17, %v986_v40  ;;  %v6797_v50 = vpop.f32.mrf.mxu0  ;;  %v11607_v17 = vld [vmem:[#allocation66_spill] sm:$0xff] }
 0x100   : > { %v6873_v62 = vpop.f32.mrf.mxu1  ;;  %v9348_v50 = vcombine.low %v11607_v17, %v9043_v13 }
 0x101   : > { %v991_v63 = vpop.f32.mrf.mxu0  ;;  %6987 = vmatmul.mubr.bf16.gmra.mxu0 %v9316_v5  ;;  %v11616_v5 = vcombine.low %v8867_v4, %v8873_v48  ;;  %v7927_v48 = vld [vmem:[%s11385_s2 + $0x1f0] sm:$0xff]  }
 0x102   : > { %v1282_v25 = vpop.f32.mrf.mxu1  ;;  %7063 = vmatmul.mubr.bf16.gmra.mxu1 %v11604_v1  ;;  %6990 = vmatprep.mubr.msk.bf16.mxu0 %vm8128_vm0, %v11538_v38  ;;  %11608 = vst [vmem:[#allocation83_spill] sm:$0xff] %v9348_v50 }
 0x103   : > { %v9326_v28 = vadd.f32 %v1282_v25, %v991_v63  ;;  %v6800_v18 = vpop.f32.mrf.mxu0  ;;  %7066 = vmatprep.mubr.msk.bf16.mxu1 %vm8128_vm0, %v11538_v38 }
 0x104   : > { %v6876_v11 = vpop.f32.mrf.mxu1  ;;  %v11609_v18 = vcombine.low %v8753_v49, %v8762_v23  ;;  %v8029_v49 = vld [vmem:[%s8669_s17 + $0x18] sm:$0xf] }
 0x105   : > { %v994_v29 = vpop.f32.mrf.mxu0  ;;  %v9359_v11 = vld [vmem:[%s8669_s17 + $0x20] sm:$0xf] }
 0x106   : > { %v1285_v57 = vpop.f32.mrf.mxu1 }
 0x107   : > { %v9334_v12 = vadd.f32 %v1285_v57, %v994_v29  ;;  %v6801_v7 = vpop.f32.mrf.mxu0 }
 0x108   : > { %v6877_v41 = vpop.f32.mrf.mxu1 }
 0x109   : > { %v999_v52 = vpop.f32.mrf.mxu0  ;;  %6991 = vmatmul.mubr.bf16.gmra.mxu0 %v9332_v3 }
 0x10a   : > { %v1290_v30 = vpop.f32.mrf.mxu1  ;;  %7067 = vmatmul.mubr.bf16.gmra.mxu1 %v11606_v20  ;;  %6994 = vmatprep.mubr.msk.bf16.mxu0 %vm8128_vm0, %v11538_v38  ;;  %v5958_v20 = vcombine.low %v8029_v49, %v9359_v11 }
 0x10b   : > { %v9342_v35 = vadd.f32 %v1290_v30, %v999_v52  ;;  %v6804_v8 = vpop.f32.mrf.mxu0  ;;  %7070 = vmatprep.mubr.msk.bf16.mxu1 %vm8128_vm0, %v11538_v38  ;;  %v11610_v52 = vld [vmem:[#allocation69_spill] sm:$0xff] }
 0x10c   : > { %v6880_v46 = vpop.f32.mrf.mxu1  ;;  %v9367_v30 = vcombine.low %v11610_v52, %v9070_v59 }
 0x10d   : > { %v1002_v40 = vpop.f32.mrf.mxu0 }
 0x10e   : > { %v1293_v62 = vpop.f32.mrf.mxu1  ;;  %11611 = vst [vmem:[#allocation69_spill] sm:$0xff] %v9367_v30 }
 0x10f   : > { %v9350_v63 = vadd.f32 %v1293_v62, %v1002_v40  ;;  %v6805_v0 = vpop.f32.mrf.mxu0 }
 0x110   : > { %v6881_v24 = vpop.f32.mrf.mxu1 }
 0x111   : > { %v1007_v25 = vpop.f32.mrf.mxu0  ;;  %6995 = vmatmul.mubr.bf16.gmra.mxu0 %v9348_v50  ;;  %v9377_v24 = vld [vmem:[%s8669_s17 + $0x24] sm:$0xf] }
 0x112   : > { %v1298_v1 = vpop.f32.mrf.mxu1  ;;  %7071 = vmatmul.mubr.bf16.gmra.mxu1 %v11609_v18  ;;  %6998 = vmatprep.mubr.msk.bf16.mxu0 %vm8128_vm0, %v11538_v38  ;;  %v9384_v18 = vld [vmem:[%s8669_s17 + $0x28] sm:$0xf] }
 0x113   : > { %v9361_v29 = vadd.f32 %v1298_v1, %v1007_v25  ;;  %v6808_v57 = vpop.f32.mrf.mxu0  ;;  %7074 = vmatprep.mubr.msk.bf16.mxu1 %vm8128_vm0, %v11538_v38  ;;  %v5959_v49 = vcombine.low %v9377_v24, %v9384_v18 }
 0x114   : > { %v6884_v7 = vpop.f32.mrf.mxu1 }
 0x115   : > { %v1010_v41 = vpop.f32.mrf.mxu0 }
 0x116   : > { %v1301_v23 = vpop.f32.mrf.mxu1 }
 0x117   : > { %v9371_v8 = vadd.f32 %v1301_v23, %v1010_v41  ;;  %v6809_v46 = vpop.f32.mrf.mxu0  ;;  %v9388_v41 = vcombine.low %v9091_v9, %v9095_v53 }
 0x118   : > { %v6885_v40 = vpop.f32.mrf.mxu1 }
 0x119   : > { %v1015_v62 = vpop.f32.mrf.mxu0  ;;  %6999 = vmatmul.mubr.bf16.gmra.mxu0 %v9367_v30  ;;  %11612 = vst [vmem:[#allocation84_spill] sm:$0xff] %v9388_v41 }
 0x11a   : > { %v1306_v0 = vpop.f32.mrf.mxu1  ;;  %7075 = vmatmul.mubr.bf16.gmra.mxu1 %v5958_v20  ;;  %7002 = vmatprep.mubr.msk.bf16.mxu0 %vm8128_vm0, %v11538_v38 }
 0x11b   : > { %v9379_v25 = vadd.f32 %v1306_v0, %v1015_v62  ;;  %v6812_v1 = vpop.f32.mrf.mxu0  ;;  %7078 = vmatprep.mubr.msk.bf16.mxu1 %vm8128_vm0, %v11538_v38 }
 0x11c   : > { %v6888_v57 = vpop.f32.mrf.mxu1 }
 0x11d   : > { %v1018_v7 = vpop.f32.mrf.mxu0 }
 0x11e   : > { %v1309_v23 = vpop.f32.mrf.mxu1 }
 0x11f   : > { %v9392_v20 = vadd.f32 %v1309_v23, %v1018_v7  ;;  %v6813_v46 = vpop.f32.mrf.mxu0  ;;  %v7919_v23 = vld [vmem:[%s11385_s2 + $0x1b8] sm:$0xff]  }
 0x120   : > { %v6889_v40 = vpop.f32.mrf.mxu1 }
 0x121   : > { %v1023_v62 = vpop.f32.mrf.mxu0  ;;  %7003 = vmatmul.mubr.bf16.gmra.mxu0 %v9388_v41  ;;  %v11614_v41 = vld [vmem:[#allocation11_spill] sm:$0xff] }
 0x122   : > { %v1314_v0 = vpop.f32.mrf.mxu1  ;;  %7079 = vmatmul.mubr.bf16.gmra.mxu1 %v5959_v49  ;;  %7098 = vmatprep.mubr.msk.bf16.mxu0 %vm8128_vm0, %v11538_v38 }
 0x123   : > { %v9397_v1 = vadd.f32 %v1314_v0, %v1023_v62  ;;  %v6816_v57 = vpop.f32.mrf.mxu0  ;;  %7174 = vmatprep.mubr.msk.bf16.mxu1 %vm8128_vm0, %v11538_v38  ;;  %v7926_v62 = vld [vmem:[%s11385_s2 + $0x1f8] sm:$0xff]  }
 0x124   : > { %v6892_v30 = vpop.f32.mrf.mxu1  ;;  %v11613_v57 = vld [vmem:[#allocation10_spill] sm:$0xff] }
 0x125   : > { %v1026_v50 = vpop.f32.mrf.mxu0  ;;  %v11615_v3 = vcombine.low %v11613_v57, %v11614_v41  ;;  %v7928_v57 = vld [vmem:[%s11385_s2 + $0x1e8] sm:$0xff]  }
 0x126   : > { %v1317_v7 = vpop.f32.mrf.mxu1 }
 0x127   : > { %v9404_v46 = vadd.f32 %v1317_v7, %v1026_v50  ;;  %v6817_v40 = vpop.f32.mrf.mxu0  ;;  %v7920_v50 = vld [vmem:[%s11385_s2 + $0x1b0] sm:$0xff]  }
 0x128   : > { %v6893_v49 = vpop.f32.mrf.mxu1 }
 0x129   : > { %v1031_v0 = vpop.f32.mrf.mxu0  ;;  %7099 = vmatmul.mubr.bf16.vlgmr.msra.gmra.mxu0 %v11615_v3 }
 0x12a   : > { %v1322_v30 = vpop.f32.mrf.mxu1  ;;  %7235 = vmatpush3.bf16.msra.mxu0 %v7919_v23  ;;  %7175 = vmatmul.mubr.bf16.vlgmr.msra.gmra.mxu1 %v11616_v5  ;;  %v6025_v5 = vcombine.low %v9171_v39, %v9196_v36  ;;  %v11618_v39 = vld [vmem:[#allocation13_spill] sm:$0xff] }
 0x12b   : > { %v9418_v7 = vadd.f32 %v1322_v30, %v1031_v0  ;;  %v6820_v40 = vpop.f32.mrf.mxu0  ;;  %7102 = vmatprep.mubr.msk.bf16.mxu0 %vm8128_vm0, %v11538_v38  ;;  %7178 = vmatprep.mubr.msk.bf16.mxu1 %vm8128_vm0, %v11538_v38 }
 0x12c   : > { %v6896_v3 = vpop.f32.mrf.mxu1  ;;  %7236 = vmatprep.subr.bf16.mxu0 %v11538_v38  ;;  %7311 = vmatpush3.bf16.msra.mxu1 %v7926_v62  ;;  %v7921_v62 = vld [vmem:[%s11385_s2 + $0x1a8] sm:$0xff]   ;;  %v11617_v40 = vld [vmem:[#allocation12_spill] sm:$0xff] }
 0x12d   : > { %v1034_v4 = vpop.f32.mrf.mxu0  ;;  %7312 = vmatprep.subr.bf16.mxu1 %v11538_v38  ;;  %v11619_v3 = vcombine.low %v11617_v40, %v11618_v39 }
 0x12e   : > { %v1325_v41 = vpop.f32.mrf.mxu1  ;;  %7237 = vmatpush3.bf16.msra.mxu0 %v7920_v50 }
 0x12f   : > { %v9431_v23 = vadd.f32 %v1325_v41, %v1034_v4  ;;  %v6821_v49 = vpop.f32.mrf.mxu0  ;;  %7238 = vmatprep.subr.bf16.mxu0 %v11538_v38 }
 0x130   : > { %v6897_v0 = vpop.f32.mrf.mxu1  ;;  %7313 = vmatpush3.bf16.msra.mxu1 %v7927_v48  ;;  %v7922_v48 = vld [vmem:[%s11385_s2 + $0x1a0] sm:$0xff]  }
 0x131   : > { %v1039_v30 = vpop.f32.mrf.mxu0  ;;  %7103 = vmatmul.mubr.bf16.gmra.mxu0 %v11619_v3  ;;  %7314 = vmatprep.subr.bf16.mxu1 %v11538_v38 }
 0x132   : > { %v1330_v50 = vpop.f32.mrf.mxu1  ;;  %7179 = vmatmul.mubr.bf16.gmra.mxu1 %v6025_v5  ;;  %7106 = vmatprep.mubr.msk.bf16.mxu0 %vm8128_vm0, %v11538_v38  ;;  %v7929_v5 = vld [vmem:[%s11385_s2 + $0x1e0] sm:$0xff]  }
 0x133   : > { %v9446_v4 = vadd.f32 %v1330_v50, %v1039_v30  ;;  %v6824_v41 = vpop.f32.mrf.mxu0  ;;  %7182 = vmatprep.mubr.msk.bf16.mxu1 %vm8128_vm0, %v11538_v38  ;;  %7239 = vmatpush3.bf16.msra.mxu0 %v7921_v62  ;;  %v7923_v62 = vld [vmem:[%s11385_s2 + $0x198] sm:$0xff]  }
 0x134   : > { %v6900_v49 = vpop.f32.mrf.mxu1  ;;  %7240 = vmatprep.subr.bf16.mxu0 %v11538_v38  ;;  %7315 = vmatpush3.bf16.msra.mxu1 %v7928_v57  ;;  %v7931_v57 = vld [vmem:[%s11385_s2 + $0x1d8] sm:$0xff]   ;;  %v11620_v41 = vld [vmem:[#allocation14_spill] sm:$0xff] }
 0x135   : > { %v1042_v0 = vpop.f32.mrf.mxu0  ;;  %7316 = vmatprep.subr.bf16.mxu1 %v11538_v38  ;;  %v11621_v49 = vld [vmem:[#allocation15_spill] sm:$0xff] }
 0x136   : > { %v1333_v30 = vpop.f32.mrf.mxu1  ;;  %v11622_v36 = vcombine.low %v11620_v41, %v11621_v49  ;;  %v6027_v41 = vcombine.low %v8903_v16, %v8921_v6 }
 0x137   : > { %v9458_v40 = vadd.f32 %v1333_v30, %v1042_v0  ;;  %v6825_v39 = vpop.f32.mrf.mxu0  ;;  %7241 = vmatpush3.bf16.msra.mxu0 %v7922_v48  ;;  %v11623_v0 = vcombine.low %v8895_v34, %v8899_v58  ;;  %v7932_v58 = vld [vmem:[%s11385_s2 + $0x1d0] sm:$0xff]   ;;  %v11625_v34 = vld [vmem:[#allocation17_spill] sm:$0xff] }
 0x138   : > { %v6901_v3 = vpop.f32.mrf.mxu1  ;;  %7242 = vmatprep.subr.bf16.mxu0 %v11538_v38  ;;  %7317 = vmatpush3.bf16.msra.mxu1 %v7929_v5 }
 0x139   : > { %v1047_v50 = vpop.f32.mrf.mxu0  ;;  %7107 = vmatmul.mubr.bf16.gmra.mxu0 %v11622_v36  ;;  %7318 = vmatprep.subr.bf16.mxu1 %v11538_v38  ;;  %v7924_v36 = vld [vmem:[%s11385_s2 + $0x190] sm:$0xff]  }
 0x13a   : > { %v1338_v48 = vpop.f32.mrf.mxu1  ;;  %7183 = vmatmul.mubr.bf16.gmra.mxu1 %v11623_v0  ;;  %7110 = vmatprep.mubr.msk.bf16.mxu0 %vm8128_vm0, %v11538_v38  ;;  %v7933_v0 = vld [vmem:[%s11385_s2 + $0x1c8] sm:$0xff]  }
 0x13b   : > { %v9476_v5 = vadd.f32 %v1338_v48, %v1047_v50  ;;  %v6828_v30 = vpop.f32.mrf.mxu0  ;;  %7186 = vmatprep.mubr.msk.bf16.mxu1 %vm8128_vm0, %v11538_v38  ;;  %7243 = vmatpush3.bf16.msra.mxu0 %v7923_v62  ;;  %v7925_v48 = vld [vmem:[%s11385_s2 + $0x188] sm:$0xff]  }
 0x13c   : > { %v6904_v39 = vpop.f32.mrf.mxu1  ;;  %7244 = vmatprep.subr.bf16.mxu0 %v11538_v38  ;;  %7319 = vmatpush3.bf16.msra.mxu1 %v7931_v57 }
 0x13d   : > { %v1050_v3 = vpop.f32.mrf.mxu0  ;;  %7320 = vmatprep.subr.bf16.mxu1 %v11538_v38  ;;  %v11624_v39 = vld [vmem:[#allocation16_spill] sm:$0xff] }
 0x13e   : > { %v1341_v50 = vpop.f32.mrf.mxu1  ;;  %v11626_v6 = vcombine.low %v11624_v39, %v11625_v34 }
 0x13f   : > { %v9490_v62 = vadd.f32 %v1341_v50, %v1050_v3  ;;  %v6829_v49 = vpop.f32.mrf.mxu0  ;;  %7245 = vmatpush3.bf16.msra.mxu0 %v7924_v36 }
 0x140   : > { %v6905_v57 = vpop.f32.mrf.mxu1  ;;  %7246 = vmatprep.subr.bf16.mxu0 %v11538_v38  ;;  %7321 = vmatpush3.bf16.msra.mxu1 %v7932_v58  ;;  %v7930_v58 = vld [vmem:[%s11385_s2 + $0x180] sm:$0xff]   ;;  %v6028_v49 = vcombine.low %v8929_v54, %v8933_v27 }
 0x141   : > { %v1055_v30 = vpop.f32.mrf.mxu0  ;;  %7111 = vmatmul.mubr.bf16.gmra.mxu0 %v11626_v6  ;;  %7322 = vmatprep.subr.bf16.mxu1 %v11538_v38  ;;  %v7934_v6 = vld [vmem:[%s11385_s2 + $0x1c0] sm:$0xff]  }
 0x142   : > { %v1346_v36 = vpop.f32.mrf.mxu1  ;;  %7187 = vmatmul.mubr.bf16.gmra.mxu1 %v6027_v41  ;;  %7114 = vmatprep.mubr.msk.bf16.mxu0 %vm8128_vm0, %v11538_v38 }
 0x143   : > { %v9505_v3 = vadd.f32 %v1346_v36, %v1055_v30  ;;  %v6832_v50 = vpop.f32.mrf.mxu0  ;;  %7190 = vmatprep.mubr.msk.bf16.mxu1 %vm8128_vm0, %v11538_v38  ;;  %7247 = vmatpush3.bf16.msra.mxu0 %v7925_v48  ;;  %v11627_v36 = vld [vmem:[#allocation19_spill] sm:$0xff] }
 0x144   : > { %v6908_v34 = vpop.f32.mrf.mxu1  ;;  %7248 = vmatprep.subr.bf16.mxu0 %v11538_v38  ;;  %7323 = vmatpush3.bf16.msra.mxu1 %v7933_v0  ;;  %v11628_v50 = vld [vmem:[#allocation20_spill] sm:$0xff] }
 0x145   : > { %v1058_v41 = vpop.f32.mrf.mxu0  ;;  %7324 = vmatprep.subr.bf16.mxu1 %v11538_v38  ;;  %v11629_v34 = vcombine.low %v11627_v36, %v11628_v50  ;;  %v11630_v50 = vld [vmem:[#allocation22_spill] sm:$0xff] }
 0x146   : > { %v1349_v57 = vpop.f32.mrf.mxu1 }
 0x147   : > { %v9519_v48 = vadd.f32 %v1349_v57, %v1058_v41  ;;  %v6833_v30 = vpop.f32.mrf.mxu0  ;;  %7249 = vmatpush3.bf16.msra.mxu0 %v7930_v58 }
 0x148   : > { %v6909_v39 = vpop.f32.mrf.mxu1  ;;  %7325 = vmatpush3.bf16.msra.mxu1 %v7934_v6  ;;  %7386 = vmatprep.subr.bf16.mxu0 %v11538_v38 }
 0x149   : > { %v1063_v0 = vpop.f32.mrf.mxu0  ;;  %7115 = vmatmul.mubr.bf16.gmra.mxu0 %v11629_v34  ;;  %v11631_v34 = vld [vmem:[#allocation23_spill] sm:$0xff] }
 0x14a   : > { %v1354_v16 = vpop.f32.mrf.mxu1  ;;  %7191 = vmatmul.mubr.bf16.gmra.mxu1 %v6028_v49  ;;  %7118 = vmatprep.mubr.msk.bf16.mxu0 %vm8128_vm0, %v11538_v38  ;;  %v11632_v49 = vcombine.low %v11630_v50, %v11631_v34 }
 0x14b   : > { %v9527_v54 = vadd.f32 %v1354_v16, %v1063_v0  ;;  %v6836_v41 = vpop.f32.mrf.mxu0  ;;  %7194 = vmatprep.mubr.msk.bf16.mxu1 %vm8128_vm0, %v11538_v38  ;;  %v11633_v16 = vcombine.low %v8942_v31, %v8952_v37 }
 0x14c   : > { %v6912_v58 = vpop.f32.mrf.mxu1 }
 0x14d   : > { %v1066_v6 = vpop.f32.mrf.mxu0 }
 0x14e   : > { %v1357_v57 = vpop.f32.mrf.mxu1 }
 0x14f   : > { %v9531_v30 = vadd.f32 %v1357_v57, %v1066_v6  ;;  %v6837_v39 = vpop.f32.mrf.mxu0  ;;  %v6030_v57 = vcombine.low %v8956_v60, %v8974_v47  ;;  %v11638_v47 = vld [vmem:[#allocation29_spill] sm:$0xff] }
 0x150   : > { %v6913_v27 = vpop.f32.mrf.mxu1 }
 0x151   : > { %v1071_v36 = vpop.f32.mrf.mxu0  ;;  %7119 = vmatmul.mubr.bf16.gmra.mxu0 %v11632_v49  ;;  %v11634_v49 = vld [vmem:[#allocation24_spill] sm:$0xff] }
 0x152   : > { %v1362_v61 = vpop.f32.mrf.mxu1  ;;  %7195 = vmatmul.mubr.bf16.gmra.mxu1 %v11633_v16  ;;  %7122 = vmatprep.mubr.msk.bf16.mxu0 %vm8128_vm0, %v11538_v38  ;;  %v11635_v16 = vld [vmem:[#allocation25_spill] sm:$0xff] }
 0x153   : > { %v9541_v0 = vadd.f32 %v1362_v61, %v1071_v36  ;;  %v6840_v41 = vpop.f32.mrf.mxu0  ;;  %7198 = vmatprep.mubr.msk.bf16.mxu1 %vm8128_vm0, %v11538_v38  ;;  %v11636_v31 = vcombine.low %v11634_v49, %v11635_v16  ;;  %v11637_v16 = vld [vmem:[#allocation28_spill] sm:$0xff] }
 0x154   : > { %v6916_v27 = vpop.f32.mrf.mxu1  ;;  %v11639_v60 = vcombine.low %v11637_v16, %v11638_v47  ;;  %v11641_v16 = vld [vmem:[#allocation33_spill] sm:$0xff] }
 0x155   : > { %v1074_v58 = vpop.f32.mrf.mxu0 }
 0x156   : > { %v1365_v6 = vpop.f32.mrf.mxu1 }
 0x157   : > { %v9547_v39 = vadd.f32 %v1365_v6, %v1074_v58  ;;  %v6841_v50 = vpop.f32.mrf.mxu0  ;;  %v6031_v6 = vcombine.low %v8982_v32, %v8986_v51 }
 0x158   : > { %v6917_v37 = vpop.f32.mrf.mxu1 }
 0x159   : > { %v1079_v34 = vpop.f32.mrf.mxu0  ;;  %7123 = vmatmul.mubr.bf16.gmra.mxu0 %v11636_v31 }
 0x15a   : > { %v1370_v61 = vpop.f32.mrf.mxu1  ;;  %7199 = vmatmul.mubr.bf16.gmra.mxu1 %v6030_v57  ;;  %7126 = vmatprep.mubr.msk.bf16.mxu0 %vm8128_vm0, %v11538_v38 }
 0x15b   : > { %v9554_v36 = vadd.f32 %v1370_v61, %v1079_v34  ;;  %v6844_v41 = vpop.f32.mrf.mxu0  ;;  %7202 = vmatprep.mubr.msk.bf16.mxu1 %vm8128_vm0, %v11538_v38 }
 0x15c   : > { %v6920_v27 = vpop.f32.mrf.mxu1 }
 0x15d   : > { %v1082_v58 = vpop.f32.mrf.mxu0 }
 0x15e   : > { %v1373_v50 = vpop.f32.mrf.mxu1 }
 0x15f   : > { %v9560_v37 = vadd.f32 %v1373_v50, %v1082_v58  ;;  %v6845_v31 = vpop.f32.mrf.mxu0 }
 0x160   : > { %v6921_v49 = vpop.f32.mrf.mxu1 }
 0x161   : > { %v1087_v57 = vpop.f32.mrf.mxu0  ;;  %7127 = vmatmul.mubr.bf16.gmra.mxu0 %v11639_v60  ;;  %v11640_v60 = vld [vmem:[#allocation32_spill] sm:$0xff] }
 0x162   : > { %v1378_v34 = vpop.f32.mrf.mxu1  ;;  %7203 = vmatmul.mubr.bf16.gmra.mxu1 %v6031_v6  ;;  %7130 = vmatprep.mubr.msk.bf16.mxu0 %vm8128_vm0, %v11538_v38  ;;  %v11642_v6 = vcombine.low %v11640_v60, %v11641_v16 }
 0x163   : > { %v9567_v61 = vadd.f32 %v1378_v34, %v1087_v57  ;;  %v6848_v41 = vpop.f32.mrf.mxu0  ;;  %7206 = vmatprep.mubr.msk.bf16.mxu1 %vm8128_vm0, %v11538_v38  ;;  %v11643_v57 = vcombine.low %v8992_v44, %v9003_v56 }
 0x164   : > { %v6924_v32 = vpop.f32.mrf.mxu1 }
 0x165   : > { %v1090_v27 = vpop.f32.mrf.mxu0 }
 0x166   : > { %v1381_v58 = vpop.f32.mrf.mxu1 }
 0x167   : > { %v9571_v50 = vadd.f32 %v1381_v58, %v1090_v27  ;;  %v6849_v31 = vpop.f32.mrf.mxu0 }
 0x168   : > { %v6925_v49 = vpop.f32.mrf.mxu1  ;;  %v6033_v31 = vcombine.low %v9010_v22, %v9022_v19  ;;  %v11647_v19 = vld [vmem:[#allocation39_spill] sm:$0xff] }
 0x169   : > { %v1095_v47 = vpop.f32.mrf.mxu0  ;;  %7131 = vmatmul.mubr.bf16.gmra.mxu0 %v11642_v6  ;;  %v11644_v6 = vld [vmem:[#allocation36_spill] sm:$0xff] }
 0x16a   : > { %v1386_v51 = vpop.f32.mrf.mxu1  ;;  %7207 = vmatmul.mubr.bf16.gmra.mxu1 %v11643_v57  ;;  %7134 = vmatprep.mubr.msk.bf16.mxu0 %vm8128_vm0, %v11538_v38  ;;  %v11645_v57 = vld [vmem:[#allocation37_spill] sm:$0xff] }
 0x16b   : > { %v9581_v34 = vadd.f32 %v1386_v51, %v1095_v47  ;;  %v6852_v41 = vpop.f32.mrf.mxu0  ;;  %7210 = vmatprep.mubr.msk.bf16.mxu1 %vm8128_vm0, %v11538_v38  ;;  %v11646_v44 = vcombine.low %v11644_v6, %v11645_v57  ;;  %v2099_v6 = vshrl.u32 %v9359_v11, 16  ;;  %v2102_v57 = vshll.u32 %v9359_v11, 16 }
 0x16c   : > { %v6928_v32 = vpop.f32.mrf.mxu1 }
 0x16d   : > { %v1098_v27 = vpop.f32.mrf.mxu0 }
 0x16e   : > { %v1389_v58 = vpop.f32.mrf.mxu1 }
 0x16f   : > { %v9587_v49 = vadd.f32 %v1389_v58, %v1098_v27  ;;  %v6853_v60 = vpop.f32.mrf.mxu0 }
 0x170   : > { %v6929_v56 = vpop.f32.mrf.mxu1  ;;  %v6034_v60 = vcombine.low %v9026_v26, %v11607_v17 }
 0x171   : > { %v1665_v16 = vpop.f32.mrf.mxu0  ;;  %7135 = vmatmul.mubr.bf16.gmra.mxu0 %v11646_v44 }
 0x172   : > { %v1784_v51 = vadd.f32 %v1665_v16, %v9310_v14  ;;  %v1949_v47 = vpop.f32.mrf.mxu1  ;;  %7211 = vmatmul.mubr.bf16.gmra.mxu1 %v6033_v31  ;;  %7138 = vmatprep.mubr.msk.bf16.mxu0 %vm8128_vm0, %v11538_v38 }
 0x173   : > { %v6948_v41 = vpop.f32.mrf.mxu0  ;;  %7214 = vmatprep.mubr.msk.bf16.mxu1 %vm8128_vm0, %v11538_v38 }
 0x174   : > { %v9597_v32 = vadd.f32 %v1949_v47, %v1784_v51  ;;  %v7024_v27 = vpop.f32.mrf.mxu1  ;;  %v11648_v51 = vld [vmem:[#allocation40_spill] sm:$0xff] }
 0x175   : > { %v1668_v58 = vpop.f32.mrf.mxu0  ;;  %v11649_v47 = vcombine.low %v11647_v19, %v11648_v51 }
 0x176   : > { %v1785_v44 = vadd.f32 %v1668_v58, %v9318_v55  ;;  %v1952_v56 = vpop.f32.mrf.mxu1 }
 0x177   : > { %v6949_v14 = vpop.f32.mrf.mxu0 }
 0x178   : > { %v9602_v16 = vadd.f32 %v1952_v56, %v1785_v44  ;;  %v7025_v31 = vpop.f32.mrf.mxu1  ;;  %v2101_v44 = vrot.slane %v2099_v6, 4  ;;  %v2104_v56 = vrot.slane %v2102_v57, 5 }
 0x179   : > { %v1673_v41 = vpop.f32.mrf.mxu0  ;;  %7139 = vmatmul.mubr.bf16.gmra.mxu0 %v11649_v47 }
 0x17a   : > { %v1786_v27 = vadd.f32 %v1673_v41, %v9326_v28  ;;  %v1957_v22 = vpop.f32.mrf.mxu1  ;;  %7215 = vmatmul.mubr.bf16.gmra.mxu1 %v6034_v60  ;;  %7142 = vmatprep.mubr.msk.bf16.mxu0 %vm8128_vm0, %v11538_v38  ;;  %v6035_v28 = vcombine.low %v9043_v13, %v11610_v52  ;;  %v2108_v41 = vshll.u32 %v9377_v24, 16  ;;  %v2118_v52 = vshll.u32 %v9384_v18, 16 }
 0x17b   : > { %v6952_v26 = vpop.f32.mrf.mxu0  ;;  %7218 = vmatprep.mubr.msk.bf16.mxu1 %vm8128_vm0, %v11538_v38 }
 0x17c   : > { %v9614_v55 = vadd.f32 %v1957_v22, %v1786_v27  ;;  %v7028_v58 = vpop.f32.mrf.mxu1  ;;  %v2105_v26 = vor.u32 %v2104_v56, %v2101_v44  ;;  %v11650_v22 = vld [vmem:[#allocation41_spill] sm:$0xff] }
 0x17d   : > { %v1676_v14 = vpop.f32.mrf.mxu0  ;;  %v11651_v27 = vcombine.low %v11650_v22, %v8812_v43  ;;  %v2122_v58 = vshrl.u32 %v9384_v18, 16  ;;  %v2110_v43 = vrot.slane %v2108_v41, 5  ;;  %v460_v41 = vld [vmem:[%s8669_s17 + $0x2c] sm:$0xf] }
 0x17e   : > { %v1787_v19 = vadd.f32 %v1676_v14, %v9334_v12  ;;  %v1960_v31 = vpop.f32.mrf.mxu1  ;;  %v2112_v12 = vshrl.u32 %v9377_v24, 16 }
 0x17f   : > { %v6953_v60 = vpop.f32.mrf.mxu0 }
 0x180   : > { %v9620_v51 = vadd.f32 %v1960_v31, %v1787_v19  ;;  %v7029_v47 = vpop.f32.mrf.mxu1  ;;  %v6036_v19 = vcombine.low %v9070_v59, %v9091_v9  ;;  %v6007_v31 = vrot.slane %v9359_v11, 9  ;;  %v2114_v22 = vrot.slane %v2112_v12, 4  ;;  %v11653_v59 = vld [vmem:[#allocation44_spill] sm:$0xff]  ;;  %v11654_v11 = vld [vmem:[#allocation45_spill] sm:$0xff] }
 0x181   : > { %v1681_v17 = vpop.f32.mrf.mxu0  ;;  %7143 = vmatmul.mubr.bf16.gmra.mxu0 %v11651_v27  ;;  %v2120_v27 = vrot.slane %v2118_v52, 5  ;;  %v11655_v45 = vcombine.low %v11653_v59, %v11654_v11  ;;  %v2419_v59 = vrot.slane %v9384_v18, 5  ;;  %v2422_v18 = vrot.slane %v460_v41, 5 }
 0x182   : > { %v1788_v6 = vadd.f32 %v1681_v17, %v9342_v35  ;;  %v1965_v57 = vpop.f32.mrf.mxu1  ;;  %7219 = vmatmul.mubr.bf16.gmra.mxu1 %v6035_v28  ;;  %7146 = vmatprep.mubr.msk.bf16.mxu0 %vm8128_vm0, %v11538_v38  ;;  %v2106_v17 = vrot.slane %v2105_v26, 4  ;;  %v2416_v28 = vrot.slane %v9377_v24, 5  ;;  %v2115_v12 = vor.u32 %v2114_v22, %v2110_v43 }
 0x183   : > { %v6956_v14 = vpop.f32.mrf.mxu0  ;;  %7222 = vmatprep.mubr.msk.bf16.mxu1 %vm8128_vm0, %v11538_v38 }
 0x184   : > { %v9633_v44 = vadd.f32 %v1965_v57, %v1788_v6  ;;  %v7032_v35 = vpop.f32.mrf.mxu1  ;;  %v2124_v14 = vrot.slane %v2122_v58, 4  ;;  %v2128_v58 = vshll.u32 %v460_v41, 16  ;;  %v2418_v11 = vrot.slane %v2416_v28, 4 }
 0x185   : > { %v1684_v56 = vpop.f32.mrf.mxu0  ;;  %v9645_v35 = vsel %vm8349_vm3, %v2106_v17, %v2110_v43 }
 0x186   : > { %v1789_v60 = vadd.f32 %v1684_v56, %v9350_v63  ;;  %v1968_v47 = vpop.f32.mrf.mxu1  ;;  %v9652_v63 = vsel %vm8857_vm6, %v6007_v31, %v2416_v28  ;;  %v2125_v52 = vor.u32 %v2124_v14, %v2120_v27  ;;  %v11657_v31 = vld [vmem:[#allocation74_spill] sm:$0xff]  ;;  %v2130_v14 = vrot.slane %v2128_v58, 5 }
 0x187   : > { %v6957_v13 = vpop.f32.mrf.mxu0  ;;  %11656 = vst [vmem:[#allocation10_spill] sm:$0xff] %v9652_v63 }
 0x188   : > { %v9641_v6 = vadd.f32 %v1968_v47, %v1789_v60  ;;  %v7033_v57 = vpop.f32.mrf.mxu1  ;;  %v2116_v47 = vrot.slane %v2115_v12, 4  ;;  %v2126_v22 = vrot.slane %v2125_v52, 4 }
 0x189   : > { %v1689_v9 = vpop.f32.mrf.mxu0  ;;  %7147 = vmatmul.mubr.bf16.gmra.mxu0 %v11655_v45 }
 0x18a   : > { %v1790_v24 = vadd.f32 %v1689_v9, %v9361_v29  ;;  %v1973_v13 = vpop.f32.mrf.mxu1  ;;  %7223 = vmatmul.mubr.bf16.gmra.mxu1 %v6036_v19  ;;  %7150 = vmatprep.mubr.msk.bf16.mxu0 %vm8128_vm0, %v11538_v38  ;;  %v5997_v9 = vcombine.low %v11657_v31, %v9645_v35  ;;  %v6037_v19 = vcombine.low %v9095_v53, %v9652_v63 }
 0x18b   : > { %v6960_v17 = vpop.f32.mrf.mxu0  ;;  %7226 = vmatprep.mubr.msk.bf16.mxu1 %vm8128_vm0, %v11538_v38  ;;  %v9674_v53 = vsel %vm8349_vm3, %v2116_v47, %v2120_v27 }
 0x18c   : > { %v9660_v45 = vadd.f32 %v1973_v13, %v1790_v24  ;;  %v7036_v56 = vpop.f32.mrf.mxu1  ;;  %v2421_v17 = vrot.slane %v2419_v59, 4 }
 0x18d   : > { %v1692_v29 = vpop.f32.mrf.mxu0 }
 0x18e   : > { %v1791_v43 = vadd.f32 %v1692_v29, %v9371_v8  ;;  %v1976_v60 = vpop.f32.mrf.mxu1  ;;  %v9678_v8 = vsel %vm8349_vm3, %v2126_v22, %v2130_v14  ;;  %v9688_v41 = vsel %vm8857_vm6, %v2421_v17, %v2422_v18 }
 0x18f   : > { %v6961_v57 = vpop.f32.mrf.mxu0  ;;  %11659 = vst [vmem:[#allocation12_spill] sm:$0xff] %v9688_v41  ;;  %v5998_v58 = vcombine.low %v9674_v53, %v9678_v8 }
 0x190   : > { %v9667_v24 = vadd.f32 %v1976_v60, %v1791_v43  ;;  %v7037_v13 = vpop.f32.mrf.mxu1 }
 0x191   : > { %v1697_v56 = vpop.f32.mrf.mxu0  ;;  %7151 = vmatmul.mubr.bf16.gmra.mxu0 %v5997_v9 }
 0x192   : > { %v1792_v31 = vadd.f32 %v1697_v56, %v9379_v25  ;;  %v1981_v2 = vpop.f32.mrf.mxu1  ;;  %7227 = vmatmul.mubr.bf16.gmra.mxu1 %v6037_v19  ;;  %7154 = vmatprep.mubr.msk.bf16.mxu0 %vm8128_vm0, %v11538_v38  ;;  %v9684_v25 = vsel %vm8857_vm6, %v2418_v11, %v2419_v59 }
 0x193   : > { %v6964_v28 = vpop.f32.mrf.mxu0  ;;  %7230 = vmatprep.mubr.msk.bf16.mxu1 %vm8128_vm0, %v11538_v38  ;;  %11658 = vst [vmem:[#allocation11_spill] sm:$0xff] %v9684_v25  ;;  %v6038_v19 = vcombine.low %v9684_v25, %v9688_v41 }
 0x194   : > { %v9690_v12 = vadd.f32 %v1981_v2, %v1792_v31  ;;  %v7040_v27 = vpop.f32.mrf.mxu1 }
 0x195   : > { %v1700_v52 = vpop.f32.mrf.mxu0  ;;  %v11660_v27 = vld [vmem:[#allocation18_spill] sm:$0xff] }
 0x196   : > { %v1793_v9 = vadd.f32 %v1700_v52, %v9392_v20  ;;  %v1984_v29 = vpop.f32.mrf.mxu1 }
 0x197   : > { %v6965_v43 = vpop.f32.mrf.mxu0 }
 0x198   : > { %v9697_v59 = vadd.f32 %v1984_v29, %v1793_v9  ;;  %v7041_v60 = vpop.f32.mrf.mxu1  ;;  %v11661_v9 = vld [vmem:[#allocation21_spill] sm:$0xff] }
 0x199   : > { %v1705_v47 = vpop.f32.mrf.mxu0  ;;  %7155 = vmatmul.mubr.bf16.gmra.mxu0 %v5998_v58 }
 0x19a   : > { %v1794_v2 = vadd.f32 %v1705_v47, %v9397_v1  ;;  %v1989_v22 = vpop.f32.mrf.mxu1  ;;  %7231 = vmatmul.mubr.bf16.gmra.mxu1 %v6038_v19  ;;  %7250 = vmatprep.mubr.msk.bf16.mxu0 %vm8128_vm0, %v11538_v38  ;;  %v7935_v1 = vld [vmem:[%s11385_s2 + $0x238] sm:$0xff]  }
 0x19b   : > { %v6968_v14 = vpop.f32.mrf.mxu0  ;;  %7326 = vmatprep.mubr.msk.bf16.mxu1 %vm8128_vm0, %v11538_v38 }
 0x19c   : > { %v9704_v20 = vadd.f32 %v1989_v22, %v1794_v2  ;;  %v7044_v57 = vpop.f32.mrf.mxu1  ;;  %v7937_v22 = vld [vmem:[%s11385_s2 + $0x228] sm:$0xff]  }
 0x19d   : > { %v1708_v11 = vpop.f32.mrf.mxu0 }
 0x19e   : > { %v1795_v17 = vadd.f32 %v1708_v11, %v9404_v46  ;;  %v1992_v18 = vpop.f32.mrf.mxu1  ;;  %v7936_v46 = vld [vmem:[%s11385_s2 + $0x230] sm:$0xff]  }
 0x19f   : > { %v6969_v13 = vpop.f32.mrf.mxu0 }
 0x1a0   : > { %v9710_v56 = vadd.f32 %v1992_v18, %v1795_v17  ;;  %v7045_v31 = vpop.f32.mrf.mxu1  ;;  %v11662_v17 = vld [vmem:[#allocation27_spill] sm:$0xff]  ;;  %v11663_v13 = vld [vmem:[#allocation26_spill] sm:$0xff] }
 0x1a1   : > { %v1713_v28 = vpop.f32.mrf.mxu0  ;;  %7251 = vmatmul.mubr.bf16.vlgmr.msra.gmra.mxu0 %v11660_v27  ;;  %v7938_v31 = vld [vmem:[%s11385_s2 + $0x220] sm:$0xff]  }
 0x1a2   : > { %v1796_v52 = vadd.f32 %v1713_v28, %v9418_v7  ;;  %7387 = vmatpush3.bf16.msra.mxu0 %v7935_v1  ;;  %v1997_v58 = vpop.f32.mrf.mxu1  ;;  %7327 = vmatmul.mubr.bf16.vlgmr.msra.gmra.mxu1 %v11661_v9 }
 0x1a3   : > { %v6972_v29 = vpop.f32.mrf.mxu0  ;;  %7254 = vmatprep.mubr.msk.bf16.mxu0 %vm8128_vm0, %v11538_v38  ;;  %7330 = vmatprep.mubr.msk.bf16.mxu1 %vm8128_vm0, %v11538_v38 }
 0x1a4   : > { %v9722_v19 = vadd.f32 %v1997_v58, %v1796_v52  ;;  %v7048_v43 = vpop.f32.mrf.mxu1  ;;  %7388 = vmatprep.subr.bf16.mxu0 %v11538_v38 }
 0x1a5   : > { %v1716_v7 = vpop.f32.mrf.mxu0 }
 0x1a6   : > { %v1797_v60 = vadd.f32 %v1716_v7, %v9431_v23  ;;  %v2000_v47 = vpop.f32.mrf.mxu1  ;;  %7389 = vmatpush3.bf16.msra.mxu0 %v7936_v46  ;;  %v7939_v46 = vld [vmem:[%s11385_s2 + $0x218] sm:$0xff]  }
 0x1a7   : > { %v6973_v2 = vpop.f32.mrf.mxu0  ;;  %7390 = vmatprep.subr.bf16.mxu0 %v11538_v38 }
 0x1a8   : > { %v9730_v14 = vadd.f32 %v2000_v47, %v1797_v60  ;;  %v7049_v57 = vpop.f32.mrf.mxu1  ;;  %v11664_v60 = vld [vmem:[#allocation31_spill] sm:$0xff] }
 0x1a9   : > { %v1721_v11 = vpop.f32.mrf.mxu0  ;;  %7255 = vmatmul.mubr.bf16.gmra.mxu0 %v11662_v17  ;;  %v7940_v57 = vld [vmem:[%s11385_s2 + $0x210] sm:$0xff]  }
 0x1aa   : > { %v1798_v18 = vadd.f32 %v1721_v11, %v9446_v4  ;;  %v2005_v1 = vpop.f32.mrf.mxu1  ;;  %7331 = vmatmul.mubr.bf16.gmra.mxu1 %v11663_v13  ;;  %7258 = vmatprep.mubr.msk.bf16.mxu0 %vm8128_vm0, %v11538_v38 }
 0x1ab   : > { %v6976_v23 = vpop.f32.mrf.mxu0  ;;  %7334 = vmatprep.mubr.msk.bf16.mxu1 %vm8128_vm0, %v11538_v38  ;;  %7391 = vmatpush3.bf16.msra.mxu0 %v7937_v22  ;;  %v11665_v22 = vld [vmem:[#allocation30_spill] sm:$0xff] }
 0x1ac   : > { %v9742_v28 = vadd.f32 %v2005_v1, %v1798_v18  ;;  %v7052_v27 = vpop.f32.mrf.mxu1  ;;  %7392 = vmatprep.subr.bf16.mxu0 %v11538_v38  ;;  %v7941_v23 = vld [vmem:[%s11385_s2 + $0x208] sm:$0xff]  }
 0x1ad   : > { %v1724_v4 = vpop.f32.mrf.mxu0 }
 0x1ae   : > { %v1799_v52 = vadd.f32 %v1724_v4, %v9458_v40  ;;  %v2008_v58 = vpop.f32.mrf.mxu1 }
 0x1af   : > { %v6977_v9 = vpop.f32.mrf.mxu0  ;;  %7393 = vmatpush3.bf16.msra.mxu0 %v7938_v31 }
 0x1b0   : > { %v9749_v29 = vadd.f32 %v2008_v58, %v1799_v52  ;;  %v7053_v43 = vpop.f32.mrf.mxu1  ;;  %7394 = vmatprep.subr.bf16.mxu0 %v11538_v38  ;;  %v11666_v52 = vld [vmem:[#allocation35_spill] sm:$0xff] }
 0x1b1   : > { %v1729_v7 = vpop.f32.mrf.mxu0  ;;  %7259 = vmatmul.mubr.bf16.gmra.mxu0 %v11664_v60  ;;  %v7944_v43 = vld [vmem:[%s11385_s2 + $0x200] sm:$0xff]  }
 0x1b2   : > { %v1800_v47 = vadd.f32 %v1729_v7, %v9476_v5  ;;  %v2013_v2 = vpop.f32.mrf.mxu1  ;;  %7335 = vmatmul.mubr.bf16.gmra.mxu1 %v11665_v22  ;;  %7262 = vmatprep.mubr.msk.bf16.mxu0 %vm8128_vm0, %v11538_v38 }
 0x1b3   : > { %v6980_v40 = vpop.f32.mrf.mxu0  ;;  %7338 = vmatprep.mubr.msk.bf16.mxu1 %vm8128_vm0, %v11538_v38  ;;  %7395 = vmatpush3.bf16.msra.mxu0 %v7939_v46  ;;  %v11667_v46 = vld [vmem:[#allocation38_spill] sm:$0xff] }
 0x1b4   : > { %v9762_v11 = vadd.f32 %v2013_v2, %v1800_v47  ;;  %v7056_v17 = vpop.f32.mrf.mxu1  ;;  %7396 = vmatprep.subr.bf16.mxu0 %v11538_v38 }
 0x1b5   : > { %v1732_v5 = vpop.f32.mrf.mxu0 }
 0x1b6   : > { %v1801_v18 = vadd.f32 %v1732_v5, %v9490_v62  ;;  %v2016_v1 = vpop.f32.mrf.mxu1  ;;  %v11668_v5 = vld [vmem:[#allocation43_spill] sm:$0xff] }
 0x1b7   : > { %v6981_v13 = vpop.f32.mrf.mxu0  ;;  %7397 = vmatpush3.bf16.msra.mxu0 %v7940_v57 }
 0x1b8   : > { %v9769_v31 = vadd.f32 %v2016_v1, %v1801_v18  ;;  %v7057_v27 = vpop.f32.mrf.mxu1  ;;  %7398 = vmatprep.subr.bf16.mxu0 %v11538_v38  ;;  %v11669_v13 = vld [vmem:[#allocation42_spill] sm:$0xff] }
 0x1b9   : > { %v1737_v4 = vpop.f32.mrf.mxu0  ;;  %7263 = vmatmul.mubr.bf16.gmra.mxu0 %v11666_v52 }
 0x1ba   : > { %v1802_v58 = vadd.f32 %v1737_v4, %v9505_v3  ;;  %v2021_v9 = vpop.f32.mrf.mxu1  ;;  %7339 = vmatmul.mubr.bf16.gmra.mxu1 %v11667_v46  ;;  %7266 = vmatprep.mubr.msk.bf16.mxu0 %vm8128_vm0, %v11538_v38 }
 0x1bb   : > { %v6984_v62 = vpop.f32.mrf.mxu0  ;;  %7342 = vmatprep.mubr.msk.bf16.mxu1 %vm8128_vm0, %v11538_v38  ;;  %7399 = vmatpush3.bf16.msra.mxu0 %v7941_v23 }
 0x1bc   : > { %v9782_v7 = vadd.f32 %v2021_v9, %v1802_v58  ;;  %v7060_v60 = vpop.f32.mrf.mxu1  ;;  %7400 = vmatprep.subr.bf16.mxu0 %v11538_v38 }
 0x1bd   : > { %v1740_v3 = vpop.f32.mrf.mxu0 }
 0x1be   : > { %v1803_v47 = vadd.f32 %v1740_v3, %v9519_v48  ;;  %v2024_v2 = vpop.f32.mrf.mxu1 }
 0x1bf   : > { %v6985_v22 = vpop.f32.mrf.mxu0  ;;  %7401 = vmatpush3.bf16.msra.mxu0 %v7944_v43  ;;  %v11670_v43 = vld [vmem:[#allocation47_spill] sm:$0xff] }
 0x1c0   : > { %v9786_v40 = vadd.f32 %v2024_v2, %v1803_v47  ;;  %v7061_v57 = vpop.f32.mrf.mxu1  ;;  %v11671_v47 = vld [vmem:[#allocation46_spill] sm:$0xff] }
 0x1c1   : > { %v1745_v17 = vpop.f32.mrf.mxu0  ;;  %7267 = vmatmul.mubr.bf16.gmra.mxu0 %v11668_v5 }
 0x1c2   : > { %v1804_v18 = vadd.f32 %v1745_v17, %v9527_v54  ;;  %v2029_v1 = vpop.f32.mrf.mxu1  ;;  %7343 = vmatmul.mubr.bf16.gmra.mxu1 %v11669_v13  ;;  %7270 = vmatprep.mubr.msk.bf16.mxu0 %vm8128_vm0, %v11538_v38 }
 0x1c3   : > { %v6988_v23 = vpop.f32.mrf.mxu0  ;;  %7346 = vmatprep.mubr.msk.bf16.mxu1 %vm8128_vm0, %v11538_v38 }
 0x1c4   : > { %v9795_v48 = vadd.f32 %v2029_v1, %v1804_v18  ;;  %v7064_v27 = vpop.f32.mrf.mxu1  ;;  %v11672_v23 = vld [vmem:[#allocation52_spill] sm:$0xff] }
 0x1c5   : > { %v1748_v4 = vpop.f32.mrf.mxu0 }
 0x1c6   : > { %v1805_v52 = vadd.f32 %v1748_v4, %v9531_v30  ;;  %v2032_v58 = vpop.f32.mrf.mxu1 }
 0x1c7   : > { %v6989_v9 = vpop.f32.mrf.mxu0 }
 0x1c8   : > { %v9798_v46 = vadd.f32 %v2032_v58, %v1805_v52  ;;  %v7065_v54 = vpop.f32.mrf.mxu1  ;;  %v11673_v52 = vld [vmem:[#allocation51_spill] sm:$0xff] }
 0x1c9   : > { %v1753_v62 = vpop.f32.mrf.mxu0  ;;  %7271 = vmatmul.mubr.bf16.gmra.mxu0 %v11670_v43 }
 0x1ca   : > { %v1806_v60 = vadd.f32 %v1753_v62, %v9541_v0  ;;  %v2037_v3 = vpop.f32.mrf.mxu1  ;;  %7347 = vmatmul.mubr.bf16.gmra.mxu1 %v11671_v47  ;;  %7274 = vmatprep.mubr.msk.bf16.mxu0 %vm8128_vm0, %v11538_v38 }
 0x1cb   : > { %v6992_v2 = vpop.f32.mrf.mxu0  ;;  %7350 = vmatprep.mubr.msk.bf16.mxu1 %vm8128_vm0, %v11538_v38 }
 0x1cc   : > { %v9807_v30 = vadd.f32 %v2037_v3, %v1806_v60  ;;  %v7068_v22 = vpop.f32.mrf.mxu1  ;;  %v11674_v2 = vld [vmem:[#allocation58_spill] sm:$0xff] }
 0x1cd   : > { %v1756_v57 = vpop.f32.mrf.mxu0 }
 0x1ce   : > { %v1807_v17 = vadd.f32 %v1756_v57, %v9547_v39  ;;  %v2040_v5 = vpop.f32.mrf.mxu1 }
 0x1cf   : > { %v6993_v18 = vpop.f32.mrf.mxu0 }
 0x1d0   : > { %v9810_v1 = vadd.f32 %v2040_v5, %v1807_v17  ;;  %v7069_v0 = vpop.f32.mrf.mxu1  ;;  %v11675_v17 = vld [vmem:[#allocation57_spill] sm:$0xff] }
 0x1d1   : > { %v1761_v13 = vpop.f32.mrf.mxu0  ;;  %7275 = vmatmul.mubr.bf16.gmra.mxu0 %v11672_v23 }
 0x1d2   : > { %v1808_v27 = vadd.f32 %v1761_v13, %v9554_v36  ;;  %v2045_v4 = vpop.f32.mrf.mxu1  ;;  %7351 = vmatmul.mubr.bf16.gmra.mxu1 %v11673_v52  ;;  %7278 = vmatprep.mubr.msk.bf16.mxu0 %vm8128_vm0, %v11538_v38 }
 0x1d3   : > { %v6996_v58 = vpop.f32.mrf.mxu0  ;;  %7354 = vmatprep.mubr.msk.bf16.mxu1 %vm8128_vm0, %v11538_v38 }
 0x1d4   : > { %v9819_v39 = vadd.f32 %v2045_v4, %v1808_v27  ;;  %v7072_v9 = vpop.f32.mrf.mxu1  ;;  %v11676_v58 = vld [vmem:[#allocation65_spill] sm:$0xff] }
 0x1d5   : > { %v1764_v54 = vpop.f32.mrf.mxu0 }
 0x1d6   : > { %v1809_v62 = vadd.f32 %v1764_v54, %v9560_v37  ;;  %v2048_v43 = vpop.f32.mrf.mxu1 }
 0x1d7   : > { %v6997_v60 = vpop.f32.mrf.mxu0 }
 0x1d8   : > { %v9822_v3 = vadd.f32 %v2048_v43, %v1809_v62  ;;  %v7073_v36 = vpop.f32.mrf.mxu1  ;;  %v11677_v62 = vld [vmem:[#allocation63_spill] sm:$0xff] }
 0x1d9   : > { %v1769_v47 = vpop.f32.mrf.mxu0  ;;  %7279 = vmatmul.mubr.bf16.gmra.mxu0 %v11674_v2 }
 0x1da   : > { %v1810_v22 = vadd.f32 %v1769_v47, %v9567_v61  ;;  %v2053_v57 = vpop.f32.mrf.mxu1  ;;  %7355 = vmatmul.mubr.bf16.gmra.mxu1 %v11675_v17  ;;  %7282 = vmatprep.mubr.msk.bf16.mxu0 %vm8128_vm0, %v11538_v38 }
 0x1db   : > { %v7000_v5 = vpop.f32.mrf.mxu0  ;;  %7358 = vmatprep.mubr.msk.bf16.mxu1 %vm8128_vm0, %v11538_v38 }
 0x1dc   : > { %v9831_v37 = vadd.f32 %v2053_v57, %v1810_v22  ;;  %v7076_v18 = vpop.f32.mrf.mxu1  ;;  %v11678_v5 = vld [vmem:[#allocation68_spill] sm:$0xff] }
 0x1dd   : > { %v1772_v0 = vpop.f32.mrf.mxu0 }
 0x1de   : > { %v1811_v13 = vadd.f32 %v1772_v0, %v9571_v50  ;;  %v2056_v23 = vpop.f32.mrf.mxu1 }
 0x1df   : > { %v7001_v27 = vpop.f32.mrf.mxu0 }
 0x1e0   : > { %v9834_v4 = vadd.f32 %v2056_v23, %v1811_v13  ;;  %v7077_v61 = vpop.f32.mrf.mxu1  ;;  %v11679_v13 = vld [vmem:[#allocation67_spill] sm:$0xff] }
 0x1e1   : > { %v1777_v52 = vpop.f32.mrf.mxu0  ;;  %7283 = vmatmul.mubr.bf16.gmra.mxu0 %v11676_v58 }
 0x1e2   : > { %v1812_v9 = vadd.f32 %v1777_v52, %v9581_v34  ;;  %v2061_v54 = vpop.f32.mrf.mxu1  ;;  %7359 = vmatmul.mubr.bf16.gmra.mxu1 %v11677_v62  ;;  %7286 = vmatprep.mubr.msk.bf16.mxu0 %vm8128_vm0, %v11538_v38 }
 0x1e3   : > { %v7004_v43 = vpop.f32.mrf.mxu0  ;;  %7362 = vmatprep.mubr.msk.bf16.mxu1 %vm8128_vm0, %v11538_v38 }
 0x1e4   : > { %v9843_v50 = vadd.f32 %v2061_v54, %v1812_v9  ;;  %v7080_v60 = vpop.f32.mrf.mxu1  ;;  %v9859_v54 = vld [vmem:[%s8669_s17 + $0x30] sm:$0xf] }
 0x1e5   : > { %v1780_v36 = vpop.f32.mrf.mxu0  ;;  %v11680_v60 = vld [vmem:[#allocation72_spill] sm:$0xff] }
 0x1e6   : > { %v1813_v47 = vadd.f32 %v1780_v36, %v9587_v49  ;;  %v2064_v2 = vpop.f32.mrf.mxu1 }
 0x1e7   : > { %v7005_v22 = vpop.f32.mrf.mxu0 }
 0x1e8   : > { %v9846_v57 = vadd.f32 %v2064_v2, %v1813_v47  ;;  %v7081_v34 = vpop.f32.mrf.mxu1  ;;  %v11681_v2 = vld [vmem:[#allocation71_spill] sm:$0xff]  ;;  %v2969_v22 = vshll.u32 %v9859_v54, 16 }
 0x1e9   : > { %v2264_v17 = vpop.f32.mrf.mxu0  ;;  %7287 = vmatmul.mubr.bf16.gmra.mxu0 %v11678_v5 }
 0x1ea   : > { %v2383_v18 = vadd.f32 %v2264_v17, %v9597_v32  ;;  %v2556_v0 = vpop.f32.mrf.mxu1  ;;  %7363 = vmatmul.mubr.bf16.gmra.mxu1 %v11679_v13  ;;  %7290 = vmatprep.mubr.msk.bf16.mxu0 %vm8128_vm0, %v11538_v38 }
 0x1eb   : > { %v7100_v23 = vpop.f32.mrf.mxu0  ;;  %7366 = vmatprep.mubr.msk.bf16.mxu1 %vm8128_vm0, %v11538_v38 }
 0x1ec   : > { %v9855_v49 = vadd.f32 %v2556_v0, %v2383_v18  ;;  %v7176_v27 = vpop.f32.mrf.mxu1  ;;  %v2971_v23 = vrot.slane %v2969_v22, 5 }
 0x1ed   : > { %v2267_v61 = vpop.f32.mrf.mxu0 }
 0x1ee   : > { %v2384_v52 = vadd.f32 %v2267_v61, %v9602_v16  ;;  %v2559_v58 = vpop.f32.mrf.mxu1  ;;  %v2966_v16 = vshrl.u32 %v9859_v54, 16 }
 0x1ef   : > { %v7101_v9 = vpop.f32.mrf.mxu0 }
 0x1f0   : > { %v9861_v32 = vadd.f32 %v2559_v58, %v2384_v52  ;;  %v7177_v62 = vpop.f32.mrf.mxu1  ;;  %v2968_v13 = vrot.slane %v2966_v16, 4  ;;  %v9878_v58 = vld [vmem:[%s8669_s17 + $0x34] sm:$0xf]  ;;  %v9881_v9 = vld [vmem:[%s8669_s17 + $0x38] sm:$0xf] }
 0x1f1   : > { %v2272_v43 = vpop.f32.mrf.mxu0  ;;  %7291 = vmatmul.mubr.bf16.gmra.mxu0 %v11680_v60  ;;  %v2975_v16 = vshll.u32 %v9878_v58, 16  ;;  %v2989_v22 = vshrl.u32 %v9881_v9, 16 }
 0x1f2   : > { %v2385_v36 = vadd.f32 %v2272_v43, %v9614_v55  ;;  %v2564_v47 = vpop.f32.mrf.mxu1  ;;  %7367 = vmatmul.mubr.bf16.gmra.mxu1 %v11681_v2  ;;  %7294 = vmatprep.mubr.msk.bf16.mxu0 %vm8128_vm0, %v11538_v38  ;;  %v11682_v43 = vld [vmem:[#allocation76_spill] sm:$0xff] }
 0x1f3   : > { %v7104_v34 = vpop.f32.mrf.mxu0  ;;  %7370 = vmatprep.mubr.msk.bf16.mxu1 %vm8128_vm0, %v11538_v38  ;;  %v2991_v63 = vrot.slane %v2989_v22, 4 }
 0x1f4   : > { %v9872_v17 = vadd.f32 %v2564_v47, %v2385_v36  ;;  %v7180_v5 = vpop.f32.mrf.mxu1  ;;  %v2972_v47 = vor.u32 %v2971_v23, %v2968_v13  ;;  %v2979_v34 = vshrl.u32 %v9878_v58, 16 }
 0x1f5   : > { %v2275_v55 = vpop.f32.mrf.mxu0  ;;  %v2985_v5 = vshll.u32 %v9881_v9, 16 }
 0x1f6   : > { %v2386_v18 = vadd.f32 %v2275_v55, %v9620_v51  ;;  %v2567_v0 = vpop.f32.mrf.mxu1  ;;  %v11683_v51 = vld [vmem:[#allocation75_spill] sm:$0xff]  ;;  %v2981_v41 = vrot.slane %v2979_v34, 4 }
 0x1f7   : > { %v7105_v27 = vpop.f32.mrf.mxu0  ;;  %v2987_v15 = vrot.slane %v2985_v5, 5 }
 0x1f8   : > { %v9875_v61 = vadd.f32 %v2567_v0, %v2386_v18  ;;  %v7181_v52 = vpop.f32.mrf.mxu1  ;;  %v8030_v0 = vld [vmem:[%s8669_s17 + $0x20] sm:$0xf]  ;;  %v8031_v27 = vld [vmem:[%s8669_s17 + $0x24] sm:$0xf] }
 0x1f9   : > { %v2280_v62 = vpop.f32.mrf.mxu0  ;;  %7295 = vmatmul.mubr.bf16.gmra.mxu0 %v11682_v43  ;;  %v6063_v13 = vcombine.low %v8030_v0, %v8031_v27  ;;  %v2973_v43 = vrot.slane %v2972_v47, 4 }
 0x1fa   : > { %v2387_v60 = vadd.f32 %v2280_v62, %v9633_v44  ;;  %v2572_v36 = vpop.f32.mrf.mxu1  ;;  %7371 = vmatmul.mubr.bf16.gmra.mxu1 %v11683_v51  ;;  %7298 = vmatprep.mubr.msk.bf16.mxu0 %vm8128_vm0, %v11538_v38  ;;  %v6090_v62 = vcombine.low %v9645_v35, %v9674_v53 }
 0x1fb   : > { %v7108_v2 = vpop.f32.mrf.mxu0  ;;  %7374 = vmatprep.mubr.msk.bf16.mxu1 %vm8128_vm0, %v11538_v38 }
 0x1fc   : > { %v9894_v44 = vadd.f32 %v2572_v36, %v2387_v60  ;;  %v7184_v55 = vpop.f32.mrf.mxu1  ;;  %v2977_v2 = vrot.slane %v2975_v16, 5  ;;  %v2992_v16 = vor.u32 %v2991_v63, %v2987_v15 }
 0x1fd   : > { %v2283_v18 = vpop.f32.mrf.mxu0  ;;  %v9904_v55 = vld [vmem:[%s8669_s17 + $0x3c] sm:$0xf] }
 0x1fe   : > { %v2388_v23 = vadd.f32 %v2283_v18, %v9641_v6  ;;  %v2575_v52 = vpop.f32.mrf.mxu1  ;;  %v2978_v53 = vsel %vm8349_vm3, %v2973_v43, %v2977_v2  ;;  %v2982_v47 = vor.u32 %v2981_v41, %v2977_v2  ;;  %v2995_v22 = vshll.u32 %v9904_v55, 16 }
 0x1ff   : > { %v7109_v51 = vpop.f32.mrf.mxu0 }
 0x200   : > { %v9901_v60 = vadd.f32 %v2575_v52, %v2388_v23  ;;  %v7185_v36 = vpop.f32.mrf.mxu1  ;;  %v6091_v23 = vcombine.low %v9678_v8, %v2978_v53  ;;  %v2993_v51 = vrot.slane %v2992_v16, 4  ;;  %v2997_v43 = vrot.slane %v2995_v22, 5 }
 0x201   : > { %v2288_v25 = vpop.f32.mrf.mxu0  ;;  %7299 = vmatmul.mubr.bf16.gmra.mxu0 %v6063_v13 }
 0x202   : > { %v2389_v6 = vadd.f32 %v2288_v25, %v9660_v45  ;;  %v2580_v18 = vpop.f32.mrf.mxu1  ;;  %7375 = vmatmul.mubr.bf16.gmra.mxu1 %v6090_v62  ;;  %7302 = vmatprep.mubr.msk.bf16.mxu0 %vm8128_vm0, %v11538_v38  ;;  %v8032_v25 = vld [vmem:[%s8669_s17 + $0x28] sm:$0xf]  ;;  %v2983_v62 = vrot.slane %v2982_v47, 4  ;;  %s6132_s17 = sadd.s32 4294967295, %s8262_s20  ;;  %s5694_s20 = sadd.s32 %s6424_s22, %s6413_s14 }
 0x203   : > { %v7112_v35 = vpop.f32.mrf.mxu0  ;;  %7378 = vmatprep.mubr.msk.bf16.mxu1 %vm8128_vm0, %v11538_v38  ;;  %v6064_v0 = vcombine.low %v8032_v25, %v9859_v54  ;;  %s6414_s30 = sshll.u32 %s5694_s20, 7 }
 0x204   : > { %v9914_v34 = vadd.f32 %v2580_v18, %v2389_v6  ;;  %v7188_v5 = vpop.f32.mrf.mxu1  ;;  %v2988_v8 = vsel %vm8349_vm3, %v2983_v62, %v2987_v15  ;;  %v2998_v18 = vsel %vm8349_vm3, %v2993_v51, %v2997_v43  ;;  %vm11493_vm3 = vsmask.f32 7424  ;;  %s11324_s13 = scalar_lea.hbm %s11391_s8, %s6414_s30 }
 0x205   : > { %v2291_v45 = vpop.f32.mrf.mxu0  ;;  %v6092_v5 = vcombine.low %v2988_v8, %v2998_v18 }
 0x206   : > { %v2390_v27 = vadd.f32 %v2291_v45, %v9667_v24  ;;  %v2583_v13 = vpop.f32.mrf.mxu1 }
 0x207   : > { %v7113_v52 = vpop.f32.mrf.mxu0 }
 0x208   : > { %v9920_v41 = vadd.f32 %v2583_v13, %v2390_v27  ;;  %v7189_v63 = vpop.f32.mrf.mxu1 }
 0x209   : > { %v2296_v2 = vpop.f32.mrf.mxu0  ;;  %7303 = vmatmul.mubr.bf16.gmra.mxu0 %v6064_v0 }
 0x20a   : > { %v2391_v36 = vadd.f32 %v2296_v2, %v9690_v12  ;;  %v2588_v6 = vpop.f32.mrf.mxu1  ;;  %7379 = vmatmul.mubr.bf16.gmra.mxu1 %v6091_v23  ;;  %7306 = vmatprep.mubr.msk.bf16.mxu0 %vm8128_vm0, %v11538_v38  ;;  %v6065_v12 = vcombine.low %v9878_v58, %v9881_v9 }
 0x20b   : > { %v7116_v24 = vpop.f32.mrf.mxu0  ;;  %7382 = vmatprep.mubr.msk.bf16.mxu1 %vm8128_vm0, %v11538_v38 }
 0x20c   : > { %v9931_v35 = vadd.f32 %v2588_v6, %v2391_v36  ;;  %v7192_v53 = vpop.f32.mrf.mxu1 }
 0x20d   : > { %v2299_v47 = vpop.f32.mrf.mxu0 }
 0x20e   : > { %v2392_v16 = vadd.f32 %v2299_v47, %v9697_v59  ;;  %v2591_v22 = vpop.f32.mrf.mxu1 }
 0x20f   : > { %v7117_v45 = vpop.f32.mrf.mxu0 }
 0x210   : > { %v9936_v25 = vadd.f32 %v2591_v22, %v2392_v16  ;;  %v7193_v0 = vpop.f32.mrf.mxu1 }
 0x211   : > { %v2304_v27 = vpop.f32.mrf.mxu0  ;;  %7307 = vmatmul.mubr.bf16.gmra.mxu0 %v6065_v12 }
 0x212   : > { %v2393_v15 = vadd.f32 %v2304_v27, %v9704_v20  ;;  %v2596_v26 = vpop.f32.mrf.mxu1  ;;  %7383 = vmatmul.mubr.bf16.gmra.mxu1 %v6092_v5  ;;  %7402 = vmatprep.mubr.msk.bf16.mxu0 %vm8128_vm0, %v11538_v38 }
 0x213   : > { %v7120_v13 = vpop.f32.mrf.mxu0 }
 0x214   : > { %v9941_v23 = vadd.f32 %v2596_v26, %v2393_v15  ;;  %v7196_v52 = vpop.f32.mrf.mxu1 }
 0x215   : > { %v2307_v59 = vpop.f32.mrf.mxu0 }
 0x216   : > { %v2394_v62 = vadd.f32 %v2307_v59, %v9710_v56  ;;  %v2599_v51 = vpop.f32.mrf.mxu1 }
 0x217   : > { %v7121_v43 = vpop.f32.mrf.mxu0 }
 0x218   : > { %v9944_v63 = vadd.f32 %v2599_v51, %v2394_v62  ;;  %v7197_v2 = vpop.f32.mrf.mxu1 }
 0x219   : > { %v2312_v36 = vpop.f32.mrf.mxu0  ;;  %7403 = vmatmul.mubr.bf16.vlgmr.msra.gmra.mxu0 %v9211_v33 }
 0x21a   : > { %v2395_v20 = vadd.f32 %v2312_v36, %v9722_v19  ;;  %v2604_v6 = vpop.f32.mrf.mxu1  ;;  %7406 = vmatprep.mubr.msk.bf16.mxu0 %vm8128_vm0, %v11538_v38 }
 0x21b   : > { %v7124_v24 = vpop.f32.mrf.mxu0 }
 0x21c   : > { %v9950_v8 = vadd.f32 %v2604_v6, %v2395_v20  ;;  %v7200_v18 = vpop.f32.mrf.mxu1 }
 0x21d   : > { %v2315_v53 = vpop.f32.mrf.mxu0 }
 0x21e   : > { %v2396_v56 = vadd.f32 %v2315_v53, %v9730_v14  ;;  %v2607_v47 = vpop.f32.mrf.mxu1 }
 0x21f   : > { %v7125_v12 = vpop.f32.mrf.mxu0 }
 0x220   : > { %v9953_v16 = vadd.f32 %v2607_v47, %v2396_v56  ;;  %v7201_v22 = vpop.f32.mrf.mxu1 }
 0x221   : > { %v2320_v5 = vpop.f32.mrf.mxu0  ;;  %7407 = vmatmul.mubr.bf16.gmra.mxu0 %v9239_v21 }
 0x222   : > { %v2397_v33 = vadd.f32 %v2320_v5, %v9742_v28  ;;  %v2612_v19 = vpop.f32.mrf.mxu1  ;;  %7410 = vmatprep.mubr.msk.bf16.mxu0 %vm8128_vm0, %v11538_v38 }
 0x223   : > { %v7128_v45 = vpop.f32.mrf.mxu0 }
 0x224   : > { %v9959_v0 = vadd.f32 %v2612_v19, %v2397_v33  ;;  %v7204_v27 = vpop.f32.mrf.mxu1  ;;  %v7946_v33 = vld [vmem:[%s11388_s5 + $0x78] sm:$0xff]  }
 0x225   : > { %v2323_v15 = vpop.f32.mrf.mxu0  ;;  %7462 = vmatprep.subr.bf16.mxu1 %v7946_v33  ;;  %v11684_v27 = vld [vmem:[#allocation78_spill] sm:$0xff] }
 0x226   : > { %v2398_v14 = vadd.f32 %v2323_v15, %v9749_v29  ;;  %v2615_v26 = vpop.f32.mrf.mxu1  ;;  %7463 = vmatpush3.bf16.msra.mxu1 %v7946_v33 }
 0x227   : > { %v7129_v13 = vpop.f32.mrf.mxu0 }
 0x228   : > { %v9962_v52 = vadd.f32 %v2615_v26, %v2398_v14  ;;  %v7205_v59 = vpop.f32.mrf.mxu1 }
 0x229   : > { %v2328_v62 = vpop.f32.mrf.mxu0  ;;  %7411 = vmatmul.mubr.bf16.gmra.mxu0 %v9254_v10 }
 0x22a   : > { %v2399_v21 = vadd.f32 %v2328_v62, %v9762_v11  ;;  %v2620_v28 = vpop.f32.mrf.mxu1  ;;  %7414 = vmatprep.mubr.msk.bf16.mxu0 %vm8128_vm0, %v11538_v38 }
 0x22b   : > { %v7132_v51 = vpop.f32.mrf.mxu0 }
 0x22c   : > { %v9968_v43 = vadd.f32 %v2620_v28, %v2399_v21  ;;  %v7208_v2 = vpop.f32.mrf.mxu1 }
 0x22d   : > { %v2331_v36 = vpop.f32.mrf.mxu0 }
 0x22e   : > { %v2400_v29 = vadd.f32 %v2331_v36, %v9769_v31  ;;  %v2623_v20 = vpop.f32.mrf.mxu1 }
 0x22f   : > { %v7133_v6 = vpop.f32.mrf.mxu0 }
 0x230   : > { %v9971_v24 = vadd.f32 %v2623_v20, %v2400_v29  ;;  %v7209_v18 = vpop.f32.mrf.mxu1  ;;  %v11685_v29 = vld [vmem:[#allocation79_spill] sm:$0xff] }
 0x231   : > { %v2336_v53 = vpop.f32.mrf.mxu0  ;;  %7415 = vmatmul.mubr.bf16.gmra.mxu0 %v9266_v42 }
 0x232   : > { %v2401_v10 = vadd.f32 %v2336_v53, %v9782_v7  ;;  %v2628_v11 = vpop.f32.mrf.mxu1  ;;  %7418 = vmatprep.mubr.msk.bf16.mxu0 %vm8128_vm0, %v11538_v38 }
 0x233   : > { %v7136_v56 = vpop.f32.mrf.mxu0 }
 0x234   : > { %v9977_v47 = vadd.f32 %v2628_v11, %v2401_v10  ;;  %v7212_v12 = vpop.f32.mrf.mxu1  ;;  %v7947_v56 = vld [vmem:[%s11388_s5 + $0x70] sm:$0xff]  }
 0x235   : > { %v2339_v22 = vpop.f32.mrf.mxu0  ;;  %7464 = vmatprep.subr.bf16.mxu1 %v7947_v56 }
 0x236   : > { %v2402_v31 = vadd.f32 %v2339_v22, %v9786_v40  ;;  %v2631_v5 = vpop.f32.mrf.mxu1  ;;  %7465 = vmatpush3.bf16.msra.mxu1 %v7947_v56 }
 0x237   : > { %v7137_v19 = vpop.f32.mrf.mxu0 }
 0x238   : > { %v9983_v42 = vadd.f32 %v2631_v5, %v2402_v31  ;;  %v7213_v7 = vpop.f32.mrf.mxu1  ;;  %v11686_v5 = vld [vmem:[#allocation80_spill] sm:$0xff] }
 0x239   : > { %v2344_v45 = vpop.f32.mrf.mxu0  ;;  %7419 = vmatmul.mubr.bf16.gmra.mxu0 %v11684_v27 }
 0x23a   : > { %v2403_v15 = vadd.f32 %v2344_v45, %v9795_v48  ;;  %v2636_v14 = vpop.f32.mrf.mxu1  ;;  %7422 = vmatprep.mubr.msk.bf16.mxu0 %vm8128_vm0, %v11538_v38 }
 0x23b   : > { %v7140_v40 = vpop.f32.mrf.mxu0 }
 0x23c   : > { %v9989_v26 = vadd.f32 %v2636_v14, %v2403_v15  ;;  %v7216_v13 = vpop.f32.mrf.mxu1 }
 0x23d   : > { %v2347_v59 = vpop.f32.mrf.mxu0 }
 0x23e   : > { %v2404_v62 = vadd.f32 %v2347_v59, %v9798_v46  ;;  %v2639_v21 = vpop.f32.mrf.mxu1 }
 0x23f   : > { %v7141_v28 = vpop.f32.mrf.mxu0 }
 0x240   : > { %v9992_v51 = vadd.f32 %v2639_v21, %v2404_v62  ;;  %v7217_v2 = vpop.f32.mrf.mxu1  ;;  %v11687_v21 = vld [vmem:[#allocation81_spill] sm:$0xff] }
 0x241   : > { %v2352_v36 = vpop.f32.mrf.mxu0  ;;  %7423 = vmatmul.mubr.bf16.gmra.mxu0 %v11685_v29 }
 0x242   : > { %v2405_v48 = vadd.f32 %v2352_v36, %v9807_v30  ;;  %v2644_v20 = vpop.f32.mrf.mxu1  ;;  %7426 = vmatprep.mubr.msk.bf16.mxu0 %vm8128_vm0, %v11538_v38 }
 0x243   : > { %v7144_v6 = vpop.f32.mrf.mxu0 }
 0x244   : > { %v9998_v18 = vadd.f32 %v2644_v20, %v2405_v48  ;;  %v7220_v53 = vpop.f32.mrf.mxu1 }
 0x245   : > { %v2355_v10 = vpop.f32.mrf.mxu0 }
 0x246   : > { %v2406_v46 = vadd.f32 %v2355_v10, %v9810_v1  ;;  %v2647_v11 = vpop.f32.mrf.mxu1 }
 0x247   : > { %v7145_v12 = vpop.f32.mrf.mxu0 }
 0x248   : > { %v10004_v22 = vadd.f32 %v2647_v11, %v2406_v46  ;;  %v7221_v30 = vpop.f32.mrf.mxu1  ;;  %v11688_v11 = vld [vmem:[#allocation82_spill] sm:$0xff] }
 0x249   : > { %v2360_v31 = vpop.f32.mrf.mxu0  ;;  %7427 = vmatmul.mubr.bf16.gmra.mxu0 %v11686_v5 }
 0x24a   : > { %v2407_v33 = vadd.f32 %v2360_v31, %v9819_v39  ;;  %v2652_v19 = vpop.f32.mrf.mxu1  ;;  %7430 = vmatprep.mubr.msk.bf16.mxu0 %vm8128_vm0, %v11538_v38 }
 0x24b   : > { %v7148_v1 = vpop.f32.mrf.mxu0 }
 0x24c   : > { %v10010_v7 = vadd.f32 %v2652_v19, %v2407_v33  ;;  %v7224_v45 = vpop.f32.mrf.mxu1 }
 0x24d   : > { %v2363_v27 = vpop.f32.mrf.mxu0 }
 0x24e   : > { %v2408_v15 = vadd.f32 %v2363_v27, %v9822_v3  ;;  %v2655_v14 = vpop.f32.mrf.mxu1  ;;  %v7948_v3 = vld [vmem:[%s11388_s5 + $0x68] sm:$0xff]  }
 0x24f   : > { %v7149_v40 = vpop.f32.mrf.mxu0  ;;  %7466 = vmatprep.subr.bf16.mxu1 %v7948_v3 }
 0x250   : > { %v10013_v13 = vadd.f32 %v2655_v14, %v2408_v15  ;;  %v7225_v59 = vpop.f32.mrf.mxu1  ;;  %7467 = vmatpush3.bf16.msra.mxu1 %v7948_v3  ;;  %v11689_v14 = vld [vmem:[#allocation83_spill] sm:$0xff] }
 0x251   : > { %v2368_v62 = vpop.f32.mrf.mxu0  ;;  %7431 = vmatmul.mubr.bf16.gmra.mxu0 %v11687_v21 }
 0x252   : > { %v2409_v39 = vadd.f32 %v2368_v62, %v9831_v37  ;;  %v2660_v28 = vpop.f32.mrf.mxu1  ;;  %7434 = vmatprep.mubr.msk.bf16.mxu0 %vm8128_vm0, %v11538_v38 }
 0x253   : > { %v7152_v2 = vpop.f32.mrf.mxu0 }
 0x254   : > { %v10019_v36 = vadd.f32 %v2660_v28, %v2409_v39  ;;  %v7228_v29 = vpop.f32.mrf.mxu1 }
 0x255   : > { %v2371_v48 = vpop.f32.mrf.mxu0 }
 0x256   : > { %v2410_v20 = vadd.f32 %v2371_v48, %v9834_v4  ;;  %v2663_v6 = vpop.f32.mrf.mxu1 }
 0x257   : > { %v7153_v53 = vpop.f32.mrf.mxu0 }
 0x258   : > { %v10025_v37 = vadd.f32 %v2663_v6, %v2410_v20  ;;  %v7229_v10 = vpop.f32.mrf.mxu1  ;;  %v11690_v20 = vld [vmem:[#allocation69_spill] sm:$0xff]  ;;  %v7950_v6 = vld [vmem:[%s11388_s5 + $0x138] sm:$0xff]  }
 0x259   : > { %v2376_v46 = vpop.f32.mrf.mxu0  ;;  %7435 = vmatmul.mubr.bf16.gmra.mxu0 %v11688_v11  ;;  %7590 = vmatprep.subr.bf16.mxu0 %v7950_v6 }
 0x25a   : > { %v2411_v56 = vadd.f32 %v2376_v46, %v9843_v50  ;;  %v2668_v12 = vpop.f32.mrf.mxu1  ;;  %7438 = vmatprep.mubr.msk.bf16.mxu0 %vm8128_vm0, %v11538_v38  ;;  %7591 = vmatpush3.bf16.msra.mxu0 %v7950_v6  ;;  %v3259_v6 = vrot.slane %v9878_v58, 5 }
 0x25b   : > { %v7156_v30 = vpop.f32.mrf.mxu0 }
 0x25c   : > { %v10031_v31 = vadd.f32 %v2668_v12, %v2411_v56  ;;  %v7232_v4 = vpop.f32.mrf.mxu1  ;;  %v7951_v12 = vld [vmem:[%s11388_s5 + $0x58] sm:$0xff]  }
 0x25d   : > { %v2379_v5 = vpop.f32.mrf.mxu0 }
 0x25e   : > { %v2412_v33 = vadd.f32 %v2379_v5, %v9846_v57  ;;  %v2671_v19 = vpop.f32.mrf.mxu1 }
 0x25f   : > { %v7157_v1 = vpop.f32.mrf.mxu0 }
 0x260   : > { %v10034_v45 = vadd.f32 %v2671_v19, %v2412_v33  ;;  %v7233_v27 = vpop.f32.mrf.mxu1 }
 0x261   : > { %v2816_v15 = vpop.f32.mrf.mxu0  ;;  %7439 = vmatmul.mubr.bf16.gmra.mxu0 %v11689_v14  ;;  %v11691_v27 = vld [vmem:[#allocation84_spill] sm:$0xff] }
 0x262   : > { %v2935_v50 = vadd.f32 %v2816_v15, %v9855_v49  ;;  %v3107_v40 = vpop.f32.mrf.mxu1  ;;  %7442 = vmatprep.mubr.msk.bf16.mxu0 %vm8128_vm0, %v11538_v38  ;;  %v7949_v49 = vld [vmem:[%s11388_s5 + $0x60] sm:$0xff]   ;;  %v7953_v15 = vld [vmem:[%s11388_s5 + $0x50] sm:$0xff]  }
 0x263   : > { %v7252_v59 = vpop.f32.mrf.mxu0  ;;  %7468 = vmatprep.subr.bf16.mxu1 %v7949_v49 }
 0x264   : > { %v10040_v62 = vadd.f32 %v3107_v40, %v2935_v50  ;;  %v7328_v21 = vpop.f32.mrf.mxu1  ;;  %7469 = vmatpush3.bf16.msra.mxu1 %v7949_v49  ;;  %v6101_v49 = vrot.slane %v9859_v54, 9  ;;  %v7958_v54 = vld [vmem:[%s11388_s5 + $0x118] sm:$0xff]  }
 0x265   : > { %v2819_v39 = vpop.f32.mrf.mxu0  ;;  %7470 = vmatprep.subr.bf16.mxu1 %v7951_v12 }
 0x266   : > { %v2936_v57 = vadd.f32 %v2819_v39, %v9861_v32  ;;  %v3110_v28 = vpop.f32.mrf.mxu1 }
 0x267   : > { %v7253_v2 = vpop.f32.mrf.mxu0 }
 0x268   : > { %v10043_v29 = vadd.f32 %v3110_v28, %v2936_v57  ;;  %v7329_v3 = vpop.f32.mrf.mxu1  ;;  %7471 = vmatpush3.bf16.msra.mxu1 %v7951_v12  ;;  %v11692_v57 = vld [vmem:[#allocation11_spill] sm:$0xff]  ;;  %v11693_v28 = vld [vmem:[#allocation10_spill] sm:$0xff] }
 0x269   : > { %v2824_v48 = vpop.f32.mrf.mxu0  ;;  %7443 = vmatmul.mubr.bf16.gmra.mxu0 %v11690_v20  ;;  %7472 = vmatprep.subr.bf16.mxu1 %v7953_v15  ;;  %v6118_v2 = vcombine.low %v11693_v28, %v11692_v57  ;;  %v7956_v3 = vld [vmem:[%s11388_s5 + $0x120] sm:$0xff]  }
 0x26a   : > { %v2937_v53 = vadd.f32 %v2824_v48, %v9872_v17  ;;  %v3115_v10 = vpop.f32.mrf.mxu1  ;;  %7446 = vmatprep.mubr.msk.bf16.mxu0 %vm8128_vm0, %v11538_v38  ;;  %v7952_v17 = vld [vmem:[%s11388_s5 + $0x130] sm:$0xff]  }
 0x26b   : > { %v7256_v32 = vpop.f32.mrf.mxu0  ;;  %7592 = vmatprep.subr.bf16.mxu0 %v7952_v17 }
 0x26c   : > { %v10055_v46 = vadd.f32 %v3115_v10, %v2937_v53  ;;  %v7332_v11 = vpop.f32.mrf.mxu1  ;;  %7593 = vmatpush3.bf16.msra.mxu0 %v7952_v17  ;;  %7473 = vmatpush3.bf16.msra.mxu1 %v7953_v15  ;;  %v3260_v17 = vsel %vm8857_vm6, %v6101_v49, %v3259_v6  ;;  %v7959_v15 = vld [vmem:[%s11388_s5 + $0x110] sm:$0xff]  }
 0x26d   : > { %v2827_v56 = vpop.f32.mrf.mxu0 }
 0x26e   : > { %v2938_v30 = vadd.f32 %v2827_v56, %v9875_v61  ;;  %v3118_v4 = vpop.f32.mrf.mxu1  ;;  %v7954_v61 = vld [vmem:[%s11388_s5 + $0x128] sm:$0xff]   ;;  %v7957_v56 = vld [vmem:[%s11388_s5 + $0x40] sm:$0xff]  }
 0x26f   : > { %v7257_v5 = vpop.f32.mrf.mxu0  ;;  %7594 = vmatprep.subr.bf16.mxu0 %v7954_v61 }
 0x270   : > { %v10064_v33 = vadd.f32 %v3118_v4, %v2938_v30  ;;  %v7333_v19 = vpop.f32.mrf.mxu1  ;;  %7595 = vmatpush3.bf16.msra.mxu0 %v7954_v61  ;;  %v3262_v30 = vrot.slane %v9881_v9, 5 }
 0x271   : > { %v2832_v1 = vpop.f32.mrf.mxu0  ;;  %7447 = vmatmul.mubr.bf16.gmra.mxu0 %v11691_v27  ;;  %7596 = vmatprep.subr.bf16.mxu0 %v7956_v3  ;;  %v11695_v27 = vld [vmem:[#allocation12_spill] sm:$0xff] }
 0x272   : > { %v2939_v14 = vadd.f32 %v2832_v1, %v9894_v44  ;;  %v3123_v50 = vpop.f32.mrf.mxu1  ;;  %7450 = vmatprep.mubr.msk.bf16.mxu0 %vm8128_vm0, %v11538_v38  ;;  %v7955_v44 = vld [vmem:[%s11388_s5 + $0x48] sm:$0xff]   ;;  %v3264_v9 = vrot.slane %v3262_v30, 4 }
 0x273   : > { %v7260_v40 = vpop.f32.mrf.mxu0  ;;  %7474 = vmatprep.subr.bf16.mxu1 %v7955_v44 }
 0x274   : > { %v10076_v59 = vadd.f32 %v3123_v50, %v2939_v14  ;;  %v7336_v21 = vpop.f32.mrf.mxu1  ;;  %7475 = vmatpush3.bf16.msra.mxu1 %v7955_v44  ;;  %7597 = vmatpush3.bf16.msra.mxu0 %v7956_v3  ;;  %v3261_v50 = vrot.slane %v3259_v6, 4  ;;  %v3265_v40 = vrot.slane %v9904_v55, 5 }
 0x275   : > { %v2835_v39 = vpop.f32.mrf.mxu0  ;;  %7476 = vmatprep.subr.bf16.mxu1 %v7957_v56  ;;  %7598 = vmatprep.subr.bf16.mxu0 %v7958_v54 }
 0x276   : > { %v2940_v48 = vadd.f32 %v2835_v39, %v9901_v60  ;;  %v3126_v20 = vpop.f32.mrf.mxu1  ;;  %v3263_v55 = vsel %vm8857_vm6, %v3261_v50, %v3262_v30  ;;  %v3266_v3 = vsel %vm8857_vm6, %v3264_v9, %v3265_v40 }
 0x277   : > { %v7261_v53 = vpop.f32.mrf.mxu0 }
 0x278   : > { %v10089_v10 = vadd.f32 %v3126_v20, %v2940_v48  ;;  %v7337_v32 = vpop.f32.mrf.mxu1  ;;  %7477 = vmatpush3.bf16.msra.mxu1 %v7957_v56  ;;  %7599 = vmatpush3.bf16.msra.mxu0 %v7958_v54  ;;  %v6120_v53 = vcombine.low %v3263_v55, %v3266_v3 }
 0x279   : > { %v2840_v11 = vpop.f32.mrf.mxu0  ;;  %7451 = vmatmul.mubr.bf16.gmra.mxu0 %v6118_v2  ;;  %7600 = vmatprep.subr.bf16.mxu0 %v7959_v15  ;;  %v7960_v2 = vld [vmem:[%s11388_s5 + $0x108] sm:$0xff]  }
 0x27a   : > { %v2941_v58 = vadd.f32 %v2840_v11, %v9914_v34  ;;  %v3131_v60 = vpop.f32.mrf.mxu1  ;;  %7454 = vmatprep.mubr.msk.bf16.mxu0 %vm8128_vm0, %v11538_v38  ;;  %v6119_v34 = vcombine.low %v11695_v27, %v3260_v17 }
 0x27b   : > { %v7264_v4 = vpop.f32.mrf.mxu0 }
 0x27c   : > { %v10103_v5 = vadd.f32 %v3131_v60, %v2941_v58  ;;  %v7340_v19 = vpop.f32.mrf.mxu1  ;;  %7601 = vmatpush3.bf16.msra.mxu0 %v7959_v15 }
 0x27d   : > { %v2843_v1 = vpop.f32.mrf.mxu0  ;;  %7602 = vmatprep.subr.bf16.mxu0 %v7960_v2 }
 0x27e   : > { %v2942_v61 = vadd.f32 %v2843_v1, %v9920_v41  ;;  %v3134_v14 = vpop.f32.mrf.mxu1 }
 0x27f   : > { %v7265_v21 = vpop.f32.mrf.mxu0 }
 0x280   : > { %v10111_v39 = vadd.f32 %v3134_v14, %v2942_v61  ;;  %v7341_v57 = vpop.f32.mrf.mxu1  ;;  %7603 = vmatpush3.bf16.msra.mxu0 %v7960_v2 }
 0x281   : > { %v2848_v28 = vpop.f32.mrf.mxu0  ;;  %7455 = vmatmul.mubr.bf16.gmra.mxu0 %v6119_v34 }
 0x282   : > { %v2943_v44 = vadd.f32 %v2848_v28, %v9931_v35  ;;  %v3139_v41 = vpop.f32.mrf.mxu1  ;;  %7458 = vmatprep.mubr.msk.bf16.mxu0 %vm8128_vm0, %v11538_v38  ;;  %v7961_v35 = vld [vmem:[%s11388_s5 + $0x100] sm:$0xff]  }
 0x283   : > { %v7268_v48 = vpop.f32.mrf.mxu0  ;;  %7604 = vmatprep.subr.bf16.mxu0 %v7961_v35 }
 0x284   : > { %v10123_v20 = vadd.f32 %v3139_v41, %v2943_v44  ;;  %v7344_v49 = vpop.f32.mrf.mxu1  ;;  %7605 = vmatpush3.bf16.msra.mxu0 %v7961_v35 }
 0x285   : > { %v2851_v6 = vpop.f32.mrf.mxu0 }
 0x286   : > { %v2944_v38 = vadd.f32 %v2851_v6, %v9936_v25  ;;  %v3142_v32 = vpop.f32.mrf.mxu1 }
 0x287   : > { %v7269_v11 = vpop.f32.mrf.mxu0 }
 0x288   : > { %v10129_v56 = vadd.f32 %v3142_v32, %v2944_v38  ;;  %v7345_v54 = vpop.f32.mrf.mxu1 }
 0x289   : > { %v2856_v58 = vpop.f32.mrf.mxu0  ;;  %7459 = vmatmul.mubr.bf16.gmra.mxu0 %v6120_v53 }
 0x28a   : > { %v2945_v60 = vadd.f32 %v2856_v58, %v9941_v23  ;;  %v3147_v12 = vpop.f32.mrf.mxu1 }
 0x28b   : > { %v7272_v17 = vpop.f32.mrf.mxu0 }
 0x28c   : > { %v10132_v30 = vadd.f32 %v3147_v12, %v2945_v60  ;;  %v7348_v4 = vpop.f32.mrf.mxu1 }
 0x28d   : > { %v2859_v19 = vpop.f32.mrf.mxu0 }
 0x28e   : > { %v2946_v1 = vadd.f32 %v2859_v19, %v9944_v63  ;;  %v3150_v25 = vpop.f32.mrf.mxu1 }
 0x28f   : > { %v7273_v27 = vpop.f32.mrf.mxu0 }
 0x290   : > { %v10135_v34 = vadd.f32 %v3150_v25, %v2946_v1  ;;  %v7349_v15 = vpop.f32.mrf.mxu1 }
 0x291   : > { %v2864_v61 = vpop.f32.mrf.mxu0 }
 0x292   : > { %v2947_v14 = vadd.f32 %v2864_v61, %v9950_v8  ;;  %v3155_v50 = vpop.f32.mrf.mxu1 }
 0x293   : > { %v7276_v9 = vpop.f32.mrf.mxu0 }
 0x294   : > { %v10138_v40 = vadd.f32 %v3155_v50, %v2947_v14  ;;  %v7352_v23 = vpop.f32.mrf.mxu1 }
 0x295   : > { %v2867_v21 = vpop.f32.mrf.mxu0  ;;  %v10161_v23 = vld [vmem:[%s11388_s5 + $0x38] sm:$0xff]  }
 0x296   : > { %v2948_v57 = vadd.f32 %v2867_v21, %v9953_v16  ;;  %v3158_v28 = vpop.f32.mrf.mxu1  ;;  %7494 = vmatprep.subr.bf16.mxu1 %v10161_v23 }
 0x297   : > { %v7277_v2 = vpop.f32.mrf.mxu0 }
 0x298   : > { %v10141_v44 = vadd.f32 %v3158_v28, %v2948_v57  ;;  %v7353_v63 = vpop.f32.mrf.mxu1 }
 0x299   : > { %v2872_v41 = vpop.f32.mrf.mxu0 }
 0x29a   : > { %v2949_v55 = vadd.f32 %v2872_v41, %v9959_v0  ;;  %v3163_v3 = vpop.f32.mrf.mxu1 }
 0x29b   : > { %v7280_v48 = vpop.f32.mrf.mxu0 }
 0x29c   : > { %v10144_v49 = vadd.f32 %v3163_v3, %v2949_v55  ;;  %v7356_v8 = vpop.f32.mrf.mxu1 }
 0x29d   : > { %v2875_v6 = vpop.f32.mrf.mxu0 }
 0x29e   : > { %v2950_v53 = vadd.f32 %v2875_v6, %v9962_v52  ;;  %v3166_v35 = vpop.f32.mrf.mxu1 }
 0x29f   : > { %v7281_v38 = vpop.f32.mrf.mxu0 }
 0x2a0   : > { %v10147_v32 = vadd.f32 %v3166_v35, %v2950_v53  ;;  %v7357_v16 = vpop.f32.mrf.mxu1 }
 0x2a1   : > { %v2880_v11 = vpop.f32.mrf.mxu0 }
 0x2a2   : > { %v2951_v54 = vadd.f32 %v2880_v11, %v9968_v43  ;;  %v3171_v58 = vpop.f32.mrf.mxu1  ;;  %v10176_v11 = vld [vmem:[%s11388_s5 + $0x1b8] sm:$0xff]  }
 0x2a3   : > { %v7284_v60 = vpop.f32.mrf.mxu0  ;;  %7654 = vmatprep.subr.bf16.mxu0 %v10176_v11 }
 0x2a4   : > { %v10150_v12 = vadd.f32 %v3171_v58, %v2951_v54  ;;  %v7360_v0 = vpop.f32.mrf.mxu1 }
 0x2a5   : > { %v2883_v17 = vpop.f32.mrf.mxu0 }
 0x2a6   : > { %v2952_v4 = vadd.f32 %v2883_v17, %v9971_v24  ;;  %v3174_v19 = vpop.f32.mrf.mxu1 }
 0x2a7   : > { %v7285_v1 = vpop.f32.mrf.mxu0 }
 0x2a8   : > { %v10153_v25 = vadd.f32 %v3174_v19, %v2952_v4  ;;  %v7361_v52 = vpop.f32.mrf.mxu1 }
 0x2a9   : > { %v2888_v27 = vpop.f32.mrf.mxu0 }
 0x2aa   : > { %v2953_v15 = vadd.f32 %v2888_v27, %v9977_v47  ;;  %v3179_v61 = vpop.f32.mrf.mxu1 }
 0x2ab   : > { %v7288_v14 = vpop.f32.mrf.mxu0 }
 0x2ac   : > { %v10156_v50 = vadd.f32 %v3179_v61, %v2953_v15  ;;  %v7364_v43 = vpop.f32.mrf.mxu1 }
 0x2ad   : > { %v2891_v9 = vpop.f32.mrf.mxu0 }
 0x2ae   : > { %v2954_v24 = vadd.f32 %v2891_v9, %v9983_v42  ;;  %v3182_v21 = vpop.f32.mrf.mxu1 }
 0x2af   : > { %v7289_v57 = vpop.f32.mrf.mxu0 }
 0x2b0   : > { %v10165_v28 = vadd.f32 %v3182_v21, %v2954_v24  ;;  %v7365_v47 = vpop.f32.mrf.mxu1 }
 0x2b1   : > { %v2896_v2 = vpop.f32.mrf.mxu0 }
 0x2b2   : > { %v2955_v63 = vadd.f32 %v2896_v2, %v9989_v26  ;;  %v3187_v41 = vpop.f32.mrf.mxu1 }
 0x2b3   : > { %v7292_v55 = vpop.f32.mrf.mxu0 }
 0x2b4   : > { %v10168_v3 = vadd.f32 %v3187_v41, %v2955_v63  ;;  %v7368_v48 = vpop.f32.mrf.mxu1 }
 0x2b5   : > { %v2899_v8 = vpop.f32.mrf.mxu0 }
 0x2b6   : > { %v2956_v6 = vadd.f32 %v2899_v8, %v9992_v51  ;;  %v3190_v53 = vpop.f32.mrf.mxu1 }
 0x2b7   : > { %v7293_v42 = vpop.f32.mrf.mxu0 }
 0x2b8   : > { %v10171_v35 = vadd.f32 %v3190_v53, %v2956_v6  ;;  %v7369_v38 = vpop.f32.mrf.mxu1 }
 0x2b9   : > { %v2904_v16 = vpop.f32.mrf.mxu0 }
 0x2ba   : > { %v2957_v26 = vadd.f32 %v2904_v16, %v9998_v18  ;;  %v3195_v54 = vpop.f32.mrf.mxu1 }
 0x2bb   : > { %v7296_v58 = vpop.f32.mrf.mxu0 }
 0x2bc   : > { %v10180_v60 = vadd.f32 %v3195_v54, %v2957_v26  ;;  %v7372_v51 = vpop.f32.mrf.mxu1 }
 0x2bd   : > { %v2907_v0 = vpop.f32.mrf.mxu0 }
 0x2be   : > { %v2958_v17 = vadd.f32 %v2907_v0, %v10004_v22  ;;  %v3198_v4 = vpop.f32.mrf.mxu1 }
 0x2bf   : > { %v7297_v19 = vpop.f32.mrf.mxu0 }
 0x2c0   : > { %v10183_v1 = vadd.f32 %v3198_v4, %v2958_v17  ;;  %v7373_v52 = vpop.f32.mrf.mxu1 }
 0x2c1   : > { %v2912_v27 = vpop.f32.mrf.mxu0 }
 0x2c2   : > { %v2959_v15 = vadd.f32 %v2912_v27, %v10010_v7  ;;  %v3203_v61 = vpop.f32.mrf.mxu1 }
 0x2c3   : > { %v7300_v18 = vpop.f32.mrf.mxu0 }
 0x2c4   : > { %v10186_v14 = vadd.f32 %v3203_v61, %v2959_v15  ;;  %v7376_v43 = vpop.f32.mrf.mxu1  ;;  %v10209_v18 = vstv %s6132_s17  ;;  %s8037_s17 = sshll.u32 %s8129_s10, 4  ;;  %s8038_s17 = int_to_ptr.vmem [resolvable:$false] %s8037_s17 }
 0x2c5   : > { %v2915_v9 = vpop.f32.mrf.mxu0  ;;  %vm3647_vm7 = vcmp.ge.s32.totalorder %v10209_v18, 0  ;;  %vm3657_vm8 = vcmp.lt.s32.totalorder %v10209_v18, 16  ;;  %s8039_s16 = scalar_lea.vmem %s8038_s17, 4096  ;;  %p8040_p5 = scmp.lt.s32.totalorder %s11326_s9, %s8038_s17 }
 0x2c6   : > { %v2960_v24 = vadd.f32 %v2915_v9, %v10013_v13  ;;  %v3206_v21 = vpop.f32.mrf.mxu1  ;;  %vm10224_vm9 = vmand %vm3647_vm7, %vm3657_vm8  ;;  %p8041_p6 = scmp.lt.s32.totalorder %s8039_s16, %s8033_s11 }
 0x2c7   : > { %v7301_v57 = vpop.f32.mrf.mxu0 }
 0x2c8   : > { %v10189_v47 = vadd.f32 %v3206_v21, %v2960_v24  ;;  %v7377_v22 = vpop.f32.mrf.mxu1  ;;  %p8042_p7 = por %p8041_p6, %p8040_p5 }
 0x2c9   : > { %v2920_v2 = vpop.f32.mrf.mxu0 }
 0x2ca   : > { %v2961_v63 = vadd.f32 %v2920_v2, %v10019_v36  ;;  %v3211_v41 = vpop.f32.mrf.mxu1  ;;  %v3640_v36 = vlaneseq  ;;  %p8043_p9 = pnand %p8042_p7, %p8036_p4 }
 0x2cb   : > { %v7304_v55 = vpop.f32.mrf.mxu0 }
 0x2cc   : > { %v10192_v48 = vadd.f32 %v3211_v41, %v2961_v63  ;;  %v7380_v7 = vpop.f32.mrf.mxu1  ;;  %v3641_v52 = vshrl.u32 %v3640_v36, 7 }
 0x2cd   : > { %v2923_v8 = vpop.f32.mrf.mxu0 }
 0x2ce   : > { %v2962_v6 = vadd.f32 %v2923_v8, %v10025_v37  ;;  %v3214_v53 = vpop.f32.mrf.mxu1  ;;  %v10217_v9 = vadd.s32 4294967295, %v3641_v52  ;;  %v3643_v57 = vadd.s32 16, %v3641_v52 }
 0x2cf   : > { %v7305_v42 = vpop.f32.mrf.mxu0 }
 0x2d0   : > { %v10195_v13 = vadd.f32 %v3214_v53, %v2962_v6  ;;  %v7381_v38 = vpop.f32.mrf.mxu1  ;;  %vm11496_vm10 = vcmp.ge.s32.totalorder %v10217_v9, 0  ;;  %v10230_v7 = vadd.s32 4294967295, %v3643_v57 }
 0x2d1   : > { %v2928_v16 = vpop.f32.mrf.mxu0  ;;  %vm10236_vm11 = vmand %vm10224_vm9, %vm11496_vm10 }
 0x2d2   : > { %v2963_v26 = vadd.f32 %v2928_v16, %v10031_v31  ;;  %v3219_v54 = vpop.f32.mrf.mxu1  ;;  %v10207_v31 = vld [vmem:[%s11386_s3] ss:$0 sm:$0xff]  ;;  %vm11494_vm12 = vcmp.lt.s32.totalorder %v10230_v7, 16 }
 0x2d3   : > { %v7308_v58 = vpop.f32.mrf.mxu0  ;;  %vm3715_vm13 = vmand %vm10224_vm9, %vm11494_vm12 }
 0x2d4   : > { %v10198_v51 = vadd.f32 %v3219_v54, %v2963_v26  ;;  %v7384_v0 = vpop.f32.mrf.mxu1  ;;  %v3631_v54 = vadd.s32 1, %v10209_v18 }
 0x2d5   : > { %v2931_v17 = vpop.f32.mrf.mxu0 }
 0x2d6   : > { %v2964_v4 = vadd.f32 %v2931_v17, %v10034_v45  ;;  %v3222_v19 = vpop.f32.mrf.mxu1  ;;  %v10215_v45 = vld [vmem:[%s11387_s4] ss:$0 sm:$0xff]  ;;  %vm3648_vm14 = vcmp.ge.s32.totalorder %v3631_v54, 0  ;;  %vm3658_vm15 = vcmp.lt.s32.totalorder %v3631_v54, 16 }
 0x2d7   : > { %v7309_v37 = vpop.f32.mrf.mxu0  ;;  %vm10260_vm0 = vmand %vm3648_vm14, %vm3658_vm15 }
 0x2d8   : > { %v10202_v27 = vadd.f32 %v3222_v19, %v2964_v4  ;;  %v7385_v15 = vpop.f32.mrf.mxu1  ;;  %vm10269_vm2 = vmand %vm10260_vm0, %vm11496_vm10 }
 0x2d9   : > { %v3375_v61 = vpop.f32.mrf.mxu0  ;;  %vm3718_vm4 = vmand %vm10260_vm0, %vm11494_vm12 }
 0x2da   : > { %v3494_v43 = vadd.f32 %v3375_v61, %v10040_v62 }
 0x2db   : > { %v7404_v24 = vpop.f32.mrf.mxu0 }
 0x2dc   : > { %v3531_v21 = vmul.f32 %v10207_v31, %v3494_v43 }
 0x2dd   : > { %v3378_v22 = vpop.f32.mrf.mxu0 }
 0x2de   : > { %v3568_v2 = vadd.f32 %v10215_v45, %v3531_v21  ;;  %v3495_v62 = vadd.f32 %v3378_v22, %v10043_v29  ;;  %v8004_v22 = vld [vmem:[%s11388_s5 + $0x168] sm:$0xff]  }
 0x2df   : > { %v7405_v41 = vpop.f32.mrf.mxu0 }
 0x2e0   : > { %v3532_v55 = vmul.f32 %v10207_v31, %v3495_v62  ;;  %v3598_v8 = vmax.f32 %v3568_v2, 0.0 }
 0x2e1   : > { %v3383_v6 = vpop.f32.mrf.mxu0 }
 0x2e2   : > { %v3569_v29 = vadd.f32 %v10215_v45, %v3532_v55  ;;  %v3496_v42 = vadd.f32 %v3383_v6, %v10055_v46  ;;  %v3743_v58 = vsel %vm10236_vm11, %v3598_v8, 0.0 }
 0x2e3   : > { %v7408_v38 = vpop.f32.mrf.mxu0 }
 0x2e4   : > { %v3599_v16 = vmax.f32 %v3569_v29, 0.0  ;;  %v3533_v26 = vmul.f32 %v10207_v31, %v3496_v42 }
 0x2e5   : > { %v3386_v36 = vpop.f32.mrf.mxu0 }
 0x2e6   : > { %v3744_v0 = vsel %vm10224_vm9, %v3599_v16, 0.0  ;;  %v10249_v17 = vpack.c.bf16 %v3599_v16, %v3598_v8  ;;  %v3570_v4 = vadd.f32 %v10215_v45, %v3533_v26  ;;  %v3497_v46 = vadd.f32 %v3386_v36, %v10064_v33 }
 0x2e7   : > { %v3773_v19 = vpack.c.bf16 %v3744_v0, %v3743_v58  ;;  %v7409_v37 = vpop.f32.mrf.mxu0 }
 0x2e8   : > { %v3600_v52 = vmax.f32 %v3570_v4, 0.0  ;;  %v3534_v15 = vmul.f32 %v10207_v31, %v3497_v46 }
 0x2e9   : > { %v3391_v61 = vpop.f32.mrf.mxu0  ;;  %v3813_v43 = vshll.u32 %v3773_v19, 16  ;;  %v3811_v55 = vshrl.u32 %v3773_v19, 16  ;;  %v4238_v42 = vrot.slane %v3773_v19, 1  ;;  %v3632_v19 = vadd.s32 2, %v10209_v18 }
 0x2ea   : > { %v3745_v24 = vsel %vm3715_vm13, %v3600_v52, 0.0  ;;  %v3571_v21 = vadd.f32 %v10215_v45, %v3534_v15  ;;  %v3498_v57 = vadd.f32 %v3391_v61, %v10076_v59  ;;  %v8005_v59 = vld [vmem:[%s11388_s5 + $0x160] sm:$0xff]  }
 0x2eb   : > { %v3774_v33 = vpack.c.bf16 %v3745_v24, %v3745_v24  ;;  %v7412_v2 = vpop.f32.mrf.mxu0  ;;  %v3815_v62 = vrot.slane %v3813_v43, 1  ;;  %vm3649_vm5 = vcmp.ge.s32.totalorder %v3632_v19, 0  ;;  %vm3659_vm6 = vcmp.lt.s32.totalorder %v3632_v19, 16 }
 0x2ec   : > { %v3535_v41 = vmul.f32 %v10207_v31, %v3498_v57  ;;  %v3601_v8 = vmax.f32 %v3571_v21, 0.0  ;;  %vm10296_vm7 = vmand %vm3649_vm5, %vm3659_vm6 }
 0x2ed   : > { %v3394_v6 = vpop.f32.mrf.mxu0  ;;  %v3818_v29 = vshll.u32 %v3774_v33, 16  ;;  %v4239_v38 = vrot.slane %v3774_v33, 1  ;;  %v3816_v58 = vor.u32 %v3815_v62, %v3811_v55  ;;  %vm10305_vm8 = vmand %vm10296_vm7, %vm11496_vm10 }
 0x2ee   : > { %v3572_v16 = vadd.f32 %v10215_v45, %v3535_v41  ;;  %v3499_v26 = vadd.f32 %v3394_v6, %v10089_v10  ;;  %v3746_v37 = vsel %vm10269_vm2, %v3601_v8, 0.0  ;;  %vm3721_vm13 = vmand %vm10296_vm7, %vm11494_vm12 }
 0x2ef   : > { %v7413_v54 = vpop.f32.mrf.mxu0  ;;  %v3820_v36 = vrot.slane %v3818_v29, 1  ;;  %v10276_v0 = vsel %vm11495_vm1, %v4238_v42, %v4239_v38 }
 0x2f0   : > { %v3602_v4 = vmax.f32 %v3572_v16, 0.0  ;;  %v3536_v46 = vmul.f32 %v10207_v31, %v3499_v26 }
 0x2f1   : > { %v3399_v52 = vpop.f32.mrf.mxu0  ;;  %v3821_v15 = vsel %vm11493_vm3, %v3816_v58, %v3820_v36 }
 0x2f2   : > { %v3747_v10 = vsel %vm10260_vm0, %v3602_v4, 0.0  ;;  %v10285_v61 = vpack.c.bf16 %v3602_v4, %v3601_v8  ;;  %v3573_v43 = vadd.f32 %v10215_v45, %v3536_v46  ;;  %v3500_v24 = vadd.f32 %v3399_v52, %v10103_v5  ;;  %7478 = vmatprep.mubr.bf16.mxu1 %v3821_v15 }
 0x2f3   : > { %v3775_v21 = vpack.c.bf16 %v3747_v10, %v3746_v37  ;;  %v7416_v57 = vpop.f32.mrf.mxu0 }
 0x2f4   : > { %v3603_v33 = vmax.f32 %v3573_v43, 0.0  ;;  %v3537_v2 = vmul.f32 %v10207_v31, %v3500_v24  ;;  %v3633_v57 = vadd.s32 3, %v10209_v18 }
 0x2f5   : > { %v3825_v62 = vshll.u32 %v3775_v21, 16  ;;  %v3402_v41 = vpop.f32.mrf.mxu0  ;;  %v3823_v16 = vshrl.u32 %v3775_v21, 16  ;;  %v4241_v54 = vrot.slane %v3775_v21, 1 }
 0x2f6   : > { %v3748_v55 = vsel %vm3718_vm4, %v3603_v33, 0.0  ;;  %v3574_v8 = vadd.f32 %v10215_v45, %v3537_v2  ;;  %v3501_v5 = vadd.f32 %v3402_v41, %v10111_v39  ;;  %v7963_v33 = vld [vmem:[%s11388_s5 + $0x30] sm:$0xff]   ;;  %vm3650_vm14 = vcmp.ge.s32.totalorder %v3633_v57, 0 }
 0x2f7   : > { %v3827_v6 = vrot.slane %v3825_v62, 1  ;;  %v3776_v29 = vpack.c.bf16 %v3748_v55, %v3748_v55  ;;  %v7417_v38 = vpop.f32.mrf.mxu0  ;;  %vm3660_vm15 = vcmp.lt.s32.totalorder %v3633_v57, 16 }
 0x2f8   : > { %v3538_v26 = vmul.f32 %v10207_v31, %v3501_v5  ;;  %v3604_v4 = vmax.f32 %v3574_v8, 0.0  ;;  %vm10339_vm4 = vmand %vm3650_vm14, %vm3660_vm15 }
 0x2f9   : > { %v3830_v58 = vshll.u32 %v3776_v29, 16  ;;  %v4242_v36 = vrot.slane %v3776_v29, 1  ;;  %v3407_v46 = vpop.f32.mrf.mxu0  ;;  %v3828_v10 = vor.u32 %v3827_v6, %v3823_v16  ;;  %vm10351_vm5 = vmand %vm10339_vm4, %vm11496_vm10 }
 0x2fa   : > { %v3575_v19 = vadd.f32 %v10215_v45, %v3538_v26  ;;  %v3502_v37 = vadd.f32 %v3407_v46, %v10123_v20  ;;  %v3749_v2 = vsel %vm10305_vm8, %v3604_v4, 0.0  ;;  %vm3724_vm6 = vmand %vm10339_vm4, %vm11494_vm12 }
 0x2fb   : > { %v3832_v52 = vrot.slane %v3830_v58, 1  ;;  %v7420_v15 = vpop.f32.mrf.mxu0  ;;  %v10312_v43 = vsel %vm11495_vm1, %v4241_v54, %v4242_v36 }
 0x2fc   : > { %v3605_v24 = vmax.f32 %v3575_v19, 0.0  ;;  %v3539_v21 = vmul.f32 %v10207_v31, %v3502_v37 }
 0x2fd   : > { %v3410_v62 = vpop.f32.mrf.mxu0  ;;  %v3833_v20 = vsel %vm11493_vm3, %v3828_v10, %v3832_v52  ;;  %v7965_v10 = vld [vmem:[%s11388_s5 + $0x20] sm:$0xff]  }
 0x2fe   : > { %v3750_v41 = vsel %vm10296_vm7, %v3605_v24, 0.0  ;;  %v10324_v55 = vpack.c.bf16 %v3605_v24, %v3604_v4  ;;  %v3576_v8 = vadd.f32 %v10215_v45, %v3539_v21  ;;  %v3503_v5 = vadd.f32 %v3410_v62, %v10129_v56  ;;  %7479 = vmatmul.mubr.bf16.vlgmr.msra.gmra.mxu1 %v3833_v20  ;;  %7606 = vmatprep.mubr.bf16.mxu0 %v3833_v20  ;;  %v7964_v56 = vld [vmem:[%s11388_s5 + $0x28] sm:$0xff]   ;;  %v7981_v62 = vld [vmem:[%s11388_s5 + $0xa0] sm:$0xff]  }
 0x2ff   : > { %v3777_v6 = vpack.c.bf16 %v3750_v41, %v3749_v2  ;;  %v7421_v29 = vpop.f32.mrf.mxu0  ;;  %7495 = vmatpush3.bf16.msra.mxu1 %v10161_v23 }
 0x300   : > { %v3606_v38 = vmax.f32 %v3576_v8, 0.0  ;;  %v3540_v16 = vmul.f32 %v10207_v31, %v3503_v5  ;;  %7496 = vmatprep.subr.bf16.mxu1 %v7963_v33 }
 0x301   : > { %v3415_v26 = vpop.f32.mrf.mxu0  ;;  %v3837_v54 = vshll.u32 %v3777_v6, 16  ;;  %v3835_v15 = vshrl.u32 %v3777_v6, 16 }
 0x302   : > { %v3751_v58 = vsel %vm3721_vm13, %v3606_v38, 0.0  ;;  %v3577_v36 = vadd.f32 %v10215_v45, %v3540_v16  ;;  %v3504_v4 = vadd.f32 %v3415_v26, %v10132_v30  ;;  %v4244_v30 = vrot.slane %v3777_v6, 1  ;;  %v7967_v26 = vld [vmem:[%s11388_s5 + $0x18] sm:$0xff]  }
 0x303   : > { %v3778_v46 = vpack.c.bf16 %v3751_v58, %v3751_v58  ;;  %v7424_v19 = vpop.f32.mrf.mxu0  ;;  %v3839_v37 = vrot.slane %v3837_v54, 1  ;;  %7497 = vmatpush3.bf16.msra.mxu1 %v7963_v33  ;;  %v3634_v16 = vadd.s32 4, %v10209_v18 }
 0x304   : > { %v3541_v52 = vmul.f32 %v10207_v31, %v3504_v4  ;;  %7498 = vmatprep.subr.bf16.mxu1 %v7964_v56  ;;  %v3607_v24 = vmax.f32 %v3577_v36, 0.0 }
 0x305   : > { %v3418_v21 = vpop.f32.mrf.mxu0  ;;  %v3842_v57 = vshll.u32 %v3778_v46, 16  ;;  %v4245_v2 = vrot.slane %v3778_v46, 1  ;;  %v3840_v8 = vor.u32 %v3839_v37, %v3835_v15  ;;  %vm3651_vm13 = vcmp.ge.s32.totalorder %v3634_v16, 0 }
 0x306   : > { %v3578_v33 = vadd.f32 %v10215_v45, %v3541_v52  ;;  %v3505_v20 = vadd.f32 %v3418_v21, %v10135_v34  ;;  %v7968_v34 = vld [vmem:[%s11388_s5 + $0x1b0] sm:$0xff]   ;;  %vm3661_vm14 = vcmp.lt.s32.totalorder %v3634_v16, 16  ;;  %v7970_v21 = vld [vmem:[%s11388_s5 + $0x1a8] sm:$0xff]  }
 0x307   : > { %v7425_v41 = vpop.f32.mrf.mxu0  ;;  %v3844_v5 = vrot.slane %v3842_v57, 1  ;;  %7499 = vmatpush3.bf16.msra.mxu1 %v7964_v56  ;;  %v10358_v29 = vsel %vm11495_vm1, %v4244_v30, %v4245_v2  ;;  %v3752_v56 = vsel %vm10351_vm5, %v3607_v24, 0.0  ;;  %vm10395_vm15 = vmand %vm3651_vm13, %vm3661_vm14 }
 0x308   : > { %v3608_v6 = vmax.f32 %v3578_v33, 0.0  ;;  %v3542_v38 = vmul.f32 %v10207_v31, %v3505_v20  ;;  %7500 = vmatprep.subr.bf16.mxu1 %v7965_v10  ;;  %vm3727_vm13 = vmand %vm10395_vm15, %vm11494_vm12 }
 0x309   : > { %v3423_v54 = vpop.f32.mrf.mxu0  ;;  %v10371_v58 = vsel %vm11493_vm3, %v3840_v8, %v3844_v5 }
 0x30a   : > { %v3753_v36 = vsel %vm10339_vm4, %v3608_v6, 0.0  ;;  %v10375_v4 = vpack.c.bf16 %v3608_v6, %v3607_v24  ;;  %v3579_v46 = vadd.f32 %v10215_v45, %v3542_v38  ;;  %v3506_v19 = vadd.f32 %v3423_v54, %v10138_v40  ;;  %7482 = vmatprep.mubr.bf16.mxu1 %v10371_v58  ;;  %7607 = vmatmul.mubr.bf16.vlgmr.msra.gmra.mxu0 %v10371_v58  ;;  %v7969_v40 = vld [vmem:[%s11388_s5 + $0x10] sm:$0xff]   ;;  %v7971_v38 = vld [vmem:[%s11388_s5 + $0x8] sm:$0xff]  }
 0x30b   : > { %v3779_v37 = vpack.c.bf16 %v3753_v36, %v3752_v56  ;;  %v7428_v52 = vpop.f32.mrf.mxu0  ;;  %7501 = vmatpush3.bf16.msra.mxu1 %v7965_v10  ;;  %7655 = vmatpush3.bf16.msra.mxu0 %v10176_v11 }
 0x30c   : > { %v3609_v15 = vmax.f32 %v3579_v46, 0.0  ;;  %v3543_v24 = vmul.f32 %v10207_v31, %v3506_v19  ;;  %7502 = vmatprep.subr.bf16.mxu1 %v7967_v26  ;;  %7656 = vmatprep.subr.bf16.mxu0 %v7968_v34 }
 0x30d   : > { %v3426_v57 = vpop.f32.mrf.mxu0  ;;  %v3849_v30 = vshll.u32 %v3779_v37, 16  ;;  %v3847_v6 = vshrl.u32 %v3779_v37, 16  ;;  %v4247_v36 = vrot.slane %v3779_v37, 1 }
 0x30e   : > { %v3754_v10 = vsel %vm3724_vm6, %v3609_v15, 0.0  ;;  %v3580_v11 = vadd.f32 %v10215_v45, %v3543_v24  ;;  %v3507_v2 = vadd.f32 %v3426_v57, %v10141_v44  ;;  %v7972_v44 = vld [vmem:[%s11388_s5 + $0x1a0] sm:$0xff]   ;;  %vm10410_vm6 = vmand %vm10395_vm15, %vm11496_vm10 }
 0x30f   : > { %v3780_v33 = vpack.c.bf16 %v3754_v10, %v3754_v10  ;;  %v7429_v41 = vpop.f32.mrf.mxu0  ;;  %v3851_v8 = vrot.slane %v3849_v30, 1  ;;  %7503 = vmatpush3.bf16.msra.mxu1 %v7967_v26  ;;  %7657 = vmatpush3.bf16.msra.mxu0 %v7968_v34  ;;  %v3635_v10 = vadd.s32 5, %v10209_v18  ;;  %v7983_v26 = vld [vmem:[%s11388_s5 + $0x98] sm:$0xff]  }
 0x310   : > { %v3544_v5 = vmul.f32 %v10207_v31, %v3507_v2  ;;  %7504 = vmatprep.subr.bf16.mxu1 %v7969_v40  ;;  %7658 = vmatprep.subr.bf16.mxu0 %v7970_v21  ;;  %v3610_v16 = vmax.f32 %v3580_v11, 0.0  ;;  %v7973_v11 = vld [vmem:[%s11388_s5] sm:$0xff]  }
 0x311   : > { %v3431_v56 = vpop.f32.mrf.mxu0  ;;  %v3854_v54 = vshll.u32 %v3780_v33, 16  ;;  %v4248_v46 = vrot.slane %v3780_v33, 1  ;;  %v3852_v15 = vor.u32 %v3851_v8, %v3847_v6  ;;  %vm3652_vm14 = vcmp.ge.s32.totalorder %v3635_v10, 0 }
 0x312   : > { %v3581_v34 = vadd.f32 %v10215_v45, %v3544_v5  ;;  %v3508_v19 = vadd.f32 %v3431_v56, %v10144_v49  ;;  %v7974_v49 = vld [vmem:[%s11388_s5 + $0x198] sm:$0xff]  }
 0x313   : > { %v7432_v52 = vpop.f32.mrf.mxu0  ;;  %v3856_v24 = vrot.slane %v3854_v54, 1  ;;  %7505 = vmatpush3.bf16.msra.mxu1 %v7969_v40  ;;  %7659 = vmatpush3.bf16.msra.mxu0 %v7970_v21  ;;  %v10417_v37 = vsel %vm11495_vm1, %v4247_v36, %v4248_v46  ;;  %v3755_v40 = vsel %vm10410_vm6, %v3610_v16, 0.0  ;;  %v7976_v36 = vld [vmem:[%s11388_s5 + $0x190] sm:$0xff]  }
 0x314   : > { %v3611_v57 = vmax.f32 %v3581_v34, 0.0  ;;  %v3545_v30 = vmul.f32 %v10207_v31, %v3508_v19  ;;  %7506 = vmatprep.subr.bf16.mxu1 %v7971_v38  ;;  %7660 = vmatprep.subr.bf16.mxu0 %v7972_v44 }
 0x315   : > { %v3434_v21 = vpop.f32.mrf.mxu0  ;;  %v10430_v2 = vsel %vm11493_vm3, %v3852_v15, %v3856_v24  ;;  %vm3662_vm3 = vcmp.lt.s32.totalorder %v3635_v10, 16  ;;  %v11717_v15 = vmov 0 }
 0x316   : > { %11716 = vst [vmem:[#allocation13_spill] sm:$0xff] %v10430_v2  ;;  %v3756_v33 = vsel %vm10395_vm15, %v3611_v57, 0.0  ;;  %v10434_v41 = vpack.c.bf16 %v3611_v57, %v3610_v16  ;;  %v3582_v8 = vadd.f32 %v10215_v45, %v3545_v30  ;;  %v3509_v5 = vadd.f32 %v3434_v21, %v10147_v32  ;;  %7483 = vmatmul.mubr.bf16.gmra.mxu1 %v10430_v2  ;;  %v10448_v32 = vld [vmem:[%s11388_s5 + $0xb8] sm:$0xff]   ;;  %vm10455_vm12 = vmand %vm3652_vm14, %vm3662_vm3 }
 0x317   : > { %7610 = vmatprep.mubr.bf16.mxu0 %v10430_v2  ;;  %v3781_v6 = vpack.c.bf16 %v3756_v33, %v3755_v40  ;;  %v7433_v56 = vpop.f32.mrf.mxu0  ;;  %7507 = vmatpush3.bf16.msra.mxu1 %v7971_v38  ;;  %v11718_v15 = vsel %vm10455_vm12, 4294967295, %v11717_v15  ;;  %v7978_v40 = vld [vmem:[%s11388_s5 + $0x188] sm:$0xff]   ;;  %vm10468_vm3 = vmand %vm10455_vm12, %vm11496_vm10  ;;  %vm11723_vm14 = vcmp.lt.s32.totalorder %v10230_v7, 16 }
 0x318   : > { %7661 = vmatpush3.bf16.msra.mxu0 %v7972_v44  ;;  %v3612_v54 = vmax.f32 %v3582_v8, 0.0  ;;  %v3546_v16 = vmul.f32 %v10207_v31, %v3509_v5  ;;  %7508 = vmatprep.subr.bf16.mxu1 %v7973_v11 }
 0x319   : > { %7662 = vmatprep.subr.bf16.mxu0 %v7974_v49  ;;  %v3439_v46 = vpop.f32.mrf.mxu0  ;;  %v3861_v34 = vshll.u32 %v3781_v6, 16  ;;  %v3859_v10 = vshrl.u32 %v3781_v6, 16  ;;  %v4250_v8 = vrot.slane %v3781_v6, 1 }
 0x31a   : > { %v3757_v38 = vsel %vm3727_vm13, %v3612_v54, 0.0  ;;  %v3583_v44 = vadd.f32 %v10215_v45, %v3546_v16  ;;  %v3510_v19 = vadd.f32 %v3439_v46, %v10150_v12  ;;  %vm11721_vm13 = vsmask.f32 7424 }
 0x31b   : > { %v3782_v52 = vpack.c.bf16 %v3757_v38, %v3757_v38  ;;  %v7436_v24 = vpop.f32.mrf.mxu0  ;;  %v3863_v57 = vrot.slane %v3861_v34, 1  ;;  %7509 = vmatpush3.bf16.msra.mxu1 %v7973_v11  ;;  %v11719_v11 = vmov 0 }
 0x31c   : > { %7663 = vmatpush3.bf16.msra.mxu0 %v7974_v49  ;;  %v3547_v30 = vmul.f32 %v10207_v31, %v3510_v19  ;;  %7526 = vmatprep.subr.bf16.mxu1 %v10448_v32  ;;  %v3613_v12 = vmax.f32 %v3583_v44, 0.0  ;;  %v11720_v11 = vsel %vm10468_vm3, 4294967295, %v11719_v11  ;;  %v3636_v44 = vadd.s32 6, %v10209_v18  ;;  %v7980_v19 = vld [vmem:[%s11388_s5 + $0x180] sm:$0xff]  }
 0x31d   : > { %7664 = vmatprep.subr.bf16.mxu0 %v7976_v36  ;;  %v3442_v21 = vpop.f32.mrf.mxu0  ;;  %v3866_v33 = vshll.u32 %v3782_v52, 16  ;;  %v4251_v5 = vrot.slane %v3782_v52, 1  ;;  %v3864_v16 = vor.u32 %v3863_v57, %v3859_v10 }
 0x31e   : > { %v3584_v49 = vadd.f32 %v10215_v45, %v3547_v30  ;;  %v3511_v56 = vadd.f32 %v3442_v21, %v10153_v25  ;;  %v3758_v25 = vsel %vm10468_vm3, %v3613_v12, 0.0  ;;  %vm3663_vm10 = vcmp.lt.s32.totalorder %v3636_v44, 16 }
 0x31f   : > { %v7437_v54 = vpop.f32.mrf.mxu0  ;;  %v3868_v46 = vrot.slane %v3866_v33, 1  ;;  %v10475_v34 = vsel %vm11495_vm1, %v4250_v8, %v4251_v5  ;;  %vm3653_vm1 = vcmp.ge.s32.totalorder %v3636_v44, 0 }
 0x320   : > { %7665 = vmatpush3.bf16.msra.mxu0 %v7976_v36  ;;  %v3614_v6 = vmax.f32 %v3584_v49, 0.0  ;;  %v3548_v38 = vmul.f32 %v10207_v31, %v3511_v56 }
 0x321   : > { %7666 = vmatprep.subr.bf16.mxu0 %v7978_v40  ;;  %v3447_v52 = vpop.f32.mrf.mxu0  ;;  %v10485_v24 = vsel %vm11721_vm13, %v3864_v16, %v3868_v46  ;;  %vm3730_vm13 = vmand %vm10455_vm12, %vm11723_vm14 }
 0x322   : > { %11722 = vst [vmem:[#allocation14_spill] sm:$0xff] %v10485_v24  ;;  %v3759_v36 = vsel %vm10455_vm12, %v3614_v6, 0.0  ;;  %v10489_v57 = vpack.c.bf16 %v3614_v6, %v3613_v12  ;;  %v3585_v30 = vadd.f32 %v10215_v45, %v3548_v38  ;;  %v3512_v10 = vadd.f32 %v3447_v52, %v10156_v50  ;;  %7486 = vmatprep.mubr.bf16.mxu1 %v10485_v24  ;;  %v10503_v50 = vld [vmem:[%s11388_s5 + $0x238] sm:$0xff]   ;;  %vm10507_vm14 = vmand %vm3653_vm1, %vm3663_vm10 }
 0x323   : > { %7611 = vmatmul.mubr.bf16.gmra.mxu0 %v10485_v24  ;;  %v3783_v21 = vpack.c.bf16 %v3759_v36, %v3758_v25  ;;  %v7440_v33 = vpop.f32.mrf.mxu0  ;;  %vm11729_vm1 = vcmask 1046528  }
 0x324   : > { %7667 = vmatpush3.bf16.msra.mxu0 %v7978_v40  ;;  %v3615_v8 = vmax.f32 %v3585_v30, 0.0  ;;  %v3549_v12 = vmul.f32 %v10207_v31, %v3512_v10  ;;  %v11724_v40 = vmov 0 }
 0x325   : > { %7668 = vmatprep.subr.bf16.mxu0 %v7980_v19  ;;  %v3450_v5 = vpop.f32.mrf.mxu0  ;;  %v3873_v49 = vshll.u32 %v3783_v21, 16  ;;  %v11725_v40 = vsel %vm10507_vm14, 4294967295, %v11724_v40  ;;  %v3871_v25 = vshrl.u32 %v3783_v21, 16  ;;  %v4253_v10 = vrot.slane %v3783_v21, 1 }
 0x326   : > { %v3760_v56 = vsel %vm3730_vm13, %v3615_v8, 0.0  ;;  %v3586_v54 = vadd.f32 %v10215_v45, %v3549_v12  ;;  %v3513_v16 = vadd.f32 %v3450_v5, %v10165_v28  ;;  %vm11726_vm13 = vcmp.ge.s32.totalorder %v10217_v9, 0 }
 0x327   : > { %v3784_v46 = vpack.c.bf16 %v3760_v56, %v3760_v56  ;;  %v7441_v6 = vpop.f32.mrf.mxu0  ;;  %v3875_v38 = vrot.slane %v3873_v49, 1  ;;  %vm10517_vm10 = vmand %vm10507_vm14, %vm11726_vm13  ;;  %v11727_v28 = vmov 0  ;;  %vm11730_vm13 = vsmask.f32 7424 }
 0x328   : > { %7669 = vmatpush3.bf16.msra.mxu0 %v7980_v19  ;;  %v3550_v44 = vmul.f32 %v10207_v31, %v3513_v16  ;;  %v3616_v52 = vmax.f32 %v3586_v54, 0.0  ;;  %v11728_v28 = vsel %vm10517_vm10, 4294967295, %v11727_v28  ;;  %v3637_v16 = vadd.s32 7, %v10209_v18 }
 0x329   : > { %7718 = vmatprep.subr.bf16.mxu0 %v10503_v50  ;;  %v3455_v36 = vpop.f32.mrf.mxu0  ;;  %v3878_v30 = vshll.u32 %v3784_v46, 16  ;;  %v4254_v33 = vrot.slane %v3784_v46, 1  ;;  %v3876_v5 = vor.u32 %v3875_v38, %v3871_v25 }
 0x32a   : > { %v3587_v19 = vadd.f32 %v10215_v45, %v3550_v44  ;;  %v3514_v8 = vadd.f32 %v3455_v36, %v10168_v3  ;;  %v3761_v46 = vsel %vm10517_vm10, %v3616_v52, 0.0  ;;  %vm3654_vm10 = vcmp.ge.s32.totalorder %v3637_v16, 0 }
 0x32b   : > { %v7444_v12 = vpop.f32.mrf.mxu0  ;;  %v3880_v49 = vrot.slane %v3878_v30, 1  ;;  %v10524_v56 = vsel %vm11729_vm1, %v4253_v10, %v4254_v33  ;;  %vm11732_vm1 = vcmp.lt.s32.totalorder %v10230_v7, 16  ;;  %vm3664_vm12 = vcmp.lt.s32.totalorder %v3637_v16, 16 }
 0x32c   : > { %v3617_v21 = vmax.f32 %v3587_v19, 0.0  ;;  %v3551_v54 = vmul.f32 %v10207_v31, %v3514_v8  ;;  %vm10548_vm3 = vmand %vm3654_vm10, %vm3664_vm12  ;;  %vm11738_vm12 = vcmask 1046528   ;;  %vm11739_vm10 = vsmask.f32 7424 }
 0x32d   : > { %v3458_v6 = vpop.f32.mrf.mxu0  ;;  %v10531_v24 = vsel %vm11730_vm13, %v3876_v5, %v3880_v49  ;;  %vm3733_vm13 = vmand %vm10507_vm14, %vm11732_vm1  ;;  %vm11735_vm1 = vcmp.ge.s32.totalorder %v10217_v9, 0  ;;  %v7991_v49 = vld [vmem:[%s11388_s5 + $0xf8] sm:$0xff]  }
 0x32e   : > { %11731 = vst [vmem:[#allocation15_spill] sm:$0xff] %v10531_v24  ;;  %v3762_v3 = vsel %vm10507_vm14, %v3617_v21, 0.0  ;;  %v10535_v38 = vpack.c.bf16 %v3617_v21, %v3616_v52  ;;  %v3588_v44 = vadd.f32 %v10215_v45, %v3551_v54  ;;  %v3515_v25 = vadd.f32 %v3458_v6, %v10171_v35  ;;  %7487 = vmatmul.mubr.bf16.gmra.mxu1 %v10531_v24 }
 0x32f   : > { %7614 = vmatprep.mubr.bf16.mxu0 %v10531_v24  ;;  %v3785_v36 = vpack.c.bf16 %v3762_v3, %v3761_v46  ;;  %v7445_v30 = vpop.f32.mrf.mxu0 }
 0x330   : > { %v3618_v10 = vmax.f32 %v3588_v44, 0.0  ;;  %v3552_v33 = vmul.f32 %v10207_v31, %v3515_v25 }
 0x331   : > { %v3463_v52 = vpop.f32.mrf.mxu0  ;;  %v3885_v19 = vshll.u32 %v3785_v36, 16  ;;  %v3883_v6 = vshrl.u32 %v3785_v36, 16  ;;  %v4256_v25 = vrot.slane %v3785_v36, 1 }
 0x332   : > { %v3763_v8 = vsel %vm3733_vm13, %v3618_v10, 0.0  ;;  %v3589_v35 = vadd.f32 %v10215_v45, %v3552_v33  ;;  %v3516_v12 = vadd.f32 %v3463_v52, %v10180_v60  ;;  %vm10557_vm13 = vmand %vm10548_vm3, %vm11735_vm1  ;;  %v11736_v60 = vmov 0 }
 0x333   : > { %v3786_v5 = vpack.c.bf16 %v3763_v8, %v3763_v8  ;;  %v7448_v21 = vpop.f32.mrf.mxu0  ;;  %v3887_v54 = vrot.slane %v3885_v19, 1  ;;  %v11737_v60 = vsel %vm10557_vm13, 4294967295, %v11736_v60  ;;  %vm11740_vm1 = vcmp.lt.s32.totalorder %v10230_v7, 16 }
 0x334   : > { %v3553_v46 = vmul.f32 %v10207_v31, %v3516_v12  ;;  %v3619_v3 = vmax.f32 %v3589_v35, 0.0 }
 0x335   : > { %v3466_v44 = vpop.f32.mrf.mxu0  ;;  %v3890_v16 = vshll.u32 %v3786_v5, 16  ;;  %v4257_v30 = vrot.slane %v3786_v5, 1  ;;  %v3888_v19 = vor.u32 %v3887_v54, %v3883_v6  ;;  %v3638_v5 = vadd.s32 8, %v10209_v18 }
 0x336   : > { %v3590_v10 = vadd.f32 %v10215_v45, %v3553_v46  ;;  %v3517_v33 = vadd.f32 %v3466_v44, %v10183_v1  ;;  %v3764_v21 = vsel %vm10557_vm13, %v3619_v3, 0.0 }
 0x337   : > { %v7449_v52 = vpop.f32.mrf.mxu0  ;;  %v3892_v8 = vrot.slane %v3890_v16, 1  ;;  %v10564_v35 = vsel %vm11738_vm12, %v4256_v25, %v4257_v30  ;;  %vm3736_vm12 = vmand %vm10548_vm3, %vm11740_vm1  ;;  %vm3665_vm13 = vcmp.lt.s32.totalorder %v3638_v5, 16  ;;  %vm11743_vm1 = vcmp.ge.s32.totalorder %v10217_v9, 0 }
 0x338   : > { %v3620_v36 = vmax.f32 %v3590_v10, 0.0  ;;  %v3554_v12 = vmul.f32 %v10207_v31, %v3517_v33 }
 0x339   : > { %v3471_v24 = vpop.f32.mrf.mxu0  ;;  %v10571_v2 = vsel %vm11739_vm10, %v3888_v19, %v3892_v8  ;;  %vm3655_vm10 = vcmp.ge.s32.totalorder %v3638_v5, 0  ;;  %v11779_v19 = vld [vmem:[#allocation14_spill] sm:$0xff] }
 0x33a   : > { %v3765_v1 = vsel %vm10548_vm3, %v3620_v36, 0.0  ;;  %v10575_v54 = vpack.c.bf16 %v3620_v36, %v3619_v3  ;;  %v3591_v46 = vadd.f32 %v10215_v45, %v3554_v12  ;;  %v3518_v6 = vadd.f32 %v3471_v24, %v10186_v14  ;;  %7490 = vmatprep.mubr.bf16.mxu1 %v10571_v2  ;;  %7615 = vmatmul.mubr.bf16.gmra.mxu0 %v10571_v2  ;;  %vm10588_vm14 = vmand %vm3655_vm10, %vm3665_vm13 }
 0x33b   : > { %v3787_v44 = vpack.c.bf16 %v3765_v1, %v3764_v21  ;;  %v7452_v16 = vpop.f32.mrf.mxu0  ;;  %vm11746_vm13 = vcmask 1046528   ;;  %vm6168_vm10 = vmpackc.low %vm10224_vm9, %vm10236_vm11  ;;  %vm11748_vm9 = vcmp.lt.s32.totalorder %v10230_v7, 16 }
 0x33c   : > { %v3621_v25 = vmax.f32 %v3591_v46, 0.0  ;;  %v3555_v30 = vmul.f32 %v10207_v31, %v3518_v6  ;;  %vm3739_vm11 = vmand %vm10588_vm14, %vm11748_vm9 }
 0x33d   : > { %v3474_v3 = vpop.f32.mrf.mxu0  ;;  %v3897_v10 = vshll.u32 %v3787_v44, 16  ;;  %v3895_v21 = vshrl.u32 %v3787_v44, 16  ;;  %v4259_v6 = vrot.slane %v3787_v44, 1 }
 0x33e   : > { %v3766_v33 = vsel %vm3736_vm12, %v3621_v25, 0.0  ;;  %v3592_v14 = vadd.f32 %v10215_v45, %v3555_v30  ;;  %v3519_v24 = vadd.f32 %v3474_v3, %v10189_v47  ;;  %vm10597_vm12 = vmand %vm10588_vm14, %vm11743_vm1  ;;  %v11744_v47 = vmov 0 }
 0x33f   : > { %v3788_v52 = vpack.c.bf16 %v3766_v33, %v3766_v33  ;;  %v7453_v8 = vpop.f32.mrf.mxu0  ;;  %v3899_v36 = vrot.slane %v3897_v10, 1  ;;  %v11745_v47 = vsel %vm10597_vm12, 4294967295, %v11744_v47  ;;  %vm11747_vm1 = vsmask.f32 7424 }
 0x340   : > { %v3556_v12 = vmul.f32 %v10207_v31, %v3519_v24  ;;  %v3622_v1 = vmax.f32 %v3592_v14, 0.0 }
 0x341   : > { %v3479_v46 = vpop.f32.mrf.mxu0  ;;  %v3902_v5 = vshll.u32 %v3788_v52, 16  ;;  %v4260_v16 = vrot.slane %v3788_v52, 1  ;;  %v3900_v10 = vor.u32 %v3899_v36, %v3895_v21  ;;  %v3639_v52 = vadd.s32 9, %v10209_v18 }
 0x342   : > { %v3593_v25 = vadd.f32 %v10215_v45, %v3556_v12  ;;  %v3520_v30 = vadd.f32 %v3479_v46, %v10192_v48  ;;  %v3767_v8 = vsel %vm10597_vm12, %v3622_v1, 0.0  ;;  %vm11507_vm12 = vmpackc.low %vm10260_vm0, %vm10269_vm2 }
 0x343   : > { %v7456_v3 = vpop.f32.mrf.mxu0  ;;  %v3904_v33 = vrot.slane %v3902_v5, 1  ;;  %v10604_v14 = vsel %vm11746_vm13, %v4259_v6, %v4260_v16  ;;  %vm3656_vm13 = vcmp.ge.s32.totalorder %v3639_v52, 0 }
 0x344   : > { %v3623_v44 = vmax.f32 %v3593_v25, 0.0  ;;  %v3557_v24 = vmul.f32 %v10207_v31, %v3520_v30 }
 0x345   : > { %v3482_v48 = vpop.f32.mrf.mxu0  ;;  %v10615_v36 = vsel %vm11747_vm1, %v3900_v10, %v3904_v33  ;;  %vm3666_vm1 = vcmp.lt.s32.totalorder %v3639_v52, 16 }
 0x346   : > { %v3768_v12 = vsel %vm10588_vm14, %v3623_v44, 0.0  ;;  %v10619_v21 = vpack.c.bf16 %v3623_v44, %v3622_v1  ;;  %v3594_v46 = vadd.f32 %v10215_v45, %v3557_v24  ;;  %v3521_v53 = vadd.f32 %v3482_v48, %v10195_v13  ;;  %7491 = vmatmul.mubr.bf16.gmra.mxu1 %v10615_v36  ;;  %7618 = vmatprep.mubr.bf16.mxu0 %v10615_v36  ;;  %vm10637_vm9 = vmand %vm3656_vm13, %vm3666_vm1 }
 0x347   : > { %v3789_v18 = vpack.c.bf16 %v3768_v12, %v3767_v8  ;;  %v7457_v63 = vpop.f32.mrf.mxu0  ;;  %7510 = vmatprep.mubr.msk.bf16.mxu1 %vm6168_vm10, %v10249_v17  ;;  %vm10646_vm10 = vmpackc.low %vm10296_vm7, %vm10305_vm8  ;;  %vm11753_vm7 = vcmp.ge.s32.totalorder %v10217_v9, 0  ;;  %vm11757_vm13 = vsmask.f32 7424  ;;  %vm11758_vm1 = vcmp.lt.s32.totalorder %v10230_v7, 16  ;;  %v7997_v17 = vld [vmem:[%s11388_s5 + $0xe0] sm:$0xff]  }
 0x348   : > { %v3624_v5 = vmax.f32 %v3594_v46, 0.0  ;;  %v3558_v1 = vmul.f32 %v10207_v31, %v3521_v53  ;;  %vm10669_vm8 = vmand %vm10637_vm9, %vm11753_vm7 }
 0x349   : > { %v3487_v6 = vpop.f32.mrf.mxu0  ;;  %v4629_v13 = vshll.u32 %v3789_v18, 16  ;;  %v4627_v8 = vshrl.u32 %v3789_v18, 16  ;;  %v4819_v12 = vrot.slane %v3789_v18, 1  ;;  %vm3742_vm7 = vmand %vm10637_vm9, %vm11758_vm1  ;;  %vm11768_vm1 = vnez %v11728_v28  ;;  %v10783_v28 = vld [vmem:[%s11388_s5 + $0x220] sm:$0xff]  }
 0x34a   : > { %v3769_v16 = vsel %vm3739_vm11, %v3624_v5, 0.0  ;;  %v3595_v25 = vadd.f32 %v10215_v45, %v3558_v1  ;;  %v3522_v30 = vadd.f32 %v3487_v6, %v10198_v51  ;;  %v7977_v51 = vld [vmem:[%s11388_s5 + $0xb0] sm:$0xff]   ;;  %vm11756_vm11 = vcmask 1046528  }
 0x34b   : > { %v3790_v3 = vpack.c.bf16 %v3769_v16, %v3769_v16  ;;  %v7460_v10 = vpop.f32.mrf.mxu0  ;;  %v4631_v33 = vrot.slane %v4629_v13, 1 }
 0x34c   : > { %v3559_v44 = vmul.f32 %v10207_v31, %v3522_v30  ;;  %v3625_v53 = vmax.f32 %v3595_v25, 0.0 }
 0x34d   : > { %v3490_v52 = vpop.f32.mrf.mxu0  ;;  %v4634_v48 = vshll.u32 %v3790_v3, 16  ;;  %v4820_v46 = vrot.slane %v3790_v3, 1  ;;  %v4632_v42 = vor.u32 %v4631_v33, %v4627_v8 }
 0x34e   : > { %v3596_v63 = vadd.f32 %v10215_v45, %v3559_v44  ;;  %v3523_v39 = vadd.f32 %v3490_v52, %v10202_v27  ;;  %7511 = vmatmul.mubr.msk.bf16.vlgmr.msra.gmra.mxu1 %vm11507_vm12, %v10285_v61  ;;  %v10729_v52 = vld [vmem:[%s11388_s5 + $0x230] sm:$0xff]   ;;  %v7998_v27 = vld [vmem:[%s11388_s5 + $0xd8] sm:$0xff]  }
 0x34f   : > { %7514 = vmatprep.mubr.msk.bf16.mxu1 %vm10646_vm10, %v10324_v55  ;;  %7527 = vmatpush3.bf16.msra.mxu1 %v10448_v32  ;;  %v4636_v18 = vrot.slane %v4634_v48, 1  ;;  %v10674_v5 = vsel %vm11756_vm11, %v4819_v12, %v4820_v46  ;;  %v7461_v1 = vpop.f32.mrf.mxu0  ;;  %v7979_v32 = vld [vmem:[%s11388_s5 + $0xa8] sm:$0xff]   ;;  %vm10702_vm11 = vmpackc.low %vm10339_vm4, %vm10351_vm5  ;;  %vm11763_vm4 = vnez %v11720_v11  ;;  %vm11764_vm5 = vnez %v11718_v15  ;;  %v7985_v15 = vld [vmem:[%s11388_s5 + $0x90] sm:$0xff]  }
 0x350   : > { %v3626_v6 = vmax.f32 %v3596_v63, 0.0  ;;  %v3560_v13 = vmul.f32 %v10207_v31, %v3523_v39  ;;  %7528 = vmatprep.subr.bf16.mxu1 %v7977_v51  ;;  %v3770_v31 = vsel %vm10669_vm8, %v3625_v53, 0.0 }
 0x351   : > { %v10681_v9 = vsel %vm11757_vm13, %v4632_v42, %v4636_v18  ;;  %vm10710_vm13 = vmpackc.low %vm10395_vm15, %vm10410_vm6  ;;  %vm11767_vm6 = vcmask 1046528   ;;  %v10764_v42 = vld [vmem:[%s11388_s5 + $0x228] sm:$0xff]  }
 0x352   : > { %v3771_v16 = vsel %vm10637_vm9, %v3626_v6, 0.0  ;;  %v10685_v25 = vpack.c.bf16 %v3626_v6, %v3625_v53  ;;  %v3597_v30 = vadd.f32 %v10215_v45, %v3560_v13  ;;  %7619 = vmatmul.mubr.bf16.gmra.mxu0 %v10681_v9  ;;  %vm10741_vm15 = vmpackc.low %vm11764_vm5, %vm11763_vm4  ;;  %vm11772_vm4 = vsmask.f32 7424  ;;  %v7989_v6 = vld [vmem:[%s11388_s5 + $0x80] sm:$0xff]   ;;  %v10807_v13 = vld [vmem:[%s11388_s5 + $0x218] sm:$0xff]  }
 0x353   : > { %7529 = vmatpush3.bf16.msra.mxu1 %v7977_v51  ;;  %7670 = vmatprep.mubr.msk.bf16.mxu0 %vm10646_vm10, %v10324_v55  ;;  %v3791_v7 = vpack.c.bf16 %v3771_v16, %v3770_v31  ;;  %vm11773_vm5 = vnez %v11737_v60  ;;  %v10825_v60 = vld [vmem:[%s11388_s5 + $0x210] sm:$0xff]   ;;  %v7995_v16 = vld [vmem:[%s11388_s5 + $0xe8] sm:$0xff]  }
 0x354   : > { %v3627_v3 = vmax.f32 %v3597_v30, 0.0  ;;  %7530 = vmatprep.subr.bf16.mxu1 %v7979_v32  ;;  %v10860_v30 = vld [vmem:[%s11388_s5 + $0x200] sm:$0xff]   ;;  %v8000_v31 = vld [vmem:[%s11388_s5 + $0xc8] sm:$0xff]  }
 0x355   : > { %v5182_v23 = vshll.u32 %v3791_v7, 16  ;;  %v5180_v8 = vshrl.u32 %v3791_v7, 16  ;;  %v5372_v12 = vrot.slane %v3791_v7, 1  ;;  %v8001_v7 = vld [vmem:[%s11388_s5 + $0xc0] sm:$0xff]  }
 0x356   : > { %v3772_v33 = vsel %vm3742_vm7, %v3627_v3, 0.0  ;;  %7515 = vmatmul.mubr.msk.bf16.gmra.mxu1 %vm10702_vm11, %v10375_v4  ;;  %vm11769_vm7 = vnez %v11725_v40  ;;  %v7987_v40 = vld [vmem:[%s11388_s5 + $0x88] sm:$0xff]   ;;  %v8002_v3 = vld [vmem:[%s11388_s5 + $0x178] sm:$0xff]  }
 0x357   : > { %v3792_v44 = vpack.c.bf16 %v3772_v33, %v3772_v33  ;;  %7518 = vmatprep.mubr.msk.bf16.mxu1 %vm10710_vm13, %v10434_v41  ;;  %7531 = vmatpush3.bf16.msra.mxu1 %v7979_v32  ;;  %v5184_v20 = vrot.slane %v5182_v23, 1  ;;  %vm10753_vm12 = vmpackc.low %vm11769_vm7, %vm11768_vm1  ;;  %v10844_v32 = vld [vmem:[%s11388_s5 + $0x208] sm:$0xff]  }
 0x358   : > { %7532 = vmatprep.subr.bf16.mxu1 %v7981_v62  ;;  %vm6357_vm7 = vmpackc.low %vm10637_vm9, %vm10669_vm8 }
 0x359   : > { %v5373_v51 = vrot.slane %v3792_v44, 1  ;;  %v5187_v48 = vshll.u32 %v3792_v44, 16  ;;  %v5185_v53 = vor.u32 %v5184_v20, %v5180_v8  ;;  %vm11777_vm9 = vmpackc.low %vm10260_vm0, %vm10269_vm2 }
 0x35a   : > { %7671 = vmatmul.mubr.msk.bf16.vlgmr.msra.gmra.mxu0 %vm10702_vm11, %v10375_v4 }
 0x35b   : > { %7533 = vmatpush3.bf16.msra.mxu1 %v7981_v62  ;;  %7674 = vmatprep.mubr.msk.bf16.mxu0 %vm10710_vm13, %v10434_v41  ;;  %v5189_v63 = vrot.slane %v5187_v48, 1  ;;  %v10746_v39 = vsel %vm11767_vm6, %v5372_v12, %v5373_v51  ;;  %vm10795_vm6 = vmpackc.low %vm10548_vm3, %vm11773_vm5  ;;  %vm11776_vm3 = vnez %v11745_v47  ;;  %v8003_v62 = vld [vmem:[%s11388_s5 + $0x170] sm:$0xff]  }
 0x35c   : > { %7719 = vmatpush3.bf16.msra.mxu0 %v10503_v50  ;;  %7534 = vmatprep.subr.bf16.mxu1 %v7983_v26  ;;  %vm6261_vm1 = vmpackc.low %vm10588_vm14, %vm11776_vm3  ;;  %v11780_v47 = vld [vmem:[#allocation15_spill] sm:$0xff] }
 0x35d   : > { %7720 = vmatprep.subr.bf16.mxu0 %v10729_v52  ;;  %v10767_v18 = vsel %vm11772_vm4, %v5185_v53, %v5189_v63 }
 0x35e   : > { %7519 = vmatmul.mubr.msk.bf16.gmra.mxu1 %vm10741_vm15, %v10489_v57 }
 0x35f   : > { %7522 = vmatprep.mubr.msk.bf16.mxu1 %vm10753_vm12, %v10535_v38  ;;  %7535 = vmatpush3.bf16.msra.mxu1 %v7983_v26 }
 0x360   : > { %7721 = vmatpush3.bf16.msra.mxu0 %v10729_v52  ;;  %7536 = vmatprep.subr.bf16.mxu1 %v7985_v15 }
 0x361   : > { %7722 = vmatprep.subr.bf16.mxu0 %v10764_v42 }
 0x362   : > { %7675 = vmatmul.mubr.msk.bf16.gmra.mxu0 %vm10741_vm15, %v10489_v57 }
 0x363   : > { %7537 = vmatpush3.bf16.msra.mxu1 %v7985_v15  ;;  %7678 = vmatprep.mubr.msk.bf16.mxu0 %vm10753_vm12, %v10535_v38 }
 0x364   : > { %7723 = vmatpush3.bf16.msra.mxu0 %v10764_v42  ;;  %7538 = vmatprep.subr.bf16.mxu1 %v7987_v40 }
 0x365   : > { %7724 = vmatprep.subr.bf16.mxu0 %v10783_v28 }
 0x366   : > { %7523 = vmatmul.mubr.msk.bf16.gmra.mxu1 %vm10795_vm6, %v10575_v54 }
 0x367   : > { %7539 = vmatpush3.bf16.msra.mxu1 %v7987_v40  ;;  %7542 = vmatprep.mubr.bf16.mxu1 %v10276_v0  ;;  %v7993_v0 = vld [vmem:[%s11388_s5 + $0xf0] sm:$0xff]  }
 0x368   : > { %7725 = vmatpush3.bf16.msra.mxu0 %v10783_v28  ;;  %7540 = vmatprep.subr.bf16.mxu1 %v7989_v6 }
 0x369   : > { %7726 = vmatprep.subr.bf16.mxu0 %v10807_v13 }
 0x36a   : > { %7679 = vmatmul.mubr.msk.bf16.gmra.mxu0 %vm10795_vm6, %v10575_v54 }
 0x36b   : > { %7541 = vmatpush3.bf16.msra.mxu1 %v7989_v6  ;;  %7682 = vmatprep.mubr.msk.bf16.mxu0 %vm6261_vm1, %v10619_v21 }
 0x36c   : > { %7727 = vmatpush3.bf16.msra.mxu0 %v10807_v13  ;;  %7558 = vmatprep.subr.bf16.mxu1 %v7991_v49 }
 0x36d   : > { %7728 = vmatprep.subr.bf16.mxu0 %v10825_v60 }
 0x36e   : > { %7543 = vmatmul.mubr.bf16.vlgmr.msra.gmra.mxu1 %v10312_v43 }
 0x36f   : > { %7546 = vmatprep.mubr.bf16.mxu1 %v10358_v29  ;;  %7559 = vmatpush3.bf16.msra.mxu1 %v7991_v49 }
 0x370   : > { %7729 = vmatpush3.bf16.msra.mxu0 %v10825_v60  ;;  %7560 = vmatprep.subr.bf16.mxu1 %v7993_v0 }
 0x371   : > { %7730 = vmatprep.subr.bf16.mxu0 %v10844_v32 }
 0x372   : > { %7683 = vmatmul.mubr.msk.bf16.gmra.mxu0 %vm6357_vm7, %v10685_v25  ;;  %v7999_v25 = vld [vmem:[%s11388_s5 + $0xd0] sm:$0xff]  }
 0x373   : > { %7561 = vmatpush3.bf16.msra.mxu1 %v7993_v0  ;;  %7734 = vmatprep.mubr.bf16.mxu0 %v10358_v29 }
 0x374   : > { %7731 = vmatpush3.bf16.msra.mxu0 %v10844_v32  ;;  %7562 = vmatprep.subr.bf16.mxu1 %v7995_v16 }
 0x375   : > { %7732 = vmatprep.subr.bf16.mxu0 %v10860_v30 }
 0x376   : > { %7547 = vmatmul.mubr.bf16.gmra.mxu1 %v10417_v37 }
 0x377   : > { %7550 = vmatprep.mubr.bf16.mxu1 %v10475_v34  ;;  %7563 = vmatpush3.bf16.msra.mxu1 %v7995_v16 }
 0x378   : > { %7733 = vmatpush3.bf16.msra.mxu0 %v10860_v30  ;;  %7564 = vmatprep.subr.bf16.mxu1 %v7997_v17 }
 0x37b   : > { %7735 = vmatmul.mubr.bf16.vlgmr.msra.gmra.mxu0 %v10417_v37  ;;  %7565 = vmatpush3.bf16.msra.mxu1 %v7997_v17 }
 0x37c   : > { %7738 = vmatprep.mubr.bf16.mxu0 %v10475_v34  ;;  %7566 = vmatprep.subr.bf16.mxu1 %v7998_v27 }
 0x37e   : > { %7551 = vmatmul.mubr.bf16.gmra.mxu1 %v10524_v56 }
 0x37f   : > { %7554 = vmatprep.mubr.bf16.mxu1 %v10564_v35  ;;  %7567 = vmatpush3.bf16.msra.mxu1 %v7998_v27 }
 0x380   : > { %7568 = vmatprep.subr.bf16.mxu1 %v7999_v25 }
 0x383   : > { %7739 = vmatmul.mubr.bf16.gmra.mxu0 %v10524_v56  ;;  %7569 = vmatpush3.bf16.msra.mxu1 %v7999_v25 }
 0x384   : > { %7742 = vmatprep.mubr.bf16.mxu0 %v10564_v35  ;;  %7570 = vmatprep.subr.bf16.mxu1 %v8000_v31 }
 0x386   : > { %7555 = vmatmul.mubr.bf16.gmra.mxu1 %v10604_v14 }
 0x387   : > { %7571 = vmatpush3.bf16.msra.mxu1 %v8000_v31  ;;  %7574 = vmatprep.mubr.msk.bf16.mxu1 %vm11777_vm9, %v10285_v61  ;;  %v8006_v61 = vld [vmem:[%s11388_s5 + $0x158] sm:$0xff]  }
 0x388   : > { %7572 = vmatprep.subr.bf16.mxu1 %v8001_v7 }
 0x38b   : > { %7743 = vmatmul.mubr.bf16.gmra.mxu0 %v10604_v14  ;;  %7573 = vmatpush3.bf16.msra.mxu1 %v8001_v7 }
 0x38c   : > { %7622 = vmatprep.subr.bf16.mxu1 %v8002_v3 }
 0x38e   : > { %7575 = vmatmul.mubr.msk.bf16.vlgmr.msra.gmra.mxu1 %vm10646_vm10, %v10324_v55  ;;  %v8007_v55 = vld [vmem:[%s11388_s5 + $0x150] sm:$0xff]  }
 0x38f   : > { %7578 = vmatprep.mubr.msk.bf16.mxu1 %vm10702_vm11, %v10375_v4  ;;  %7623 = vmatpush3.bf16.msra.mxu1 %v8002_v3  ;;  %v8008_v4 = vld [vmem:[%s11388_s5 + $0x148] sm:$0xff]  }
 0x390   : > { %7624 = vmatprep.subr.bf16.mxu1 %v8003_v62 }
 0x393   : > { %7625 = vmatpush3.bf16.msra.mxu1 %v8003_v62 }
 0x394   : > { %7626 = vmatprep.subr.bf16.mxu1 %v8004_v22 }
 0x396   : > { %7579 = vmatmul.mubr.msk.bf16.gmra.mxu1 %vm10710_vm13, %v10434_v41  ;;  %v8009_v41 = vld [vmem:[%s11388_s5 + $0x140] sm:$0xff]  }
 0x397   : > { %7582 = vmatprep.mubr.msk.bf16.mxu1 %vm10741_vm15, %v10489_v57  ;;  %7627 = vmatpush3.bf16.msra.mxu1 %v8004_v22  ;;  %v8010_v57 = vld [vmem:[%s11388_s5 + $0x1f8] sm:$0xff]  }
 0x398   : > { %7628 = vmatprep.subr.bf16.mxu1 %v8005_v59 }
 0x39b   : > { %7629 = vmatpush3.bf16.msra.mxu1 %v8005_v59 }
 0x39c   : > { %7630 = vmatprep.subr.bf16.mxu1 %v8006_v61 }
 0x39e   : > { %7583 = vmatmul.mubr.msk.bf16.gmra.mxu1 %vm10753_vm12, %v10535_v38  ;;  %v8011_v38 = vld [vmem:[%s11388_s5 + $0x1f0] sm:$0xff]  }
 0x39f   : > { %7586 = vmatprep.mubr.msk.bf16.mxu1 %vm10795_vm6, %v10575_v54  ;;  %7631 = vmatpush3.bf16.msra.mxu1 %v8006_v61  ;;  %v8013_v54 = vld [vmem:[%s11388_s5 + $0x1e0] sm:$0xff]  }
 0x3a0   : > { %7632 = vmatprep.subr.bf16.mxu1 %v8007_v55 }
 0x3a3   : > { %7633 = vmatpush3.bf16.msra.mxu1 %v8007_v55 }
 0x3a4   : > { %7634 = vmatprep.subr.bf16.mxu1 %v8008_v4 }
 0x3a6   : > { %7587 = vmatmul.mubr.msk.bf16.gmra.mxu1 %vm6261_vm1, %v10619_v21 }
 0x3a7   : > { %7635 = vmatpush3.bf16.msra.mxu1 %v8008_v4  ;;  %7638 = vmatprep.mubr.bf16.mxu1 %v10312_v43  ;;  %v8012_v43 = vld [vmem:[%s11388_s5 + $0x1e8] sm:$0xff]  }
 0x3a8   : > { %7636 = vmatprep.subr.bf16.mxu1 %v8009_v41 }
 0x3ab   : > { %7637 = vmatpush3.bf16.msra.mxu1 %v8009_v41 }
 0x3ac   : > { %7686 = vmatprep.subr.bf16.mxu1 %v8010_v57 }
 0x3ae   : > { %7639 = vmatmul.mubr.bf16.vlgmr.msra.gmra.mxu1 %v10358_v29  ;;  %v8014_v29 = vld [vmem:[%s11388_s5 + $0x1d8] sm:$0xff]  }
 0x3af   : > { %7642 = vmatprep.mubr.bf16.mxu1 %v10417_v37  ;;  %7687 = vmatpush3.bf16.msra.mxu1 %v8010_v57  ;;  %v8015_v37 = vld [vmem:[%s11388_s5 + $0x1d0] sm:$0xff]  }
 0x3b0   : > { %7688 = vmatprep.subr.bf16.mxu1 %v8011_v38 }
 0x3b3   : > { %7689 = vmatpush3.bf16.msra.mxu1 %v8011_v38 }
 0x3b4   : > { %7690 = vmatprep.subr.bf16.mxu1 %v8012_v43 }
 0x3b6   : > { %7643 = vmatmul.mubr.bf16.gmra.mxu1 %v10475_v34  ;;  %v8016_v34 = vld [vmem:[%s11388_s5 + $0x1c8] sm:$0xff]  }
 0x3b7   : > { %7646 = vmatprep.mubr.bf16.mxu1 %v10524_v56  ;;  %7691 = vmatpush3.bf16.msra.mxu1 %v8012_v43  ;;  %v8017_v56 = vld [vmem:[%s11388_s5 + $0x1c0] sm:$0xff]  }
 0x3b8   : > { %7692 = vmatprep.subr.bf16.mxu1 %v8013_v54 }
 0x3bb   : > { %7693 = vmatpush3.bf16.msra.mxu1 %v8013_v54 }
 0x3bc   : > { %7694 = vmatprep.subr.bf16.mxu1 %v8014_v29 }
 0x3be   : > { %7647 = vmatmul.mubr.bf16.gmra.mxu1 %v10564_v35  ;;  %v11778_v35 = vld [vmem:[#allocation13_spill] sm:$0xff] }
 0x3bf   : > { %7650 = vmatprep.mubr.bf16.mxu1 %v10604_v14  ;;  %7695 = vmatpush3.bf16.msra.mxu1 %v8014_v29 }
 0x3c0   : > { %7696 = vmatprep.subr.bf16.mxu1 %v8015_v37 }
 0x3c3   : > { %7697 = vmatpush3.bf16.msra.mxu1 %v8015_v37 }
 0x3c4   : > { %7698 = vmatprep.subr.bf16.mxu1 %v8016_v34 }
 0x3c6   : > { %7651 = vmatmul.mubr.bf16.gmra.mxu1 %v10674_v5 }
 0x3c7   : > { %7699 = vmatpush3.bf16.msra.mxu1 %v8016_v34  ;;  %7702 = vmatprep.mubr.bf16.mxu1 %v10371_v58  ;;  %v10991_v58 = vpop.f32.mrf.mxu1 }
 0x3c8   : > { %7700 = vmatprep.subr.bf16.mxu1 %v8017_v56 }
 0x3ca   : > { %v11010_v33 = vpop.f32.mrf.mxu0 }
 0x3cb   : > { %7701 = vmatpush3.bf16.msra.mxu1 %v8017_v56 }
 0x3cc   : > { %7750 = vmatprep.subr.bf16.mxu1 %v10503_v50  ;;  %v11012_v20 = vpop.f32.mrf.mxu0 }
 0x3ce   : > { %7703 = vmatmul.mubr.bf16.vlgmr.msra.gmra.mxu1 %v11778_v35  ;;  %v11014_v51 = vpop.f32.mrf.mxu0 }
 0x3cf   : > { %7706 = vmatprep.mubr.bf16.mxu1 %v11779_v19  ;;  %7758 = vmatpush3.bf16.msra.mxu1 %v10503_v50  ;;  %v10997_v50 = vpop.f32.mrf.mxu1 }
 0x3d0   : > { %7751 = vmatprep.subr.bf16.mxu1 %v10729_v52  ;;  %v11016_v48 = vpop.f32.mrf.mxu0 }
 0x3d3   : > { %7759 = vmatpush3.bf16.msra.mxu1 %v10729_v52 }
 0x3d4   : > { %7752 = vmatprep.subr.bf16.mxu1 %v10764_v42 }
 0x3d6   : > { %7707 = vmatmul.mubr.bf16.gmra.mxu1 %v11780_v47 }
 0x3d7   : > { %7710 = vmatprep.mubr.bf16.mxu1 %v10571_v2  ;;  %7760 = vmatpush3.bf16.msra.mxu1 %v10764_v42  ;;  %v11001_v2 = vpop.f32.mrf.mxu1 }
 0x3d8   : > { %7753 = vmatprep.subr.bf16.mxu1 %v10783_v28 }
 0x3d9   : > { %v4016_v14 = vpop.f32.mrf.mxu1 }
 0x3db   : > { %7761 = vmatpush3.bf16.msra.mxu1 %v10783_v28 }
 0x3dc   : > { %7754 = vmatprep.subr.bf16.mxu1 %v10807_v13 }
 0x3de   : > { %7711 = vmatmul.mubr.bf16.gmra.mxu1 %v10615_v36  ;;  %v7484_v36 = vpop.f32.mrf.mxu1 }
 0x3df   : > { %7714 = vmatprep.mubr.bf16.mxu1 %v10681_v9  ;;  %7762 = vmatpush3.bf16.msra.mxu1 %v10807_v13 }
 0x3e0   : > { %7755 = vmatprep.subr.bf16.mxu1 %v10825_v60  ;;  %v4029_v21 = vpop.f32.mrf.mxu1 }
 0x3e2   : > { %v7485_v24 = vpop.f32.mrf.mxu1 }
 0x3e3   : > { %7763 = vmatpush3.bf16.msra.mxu1 %v10825_v60  ;;  %v11018_v46 = vpop.f32.mrf.mxu0 }
 0x3e4   : > { %7756 = vmatprep.subr.bf16.mxu1 %v10844_v32  ;;  %v4032_v9 = vpop.f32.mrf.mxu1 }
 0x3e6   : > { %7715 = vmatmul.mubr.bf16.gmra.mxu1 %v10767_v18 }
 0x3e7   : > { %7764 = vmatpush3.bf16.msra.mxu1 %v10844_v32  ;;  %7746 = vmatprep.mubr.bf16.mxu1 %v10674_v5 }
 0x3e8   : > { %7757 = vmatprep.subr.bf16.mxu1 %v10860_v30 }
 0x3eb   : > { %7765 = vmatpush3.bf16.msra.mxu1 %v10860_v30 }
 0x3ee   : > { %7747 = vmatmul.mubr.bf16.vlgmr.msra.gmra.mxu1 %v10746_v39  ;;  %v7488_v45 = vpop.f32.mrf.mxu1  ;;  %v11020_v39 = vpop.f32.mrf.mxu0 }
 0x3f0   : > { %v4045_v10 = vpop.f32.mrf.mxu1  ;;  %v11022_v18 = vpop.f32.mrf.mxu0 }
 0x3f2   : > { %v7489_v23 = vpop.f32.mrf.mxu1  ;;  %v11024_v13 = vpop.f32.mrf.mxu0 }
 0x3f4   : > { %v4048_v44 = vpop.f32.mrf.mxu1 }
 0x3fa   : > { %v11026_v0 = vpop.f32.mrf.mxu0 }
 0x3fc   : > { %v11028_v27 = vpop.f32.mrf.mxu0 }
 0x3fe   : > { %v11030_v62 = vpop.f32.mrf.mxu0 }
 0x3ff   : > { %11781 = vst [vmem:[#allocation16_spill] sm:$0xff] %v11030_v62 }
 0x400   : > { %v11032_v4 = vpop.f32.mrf.mxu0 }
 0x401   : > { %11782 = vst [vmem:[#allocation17_spill] sm:$0xff] %v11032_v4 }
 0x406   : > { %v7492_v5 = vpop.f32.mrf.mxu1 }
 0x408   : > { %v4061_v26 = vpop.f32.mrf.mxu1 }
 0x40a   : > { %v7493_v52 = vpop.f32.mrf.mxu1 }
 0x40c   : > { %v4064_v8 = vpop.f32.mrf.mxu1 }
 0x40e   : > { %v7512_v12 = vpop.f32.mrf.mxu1 }
 0x40f   : > { %v4167_v29 = vadd.f32 %v7512_v12, %v10991_v58 }
 0x410   : > { %v4158_v53 = vpop.f32.mrf.mxu1 }
 0x411   : > { %v4159_v56 = vadd.f32 %v4158_v53, %v10997_v50 }
 0x412   : > { %v7513_v63 = vpop.f32.mrf.mxu1  ;;  %v11034_v38 = vpop.f32.mrf.mxu0 }
 0x413   : > { %11783 = vst [vmem:[#allocation19_spill] sm:$0xff] %v11034_v38 }
 0x414   : > { %v4161_v11 = vpop.f32.mrf.mxu1  ;;  %v11038_v35 = vpop.f32.mrf.mxu0 }
 0x415   : > { %v4162_v15 = vadd.f32 %v4161_v11, %v4016_v14  ;;  %11784 = vst [vmem:[#allocation20_spill] sm:$0xff] %v11038_v35  ;;  %v4170_v14 = vadd.f32 %v7513_v63, %v11001_v2 }
 0x416   : > { %v7516_v42 = vpop.f32.mrf.mxu1 }
 0x417   : > { %v4183_v40 = vadd.f32 %v7516_v42, %v7484_v36 }
 0x418   : > { %v4174_v28 = vpop.f32.mrf.mxu1 }
 0x419   : > { %v4175_v1 = vadd.f32 %v4174_v28, %v4029_v21 }
 0x41a   : > { %v7517_v6 = vpop.f32.mrf.mxu1 }
 0x41b   : > { %v4186_v49 = vadd.f32 %v7517_v6, %v7485_v24  ;;  %v11045_v24 = vpop.f32.mrf.mxu0 }
 0x41c   : > { %v4177_v60 = vpop.f32.mrf.mxu1  ;;  %11785 = vst [vmem:[#allocation22_spill] sm:$0xff] %v11045_v24 }
 0x41d   : > { %v4178_v32 = vadd.f32 %v4177_v60, %v4032_v9 }
 0x41e   : > { %v7520_v16 = vpop.f32.mrf.mxu1 }
 0x41f   : > { %v4199_v30 = vadd.f32 %v7520_v16, %v7488_v45 }
 0x420   : > { %v4190_v17 = vpop.f32.mrf.mxu1 }
 0x421   : > { %v4191_v25 = vadd.f32 %v4190_v17, %v4045_v10 }
 0x422   : > { %v7521_v31 = vpop.f32.mrf.mxu1 }
 0x423   : > { %v4202_v7 = vadd.f32 %v7521_v31, %v7489_v23  ;;  %v11051_v23 = vpop.f32.mrf.mxu0 }
 0x424   : > { %v4193_v3 = vpop.f32.mrf.mxu1  ;;  %11786 = vst [vmem:[#allocation23_spill] sm:$0xff] %v11051_v23 }
 0x425   : > { %v4194_v22 = vadd.f32 %v4193_v3, %v4048_v44  ;;  %v11057_v2 = vpop.f32.mrf.mxu0 }
 0x426   : > { %v7524_v59 = vpop.f32.mrf.mxu1 }
 0x427   : > { %v4215_v61 = vadd.f32 %v7524_v59, %v7492_v5  ;;  %v11063_v63 = vpop.f32.mrf.mxu0 }
 0x428   : > { %v4206_v55 = vpop.f32.mrf.mxu1 }
 0x429   : > { %v4207_v41 = vadd.f32 %v4206_v55, %v4061_v26  ;;  %v11069_v28 = vpop.f32.mrf.mxu0 }
 0x42a   : > { %v7525_v57 = vpop.f32.mrf.mxu1 }
 0x42b   : > { %v4218_v43 = vadd.f32 %v7525_v57, %v7493_v52  ;;  %v11075_v16 = vpop.f32.mrf.mxu0 }
 0x42c   : > { %v4209_v54 = vpop.f32.mrf.mxu1 }
 0x42d   : > { %v4210_v37 = vadd.f32 %v4209_v54, %v4064_v8  ;;  %v11081_v3 = vpop.f32.mrf.mxu0 }
 0x42e   : > { %v7544_v34 = vpop.f32.mrf.mxu1  ;;  %11788 = vst [vmem:[#allocation25_spill] sm:$0xff] %v11081_v3 }
 0x42f   : > { %v11040_v19 = vadd.f32 %v7544_v34, %v4167_v29  ;;  %v11087_v57 = vpop.f32.mrf.mxu0 }
 0x430   : > { %v4369_v47 = vpop.f32.mrf.mxu1  ;;  %11791 = vst [vmem:[#allocation32_spill] sm:$0xff] %v11087_v57 }
 0x431   : > { %v11043_v36 = vadd.f32 %v4369_v47, %v4159_v56  ;;  %v11089_v29 = vpop.f32.mrf.mxu0 }
 0x432   : > { %v7545_v21 = vpop.f32.mrf.mxu1  ;;  %11792 = vst [vmem:[#allocation33_spill] sm:$0xff] %v11089_v29 }
 0x433   : > { %v11047_v9 = vadd.f32 %v7545_v21, %v4170_v14  ;;  %v11091_v56 = vpop.f32.mrf.mxu0 }
 0x434   : > { %v4372_v45 = vpop.f32.mrf.mxu1  ;;  %11793 = vst [vmem:[#allocation36_spill] sm:$0xff] %v11091_v56 }
 0x435   : > { %v11049_v58 = vadd.f32 %v4372_v45, %v4162_v15  ;;  %v11093_v14 = vpop.f32.mrf.mxu0 }
 0x436   : > { %v7548_v10 = vpop.f32.mrf.mxu1  ;;  %11794 = vst [vmem:[#allocation37_spill] sm:$0xff] %v11093_v14 }
 0x437   : > { %v11053_v50 = vadd.f32 %v7548_v10, %v4183_v40  ;;  %v11095_v45 = vpop.f32.mrf.mxu0 }
 0x438   : > { %v4385_v44 = vpop.f32.mrf.mxu1  ;;  %11795 = vst [vmem:[#allocation39_spill] sm:$0xff] %v11095_v45 }
 0x439   : > { %v11055_v5 = vadd.f32 %v4385_v44, %v4175_v1  ;;  %v11101_v44 = vpop.f32.mrf.mxu0 }
 0x43a   : > { %v7549_v26 = vpop.f32.mrf.mxu1  ;;  %11796 = vst [vmem:[#allocation40_spill] sm:$0xff] %v11101_v44 }
 0x43b   : > { %v11059_v52 = vadd.f32 %v7549_v26, %v4186_v49 }
 0x43c   : > { %v4388_v8 = vpop.f32.mrf.mxu1 }
 0x43d   : > { %v11061_v12 = vadd.f32 %v4388_v8, %v4178_v32 }
 0x43e   : > { %v7552_v53 = vpop.f32.mrf.mxu1 }
 0x43f   : > { %v11065_v11 = vadd.f32 %v7552_v53, %v4199_v30  ;;  %v11107_v53 = vpop.f32.mrf.mxu0 }
 0x440   : > { %v4401_v15 = vpop.f32.mrf.mxu1  ;;  %11797 = vst [vmem:[#allocation41_spill] sm:$0xff] %v11107_v53 }
 0x441   : > { %v11067_v42 = vadd.f32 %v4401_v15, %v4191_v25 }
 0x442   : > { %v7553_v40 = vpop.f32.mrf.mxu1 }
 0x443   : > { %v11071_v1 = vadd.f32 %v7553_v40, %v4202_v7 }
 0x444   : > { %v4404_v6 = vpop.f32.mrf.mxu1 }
 0x445   : > { %v11073_v60 = vadd.f32 %v4404_v6, %v4194_v22  ;;  %v11113_v6 = vpop.f32.mrf.mxu0 }
 0x446   : > { %v7556_v49 = vpop.f32.mrf.mxu1  ;;  %11800 = vst [vmem:[#allocation45_spill] sm:$0xff] %v11113_v6 }
 0x447   : > { %v11077_v32 = vadd.f32 %v7556_v49, %v4215_v61 }
 0x448   : > { %v4417_v17 = vpop.f32.mrf.mxu1 }
 0x449   : > { %v11079_v31 = vadd.f32 %v4417_v17, %v4207_v41 }
 0x44a   : > { %v7557_v30 = vpop.f32.mrf.mxu1 }
 0x44b   : > { %11787 = vst [vmem:[#allocation24_spill] sm:$0xff] %v11079_v31  ;;  %v11083_v25 = vadd.f32 %v7557_v30, %v4218_v43  ;;  %v11117_v30 = vpop.f32.mrf.mxu0 }
 0x44c   : > { %v4420_v59 = vpop.f32.mrf.mxu1  ;;  %11802 = vst [vmem:[#allocation18_spill] sm:$0xff] %v11117_v30 }
 0x44d   : > { %11789 = vst [vmem:[#allocation28_spill] sm:$0xff] %v11083_v25  ;;  %v11085_v55 = vadd.f32 %v4420_v59, %v4210_v37  ;;  %v11119_v24 = vpop.f32.mrf.mxu0 }
 0x44e   : > { %v7576_v7 = vpop.f32.mrf.mxu1  ;;  %11803 = vst [vmem:[#allocation21_spill] sm:$0xff] %v11119_v24 }
 0x44f   : > { %11790 = vst [vmem:[#allocation29_spill] sm:$0xff] %v11085_v55  ;;  %v11121_v25 = vpop.f32.mrf.mxu0  ;;  %v4612_v24 = vadd.f32 %v7576_v7, %v11040_v19  ;;  %v11811_v19 = vld [vmem:[#allocation49_spill] sm:$0xff] }
 0x450   : > { %v4547_v22 = vpop.f32.mrf.mxu1  ;;  %11804 = vst [vmem:[#allocation27_spill] sm:$0xff] %v11121_v25 }
 0x451   : > { %v4610_v25 = vadd.f32 %v4547_v22, %v11043_v36  ;;  %v4803_v29 = vadd.f32 %v11010_v33, %v4612_v24  ;;  %v11813_v22 = vld [vmem:[#allocation53_spill] sm:$0xff] }
 0x452   : > { %v7577_v54 = vpop.f32.mrf.mxu1 }
 0x453   : > { %v4613_v56 = vadd.f32 %v7577_v54, %v11047_v9  ;;  %v11815_v54 = vld [vmem:[#allocation56_spill] sm:$0xff] }
 0x454   : > { %v4550_v61 = vpop.f32.mrf.mxu1 }
 0x455   : > { %v4804_v24 = vadd.f32 %v11014_v51, %v4613_v56 }
 0x456   : > { %v7580_v34 = vpop.f32.mrf.mxu1 }
 0x458   : > { %v4563_v41 = vpop.f32.mrf.mxu1 }
 0x45a   : > { %v7581_v47 = vpop.f32.mrf.mxu1 }
 0x45b   : > { %v4617_v7 = vadd.f32 %v7581_v47, %v11059_v52 }
 0x45c   : > { %v4566_v43 = vpop.f32.mrf.mxu1 }
 0x45d   : > { %v4615_v51 = vadd.f32 %v4566_v43, %v11061_v12 }
 0x45e   : > { %v7584_v21 = vpop.f32.mrf.mxu1 }
 0x45f   : > { %v4620_v56 = vadd.f32 %v7584_v21, %v11065_v11  ;;  %v11184_v11 = vld [vmem:[%s11389_s6] ss:$0 sm:$0xff] }
 0x460   : > { %v11097_v37 = vpop.f32.mrf.mxu1 }
 0x462   : > { %v11099_v10 = vpop.f32.mrf.mxu1 }
 0x464   : > { %v11103_v26 = vpop.f32.mrf.mxu1 }
 0x466   : > { %v11105_v8 = vpop.f32.mrf.mxu1 }
 0x468   : > { %v11109_v15 = vpop.f32.mrf.mxu1 }
 0x469   : > { %11798 = vst [vmem:[#allocation9_spill] sm:$0xff] %v11109_v15 }
 0x46a   : > { %v11111_v40 = vpop.f32.mrf.mxu1 }
 0x46b   : > { %11799 = vst [vmem:[#allocation44_spill] sm:$0xff] %v11111_v40  ;;  %v7736_v40 = vpop.f32.mrf.mxu0 }
 0x46c   : > { %v11115_v49 = vpop.f32.mrf.mxu1 }
 0x46d   : > { %11801 = vst [vmem:[#allocation74_spill] sm:$0xff] %v11115_v49  ;;  %v5475_v49 = vpop.f32.mrf.mxu0 }
 0x46e   : > { %v7640_v17 = vpop.f32.mrf.mxu1 }
 0x46f   : > { %v11135_v31 = vpop.f32.mrf.mxu0 }
 0x470   : > { %v4922_v59 = vpop.f32.mrf.mxu1 }
 0x471   : > { %v11143_v4 = vpop.f32.mrf.mxu0 }
 0x472   : > { %v7641_v23 = vpop.f32.mrf.mxu1  ;;  %11810 = vst [vmem:[#allocation43_spill] sm:$0xff] %v11143_v4  ;;  %v11814_v4 = vld [vmem:[#allocation55_spill] sm:$0xff] }
 0x473   : > { %v11157_v9 = vpop.f32.mrf.mxu0 }
 0x474   : > { %v4925_v35 = vpop.f32.mrf.mxu1 }
 0x476   : > { %v7644_v55 = vpop.f32.mrf.mxu1 }
 0x478   : > { %v11123_v53 = vpop.f32.mrf.mxu1 }
 0x47a   : > { %v11125_v44 = vpop.f32.mrf.mxu1 }
 0x47c   : > { %v11127_v38 = vpop.f32.mrf.mxu1 }
 0x47e   : > { %v11129_v6 = vpop.f32.mrf.mxu1 }
 0x47f   : > { %11805 = vst [vmem:[#allocation26_spill] sm:$0xff] %v11129_v6  ;;  %v4801_v6 = vadd.f32 %v11012_v20, %v4610_v25  ;;  %v4616_v20 = vadd.f32 %v7580_v34, %v11053_v50  ;;  %v4614_v25 = vadd.f32 %v4563_v41, %v11055_v5  ;;  %v11173_v34 = vpop.f32.mrf.mxu0 }
 0x480   : > { %v11131_v15 = vpop.f32.mrf.mxu1 }
 0x481   : > { %11806 = vst [vmem:[#allocation31_spill] sm:$0xff] %v11131_v15  ;;  %v4987_v15 = vadd.f32 %v7640_v17, %v4803_v29  ;;  %v4985_v33 = vadd.f32 %v4922_v59, %v4801_v6  ;;  %v11816_v29 = vld [vmem:[#allocation59_spill] sm:$0xff]  ;;  %v11817_v6 = vld [vmem:[#allocation62_spill] sm:$0xff]  ;;  %v4807_v47 = vadd.f32 %v11018_v46, %v4616_v20  ;;  %v4805_v12 = vadd.f32 %v11020_v39, %v4614_v25 }
 0x482   : > { %v11133_v30 = vpop.f32.mrf.mxu1  ;;  %v5626_v59 = vunpack.c.l.bf16 %v11817_v6  ;;  %v4806_v39 = vadd.f32 %v11024_v13, %v4615_v51 }
 0x483   : > { %11807 = vst [vmem:[#allocation30_spill] sm:$0xff] %v11133_v30  ;;  %v4611_v30 = vadd.f32 %v4550_v61, %v11049_v58  ;;  %v5165_v3 = vadd.f32 %v11057_v2, %v4987_v15  ;;  %v11818_v58 = vld [vmem:[#allocation77_spill] sm:$0xff]  ;;  %v5163_v52 = vadd.f32 %v11063_v63, %v4985_v33  ;;  %v4618_v2 = vadd.f32 %v11097_v37, %v11067_v42 }
 0x484   : > { %v11138_v45 = vpop.f32.mrf.mxu1  ;;  %v5616_v50 = vunpack.c.l.bf16 %v11818_v58  ;;  %v4808_v63 = vadd.f32 %v11022_v18, %v4617_v7  ;;  %v4621_v42 = vadd.f32 %v11099_v10, %v11071_v1  ;;  %v4991_v46 = vadd.f32 %v7644_v55, %v4807_v47 }
 0x485   : > { %11808 = vst [vmem:[#allocation35_spill] sm:$0xff] %v11138_v45  ;;  %v11812_v45 = vld [vmem:[#allocation50_spill] sm:$0xff]  ;;  %v4802_v62 = vadd.f32 %v11016_v48, %v4611_v30  ;;  %v4811_v37 = vadd.f32 %v11026_v0, %v4620_v56  ;;  %v11197_v30 = vld [vmem:[%s11390_s7] ss:$0 sm:$0xff]  ;;  %v4619_v55 = vadd.f32 %v11103_v26, %v11073_v60  ;;  %v4989_v13 = vadd.f32 %v11123_v53, %v4805_v12  ;;  %v11821_v26 = vld [vmem:[#allocation16_spill] sm:$0xff] }
 0x486   : > { %v11141_v14 = vpop.f32.mrf.mxu1  ;;  %v4992_v0 = vadd.f32 %v11125_v44, %v4808_v63  ;;  %v4809_v10 = vadd.f32 %v11028_v27, %v4618_v2  ;;  %v4990_v60 = vadd.f32 %v11127_v38, %v4806_v39  ;;  %v4812_v53 = vadd.f32 %v11821_v26, %v4621_v42  ;;  %v11822_v44 = vld [vmem:[#allocation25_spill] sm:$0xff]  ;;  %v11825_v2 = vld [vmem:[#allocation26_spill] sm:$0xff] }
 0x487   : > { %11809 = vst [vmem:[#allocation38_spill] sm:$0xff] %v11141_v14  ;;  %v4988_v14 = vadd.f32 %v7641_v23, %v4804_v24  ;;  %v4986_v5 = vadd.f32 %v4925_v35, %v4802_v62  ;;  %v11819_v23 = vld [vmem:[#allocation54_spill] sm:$0xff]  ;;  %v11820_v62 = vld [vmem:[#allocation60_spill] sm:$0xff]  ;;  %v5169_v20 = vadd.f32 %v11822_v44, %v4991_v46  ;;  %v11823_v51 = vunpack.c.l.bf16 %v11812_v45 }
 0x488   : > { %v11147_v57 = vpop.f32.mrf.mxu1  ;;  %v5620_v48 = vunpack.c.l.bf16 %v11819_v23  ;;  %v5624_v35 = vunpack.c.l.bf16 %v11820_v62  ;;  %v4995_v47 = vadd.f32 %v11825_v2, %v4811_v37  ;;  %v11828_v42 = vld [vmem:[#allocation31_spill] sm:$0xff]  ;;  %v11833_v44 = vunpack.c.l.bf16 %v11811_v19 }
 0x489   : > { %v5166_v15 = vadd.f32 %v11069_v28, %v4988_v14  ;;  %v5164_v1 = vadd.f32 %v11075_v16, %v4986_v5  ;;  %v4624_v16 = vadd.f32 %v11105_v8, %v11077_v32  ;;  %v11826_v8 = vld [vmem:[#allocation32_spill] sm:$0xff]  ;;  %v4993_v46 = vadd.f32 %v11828_v42, %v4809_v10  ;;  %v11831_v10 = vld [vmem:[#allocation17_spill] sm:$0xff] }
 0x48a   : > { %v11153_v36 = vpop.f32.mrf.mxu1  ;;  %v5167_v38 = vadd.f32 %v11826_v8, %v4989_v13  ;;  %v11836_v8 = vld [vmem:[#allocation24_spill] sm:$0xff] }
 0x48c   : > { %v11164_v17 = vpop.f32.mrf.mxu1 }
 0x48e   : > { %v7704_v61 = vpop.f32.mrf.mxu1 }
 0x48f   : > { %v5356_v41 = vadd.f32 %v7704_v61, %v5165_v3 }
 0x490   : > { %v5291_v43 = vpop.f32.mrf.mxu1 }
 0x491   : > { %v5540_v3 = vadd.f32 %v7736_v40, %v5356_v41  ;;  %v5354_v21 = vadd.f32 %v5291_v43, %v5163_v52  ;;  %v7741_v40 = vpop.f32.mrf.mxu0  ;;  %v11827_v43 = vld [vmem:[#allocation33_spill] sm:$0xff] }
 0x492   : > { %v7705_v18 = vpop.f32.mrf.mxu1  ;;  %v5170_v63 = vadd.f32 %v11827_v43, %v4992_v0  ;;  %v11839_v43 = vunpack.c.l.bf16 %v11815_v54 }
 0x493   : > { %v5579_v7 = vmul.f32 %v11184_v11, %v5540_v3  ;;  %v5538_v28 = vadd.f32 %v5475_v49, %v5354_v21  ;;  %v5357_v14 = vadd.f32 %v7705_v18, %v5166_v15  ;;  %v5494_v25 = vpop.f32.mrf.mxu0 }
 0x494   : > { %v5294_v33 = vpop.f32.mrf.mxu1 }
 0x495   : > { %v5602_v24 = vadd.f32 %v11197_v30, %v5579_v7  ;;  %v5577_v58 = vmul.f32 %v11184_v11, %v5538_v28  ;;  %v5541_v49 = vadd.f32 %v11135_v31, %v5357_v14  ;;  %v5355_v61 = vadd.f32 %v5294_v33, %v5164_v1  ;;  %v11824_v31 = vld [vmem:[#allocation43_spill] sm:$0xff]  ;;  %v11829_v28 = vld [vmem:[#allocation36_spill] sm:$0xff]  ;;  %v7744_v14 = vpop.f32.mrf.mxu0 }
 0x496   : > { %v7708_v27 = vpop.f32.mrf.mxu1  ;;  %v5168_v37 = vadd.f32 %v11829_v28, %v4990_v60  ;;  %v11841_v28 = vld [vmem:[#allocation40_spill] sm:$0xff] }
 0x497   : > { %v5634_v56 = vadd.f32 %v11823_v51, %v5602_v24  ;;  %v5600_v5 = vadd.f32 %v11197_v30, %v5577_v58  ;;  %v5580_v41 = vmul.f32 %v11184_v11, %v5541_v49  ;;  %v5539_v52 = vadd.f32 %v11824_v31, %v5355_v61  ;;  %v11832_v61 = vld [vmem:[#allocation37_spill] sm:$0xff]  ;;  %v11834_v51 = vld [vmem:[#allocation30_spill] sm:$0xff]  ;;  %v11835_v31 = vld [vmem:[#allocation39_spill] sm:$0xff] }
 0x498   : > { %v5360_v32 = vadd.f32 %v7708_v27, %v5169_v20  ;;  %v5307_v12 = vpop.f32.mrf.mxu1  ;;  %v4810_v24 = vadd.f32 %v11831_v10, %v4619_v55  ;;  %v5173_v60 = vadd.f32 %v11832_v61, %v4995_v47  ;;  %v11843_v10 = vld [vmem:[#allocation28_spill] sm:$0xff] }
 0x499   : > { %v5650_v3 = vmax.f32 %v5634_v56, 0.0  ;;  %v5632_v21 = vadd.f32 %v5616_v50, %v5600_v5  ;;  %v5603_v15 = vadd.f32 %v11197_v30, %v5580_v41  ;;  %v5578_v45 = vmul.f32 %v11184_v11, %v5539_v52  ;;  %v5507_v52 = vpop.f32.mrf.mxu0 }
 0x49a   : > { %v5544_v39 = vadd.f32 %v11157_v9, %v5360_v32  ;;  %v5358_v18 = vadd.f32 %v5307_v12, %v5167_v38  ;;  %v7709_v7 = vpop.f32.mrf.mxu1  ;;  %v11830_v50 = vunpack.c.l.bf16 %v11813_v22  ;;  %v4996_v56 = vadd.f32 %v11834_v51, %v4812_v53  ;;  %v11838_v12 = vld [vmem:[#allocation35_spill] sm:$0xff]  ;;  %v11849_v51 = vld [vmem:[#allocation20_spill] sm:$0xff] }
 0x49b   : > { %5666 = vst [vmem:[%s11229_s26 + $0x10] sm:$0xff] %v5650_v3  ;;  %v5648_v1 = vmax.f32 %v5632_v21, 0.0  ;;  %v5601_v0 = vadd.f32 %v11197_v30, %v5578_v45  ;;  %v5361_v33 = vadd.f32 %v7709_v7, %v5170_v63  ;;  %v4994_v53 = vadd.f32 %v11838_v12, %v4810_v24  ;;  %v11844_v24 = vld [vmem:[#allocation44_spill] sm:$0xff] }
 0x49c   : > { %v5635_v13 = vadd.f32 %v11830_v50, %v5603_v15  ;;  %v5583_v9 = vmul.f32 %v11184_v11, %v5544_v39  ;;  %v5542_v58 = vadd.f32 %v11173_v34, %v5358_v18  ;;  %v5310_v49 = vpop.f32.mrf.mxu1  ;;  %v5171_v34 = vadd.f32 %v11835_v31, %v4993_v46  ;;  %v11840_v46 = vld [vmem:[#allocation19_spill] sm:$0xff] }
 0x49d   : > { %5664 = vst [vmem:[%s11229_s26] sm:$0xff] %v5648_v1  ;;  %v5633_v20 = vadd.f32 %v11833_v44, %v5601_v0  ;;  %v5545_v22 = vadd.f32 %v7741_v40, %v5361_v33  ;;  %v5359_v27 = vadd.f32 %v5310_v49, %v5168_v37  ;;  %v11837_v40 = vld [vmem:[#allocation9_spill] sm:$0xff]  ;;  %v4815_v39 = vadd.f32 %v11840_v46, %v4624_v16  ;;  %v7745_v1 = vpop.f32.mrf.mxu0 }
 0x49e   : > { %v5651_v26 = vmax.f32 %v5635_v13, 0.0  ;;  %v5606_v55 = vadd.f32 %v11197_v30, %v5583_v9  ;;  %v5581_v5 = vmul.f32 %v11184_v11, %v5542_v58  ;;  %v7712_v41 = vpop.f32.mrf.mxu1  ;;  %v4622_v38 = vadd.f32 %v11837_v40, %v11836_v8 }
 0x49f   : > { %v5649_v2 = vmax.f32 %v5633_v20, 0.0  ;;  %v5584_v47 = vmul.f32 %v11184_v11, %v5545_v22  ;;  %v5543_v32 = vadd.f32 %v5494_v25, %v5359_v27  ;;  %v5364_v19 = vadd.f32 %v7712_v41, %v5173_v60  ;;  %v11847_v20 = vld [vmem:[#allocation29_spill] sm:$0xff]  ;;  %v11848_v22 = vld [vmem:[#allocation74_spill] sm:$0xff]  ;;  %v5510_v31 = vpop.f32.mrf.mxu0 }
 0x4a0   : > { %5667 = vst [vmem:[%s11229_s26 + $0x18] sm:$0xff] %v5651_v26  ;;  %v5638_v63 = vadd.f32 %v11839_v43, %v5606_v55  ;;  %v5604_v3 = vadd.f32 %v11197_v30, %v5581_v5  ;;  %v5323_v21 = vpop.f32.mrf.mxu1  ;;  %v5174_v54 = vadd.f32 %v11841_v28, %v4996_v56  ;;  %v11842_v50 = vunpack.c.l.bf16 %v11816_v29 }
 0x4a1   : > { %5665 = vst [vmem:[%s11229_s26 + $0x8] sm:$0xff] %v5649_v2  ;;  %v5607_v15 = vadd.f32 %v11197_v30, %v5584_v47  ;;  %v5582_v45 = vmul.f32 %v11184_v11, %v5543_v32  ;;  %v5548_v42 = vadd.f32 %v7744_v14, %v5364_v19  ;;  %v5362_v25 = vadd.f32 %v5323_v21, %v5171_v34  ;;  %v11850_v34 = vld [vmem:[#allocation38_spill] sm:$0xff]  ;;  %v11851_v32 = vld [vmem:[#allocation64_spill] sm:$0xff] }
 0x4a2   : > { %v5654_v18 = vmax.f32 %v5638_v63, 0.0  ;;  %v5636_v7 = vadd.f32 %v5620_v48, %v5604_v3  ;;  %v7713_v37 = vpop.f32.mrf.mxu1  ;;  %v4625_v16 = vadd.f32 %v11844_v24, %v11843_v10  ;;  %v11845_v48 = vld [vmem:[#allocation41_spill] sm:$0xff]  ;;  %v11846_v29 = vunpack.c.l.bf16 %v11814_v4 }
 0x4a3   : > { %v5639_v13 = vadd.f32 %v11842_v50, %v5607_v15  ;;  %v5605_v0 = vadd.f32 %v11197_v30, %v5582_v45  ;;  %v5587_v33 = vmul.f32 %v11184_v11, %v5548_v42  ;;  %v5546_v14 = vadd.f32 %v5507_v52, %v5362_v25  ;;  %v11854_v25 = vld [vmem:[#allocation23_spill] sm:$0xff] }
 0x4a4   : > { %5670 = vst [vmem:[%s11229_s26 + $0x30] sm:$0xff] %v5654_v18  ;;  %v5652_v9 = vmax.f32 %v5636_v7, 0.0  ;;  %v5365_v23 = vadd.f32 %v7713_v37, %v5174_v54  ;;  %v5172_v58 = vadd.f32 %v11845_v48, %v4994_v53  ;;  %v5326_v49 = vpop.f32.mrf.mxu1  ;;  %v4623_v27 = vadd.f32 %v11848_v22, %v11847_v20  ;;  %v11852_v53 = vld [vmem:[#allocation22_spill] sm:$0xff]  ;;  %v11859_v48 = vld [vmem:[#allocation27_spill] sm:$0xff] }
 0x4a5   : > { %v5655_v61 = vmax.f32 %v5639_v13, 0.0  ;;  %v5637_v60 = vadd.f32 %v11846_v29, %v5605_v0  ;;  %v5610_v26 = vadd.f32 %v11197_v30, %v5587_v33  ;;  %v5585_v44 = vmul.f32 %v11184_v11, %v5546_v14  ;;  %v11856_v37 = vld [vmem:[#allocation18_spill] sm:$0xff]  ;;  %v11857_v33 = vld [vmem:[#allocation21_spill] sm:$0xff] }
 0x4a6   : > { %v4813_v56 = vadd.f32 %v11849_v51, %v4622_v38  ;;  %5668 = vst [vmem:[%s11229_s26 + $0x20] sm:$0xff] %v5652_v9  ;;  %v5549_v55 = vadd.f32 %v7745_v1, %v5365_v23  ;;  %v5363_v5 = vadd.f32 %v5326_v49, %v5172_v58  ;;  %v7716_v41 = vpop.f32.mrf.mxu1  ;;  %v4999_v52 = vadd.f32 %v11850_v34, %v4815_v39  ;;  %v11855_v39 = vld [vmem:[#allocation45_spill] sm:$0xff]  ;;  %v11860_v29 = vld [vmem:[#allocation66_spill] sm:$0xff] }
 0x4a7   : > { %5671 = vst [vmem:[%s11229_s26 + $0x38] sm:$0xff] %v5655_v61  ;;  %v5653_v4 = vmax.f32 %v5637_v60, 0.0  ;;  %v5642_v2 = vadd.f32 %v5626_v59, %v5610_v26  ;;  %v5608_v47 = vadd.f32 %v11197_v30, %v5585_v44  ;;  %v5627_v19 = vunpack.c.l.bf16 %v11851_v32  ;;  %v11853_v59 = vld [vmem:[#allocation61_spill] sm:$0xff] }
 0x4a8   : > { %v5588_v8 = vmul.f32 %v11184_v11, %v5549_v55  ;;  %v5547_v40 = vadd.f32 %v5510_v31, %v5363_v5  ;;  %v5339_v38 = vpop.f32.mrf.mxu1  ;;  %v4997_v12 = vadd.f32 %v11147_v57, %v4813_v56  ;;  %v4816_v43 = vadd.f32 %v11852_v53, %v4625_v16  ;;  %v11858_v16 = vld [vmem:[#allocation70_spill] sm:$0xff]  ;;  %v11861_v51 = vld [vmem:[#allocation73_spill] sm:$0xff] }
 0x4a9   : > { %5669 = vst [vmem:[%s11229_s26 + $0x28] sm:$0xff] %v5653_v4  ;;  %v5658_v63 = vmax.f32 %v5642_v2, 0.0  ;;  %v5640_v6 = vadd.f32 %v5624_v35, %v5608_v47  ;;  %v5625_v3 = vunpack.c.l.bf16 %v11853_v59  ;;  %v4814_v46 = vadd.f32 %v11854_v25, %v4623_v27 }
 0x4aa   : > { %v5611_v21 = vadd.f32 %v11197_v30, %v5588_v8  ;;  %v5586_v15 = vmul.f32 %v11184_v11, %v5547_v40  ;;  %v7717_v45 = vpop.f32.mrf.mxu1  ;;  %v5000_v42 = vadd.f32 %v11153_v36, %v4816_v43  ;;  %v5177_v18 = vadd.f32 %v11855_v39, %v4999_v52  ;;  %v11862_v52 = vld [vmem:[#allocation34_spill] sm:$0xff] }
 0x4ab   : > { %5674 = vst [vmem:[%s11229_s26 + $0x50] sm:$0xff] %v5658_v63  ;;  %v5656_v57 = vmax.f32 %v5640_v6, 0.0  ;;  %v4998_v28 = vadd.f32 %v11164_v17, %v4814_v46  ;;  %v5175_v1 = vadd.f32 %v11856_v37, %v4997_v12  ;;  %v5630_v9 = vunpack.c.l.bf16 %v11858_v16 }
 0x4ac   : > { %v5643_v7 = vadd.f32 %v5627_v19, %v5611_v21  ;;  %v5609_v62 = vadd.f32 %v11197_v30, %v5586_v15  ;;  %v5342_v35 = vpop.f32.mrf.mxu1  ;;  %v5368_v54 = vadd.f32 %v7716_v41, %v5177_v18  ;;  %v5178_v14 = vadd.f32 %v11857_v33, %v5000_v42 }
 0x4ad   : > { %5672 = vst [vmem:[%s11229_s26 + $0x40] sm:$0xff] %v5656_v57  ;;  %v5366_v0 = vadd.f32 %v5339_v38, %v5175_v1  ;;  %v5176_v58 = vadd.f32 %v11859_v48, %v4998_v28  ;;  %v5628_v60 = vunpack.c.l.bf16 %v11860_v29  ;;  %v5631_v56 = vunpack.c.l.bf16 %v11861_v51 }
 0x4ae   : > { %v5659_v50 = vmax.f32 %v5643_v7, 0.0  ;;  %v5641_v36 = vadd.f32 %v5625_v3, %v5609_v62  ;;  %v7748_v13 = vpop.f32.mrf.mxu1  ;;  %v5369_v17 = vadd.f32 %v7717_v45, %v5178_v14  ;;  %v5629_v4 = vunpack.c.l.bf16 %v11862_v52 }
 0x4af   : > { %v5552_v10 = vadd.f32 %v7748_v13, %v5368_v54  ;;  %v5367_v44 = vadd.f32 %v5342_v35, %v5176_v58 }
 0x4b0   : > { %5675 = vst [vmem:[%s11229_s26 + $0x58] sm:$0xff] %v5659_v50  ;;  %v5657_v24 = vmax.f32 %v5641_v36, 0.0  ;;  %v5523_v23 = vpop.f32.mrf.mxu1 }
 0x4b1   : > { %v5591_v49 = vmul.f32 %v11184_v11, %v5552_v10  ;;  %v5550_v61 = vadd.f32 %v5523_v23, %v5366_v0 }
 0x4b2   : > { %5673 = vst [vmem:[%s11229_s26 + $0x48] sm:$0xff] %v5657_v24  ;;  %v7749_v26 = vpop.f32.mrf.mxu1 }
 0x4b3   : > { %v5614_v20 = vadd.f32 %v11197_v30, %v5591_v49  ;;  %v5589_v22 = vmul.f32 %v11184_v11, %v5550_v61  ;;  %v5553_v27 = vadd.f32 %v7749_v26, %v5369_v17 }
 0x4b4   : > { %v5526_v55 = vpop.f32.mrf.mxu1 }
 0x4b5   : > { %v5646_v5 = vadd.f32 %v5630_v9, %v5614_v20  ;;  %v5612_v41 = vadd.f32 %v11197_v30, %v5589_v22  ;;  %v5592_v31 = vmul.f32 %v11184_v11, %v5553_v27  ;;  %v5551_v34 = vadd.f32 %v5526_v55, %v5367_v44 }
 0x4b7   : > { %v5662_v2 = vmax.f32 %v5646_v5, 0.0  ;;  %v5644_v47 = vadd.f32 %v5628_v60, %v5612_v41  ;;  %v5615_v32 = vadd.f32 %v11197_v30, %v5592_v31  ;;  %v5590_v19 = vmul.f32 %v11184_v11, %v5551_v34 }
 0x4b9   : > { %5678 = vst [vmem:[%s11229_s26 + $0x70] sm:$0xff] %v5662_v2  ;;  %v5660_v8 = vmax.f32 %v5644_v47, 0.0  ;;  %v5647_v40 = vadd.f32 %v5631_v56, %v5615_v32  ;;  %v5613_v38 = vadd.f32 %v11197_v30, %v5590_v19 }
 0x4bb   : > { %5676 = vst [vmem:[%s11229_s26 + $0x60] sm:$0xff] %v5660_v8  ;;  %v5663_v12 = vmax.f32 %v5647_v40, 0.0  ;;  %v5645_v53 = vadd.f32 %v5629_v4, %v5613_v38 }
 0x4bd   : > { %5679 = vst [vmem:[%s11229_s26 + $0x78] sm:$0xff] %v5663_v12  ;;  %v5661_v11 = vmax.f32 %v5645_v53, 0.0 }
 0x4bf   : > { %5677 = vst [vmem:[%s11229_s26 + $0x68] sm:$0xff] %v5661_v11 }
 0x4c0   : > { %8046 = shalt.err (!%p8043_p9)
}
 0x4c1   : > { %s8047_s15 = scalar_lea.hbm %s11324_s13, 2048  ;;  %s8051_s14 = scalar_lea.hbm %s11391_s8, 8192 }
 0x4c2   : > { %p8048_p10 = scmp.ne.s32.totalorder %s11324_s13, %s8047_s15  ;;  %p8052_p13 = scmp.lt.s32.totalorder %s11324_s13, %s11391_s8 }
 0x4c3   : > { %p8053_p0 = scmp.lt.s32.totalorder %s8051_s14, %s8047_s15 }
 0x4c4   : > { %p8049_p11 = pnand %p8048_p10, %p8228_p3 }
 0x4c5   : > { %p8054_p1 = por %p8053_p0, %p8052_p13 }
 0x4c6   : > { %p8050_p12 = pneg %p8049_p11 }
 0x4c8   : > { %p8055_p2 = pnand %p8054_p1, %p8050_p12 }
 0x4ca   : > { %8058 = shalt.err (!%p8055_p2)
}
 0x4cb   : > { %s8130_s24 = smov 128   ;;  %s8131_s21 = smov 8  }
 0x4cc   : > { %7767 = dma.vmem_to_hbm [thread:$0]  (%p8228_p3), %s11326_s9, 2048, %s11324_s13, %s11332_s25, %s8130_s24, %s8130_s24, %s8131_s21  }
 0x4cd PF: > { %p7773_p4 = scmp.ge.s32.totalorder %s8125_s12, 2  ;;  %s5712_s11 = sand.u32 1, %s8097_s27  }
 0x4ce   : > { %s5713_s10 = scalar_lea.sflag [#allocation3], %s5712_s11 }
 0x4cf   : > { %p7770_p5 = pnand %p7773_p4, %p8237_p8 }
 0x4d1   : > { %p7771_p6 = pneg %p7770_p5 }
 0x4d3   : > { %8092 = dma.done.wait (%p7771_p6), %s5713_s10, 2048  }
 0x4d4   : > { %8094 = vsyncadd (%p7771_p6), %s5713_s10, 4294965248  ;;  %s21_s12 = sadd.s32 1, %s8125_s12   ;;  %s11863_s30 = sld [smem:[#allocation5_spill]] }
 0x4d5   : > { %p18_p7 = scmp.ge.s32.totalorder %s21_s12, 6   ;;  %s11864_s9 = sld [smem:[#allocation6_spill]] }
 0x4d6   : > { %s11865_s10 = sld [smem:[#allocation7_spill]]  ;;  %s11867_s27 = smov %s8101_s28 }
 0x4d7   : > { %s11866_s11 = sld [smem:[#allocation8_spill]]  ;;  %s11868_s28 = smov %s8105_s29 }
 0x4d8   : > { %s11869_s29 = smov %s8246_s23  ;;  %20 = sbr.rel (!%p18_p7) target bundleno = 5 (0x5), region = 106 }
 0x4dd   :  { %5718 = vsyncpa [#allocation3], 1 }
 0x4de   :  { %5720 = vsyncpa [#allocation3 + $0x1], 1 }

</bundles_post_ra>
